<compile_context>
chip_gen: v7x
topology: tpu7x:2x2x1
jax: 0.10.0
libtpu: 0.0.40
codegen_flags: <defaults>
</compile_context>

<pallas_src>
import jax
import jax.numpy as jnp
from jax import lax
from jax.experimental import pallas as pl
from jax.experimental.pallas import tpu as pltpu


def _bigru_classifier_kernel(
    x_ref, prod_ref,
    wi_ref, bi_ref,
    whh_ref, bhn_ref,
    w1_ref, b1_ref, w2_ref, b2_ref,
    out_ref,
    gif_scr, gib_scr,
):
    T, bB, D = x_ref.shape
    H2 = whh_ref.shape[0]          # 2*H
    H = H2 // 2
    H3 = 3 * H
    H6 = 6 * H

    # ---- Prologue: ONE hoisted input->hidden projection for both directions
    # (M = T*bB rows fills the MXU); r/z biases already folded in. ----
    x2 = x_ref[...].reshape(T * bB, D)
    gi = (
        jnp.dot(x2, wi_ref[...], preferred_element_type=jnp.float32)
        + bi_ref[...]
    ).reshape(T, bB, H6)
    gif_scr[...] = gi[:, :, 0:H3]          # forward gates  [r z n]
    gib_scr[...] = gi[:, :, H3:H6]         # backward gates [r z n]

    whh = whh_ref[...]             # (2H, 6H) block-diag, cols [r_f r_b z_f z_b n_f n_b]
    bhn = bhn_ref[...]             # (1, 2H)  [bhh_n_f | bhh_n_b]

    zeros = jnp.zeros((bB, H2), jnp.float32)
    neg_inf = jnp.full((bB, H2), -jnp.inf, jnp.float32)

    def step(t, carry):
        h, mx, sm = carry          # h = [h_fwd | h_bwd], shape (bB, 2H)
        gi_f = gif_scr[t]          # forward direction reads time t
        gi_b = gib_scr[T - 1 - t]  # backward direction reads reversed time
        # Single MXU push per step for both directions (block-diagonal whh).
        gh = jnp.dot(h, whh, preferred_element_type=jnp.float32)    # (bB, 6H)
        gi_r = jnp.concatenate([gi_f[:, 0:H], gi_b[:, 0:H]], axis=-1)
        gi_z = jnp.concatenate([gi_f[:, H:2 * H], gi_b[:, H:2 * H]], axis=-1)
        gi_n = jnp.concatenate([gi_f[:, 2 * H:H3], gi_b[:, 2 * H:H3]], axis=-1)
        r = jax.nn.sigmoid(gi_r + gh[:, 0:H2])
        z = jax.nn.sigmoid(gi_z + gh[:, H2:2 * H2])
        n = jnp.tanh(gi_n + r * (gh[:, 2 * H2:3 * H2] + bhn))
        h = (1.0 - z) * n + z * h
        return h, jnp.maximum(mx, h), sm + h

    # Max/avg time pooling of concat([fwd, bwd]) == per-direction pooling, so
    # the (reversed) time order of the backward states does not matter.
    unroll = True if T <= 32 else 8
    _, mx, sm = lax.fori_loop(0, T, step, (zeros, neg_inf, zeros), unroll=unroll)

    # ---- Epilogue: fused classifier.  feat = [max_f|max_b|avg_f|avg_b|prod]
    avg = sm * (1.0 / T)
    feat = jnp.concatenate([mx, avg, prod_ref[...]], axis=-1)       # (bB, 4H+Ep_pad)
    hidden = jnp.dot(feat, w1_ref[...], preferred_element_type=jnp.float32) + b1_ref[...]
    hidden = jnp.maximum(hidden, 0.0)                               # ReLU
    out_ref[...] = (
        jnp.dot(hidden, w2_ref[...], preferred_element_type=jnp.float32) + b2_ref[...]
    )


def init_params(key, cat_specs, prod_spec, rnn_units, top_units):
    """cat_specs: list of (cardinality, embed_dim); prod_spec: (cardinality, embed_dim)."""
    d_in = sum(e for _, e in cat_specs)
    h = rnn_units
    ep = prod_spec[1]
    keys = iter(jax.random.split(key, 32))

    def rnd(shape, scale=0.1):
        return (scale * jax.random.normal(next(keys), shape)).astype(jnp.float32)

    return {
        "rnn_units": h,
        # nn.Embedding(num_embeddings=cardinality + 1, embedding_dim=e)
        "emb_tables": [rnd((c + 1, e)) for c, e in cat_specs],
        "prod_table": rnd((prod_spec[0] + 1, ep)),
        # GRU weights, PyTorch layout: (3H, in), gate rows [r; z; n]
        "wih_f": rnd((3 * h, d_in)), "whh_f": rnd((3 * h, h)),
        "bih_f": rnd((3 * h,)), "bhh_f": rnd((3 * h,)),
        "wih_b": rnd((3 * h, d_in)), "whh_b": rnd((3 * h, h)),
        "bih_b": rnd((3 * h,)), "bhh_b": rnd((3 * h,)),
        # top classifier: Linear(4H + Ep -> top) -> ReLU -> Linear(top -> 1)
        "w1": rnd((top_units, 4 * h + ep)), "b1": rnd((top_units,)),
        "w2": rnd((1, top_units)), "b2": rnd((1,)),
    }


def prepack_params(p):
    """One-time host-side packing: transposes, bias folding, merged input
    projection weight, block-diagonal recurrent weight, classifier fusion +
    lane padding.  Per-call work is then pure embedding gathers."""
    h = p["rnn_units"]
    ep = p["prod_table"].shape[1]
    ep_pad = ((ep + 127) // 128) * 128
    top = p["w1"].shape[0]
    f32 = jnp.float32

    def fold_bias(bih, bhh):
        # r/z biases can be pre-summed; bhh_n must stay inside r*(gh_n + bhh_n),
        # so only bih_n is folded into the hoisted projection.
        return jnp.concatenate(
            [bih[0:h] + bhh[0:h], bih[h:2 * h] + bhh[h:2 * h], bih[2 * h:]]
        ).astype(f32)

    # Merged input projection: (D, 6H), columns [r_f z_f n_f | r_b z_b n_b].
    wi = jnp.concatenate(
        [p["wih_f"].astype(f32).T, p["wih_b"].astype(f32).T], axis=1)
    bi = jnp.concatenate(
        [fold_bias(p["bih_f"], p["bhh_f"]),
         fold_bias(p["bih_b"], p["bhh_b"])])[None, :]                # (1, 6H)

    # Block-structured recurrent weight: h_cat(bB,2H) @ whh(2H,6H) yields
    # gate-major, direction-concatenated columns [r_f r_b z_f z_b n_f n_b].
    wf = p["whh_f"].astype(f32)    # (3H, H), gate rows [r; z; n]
    wb = p["whh_b"].astype(f32)
    whh = jnp.zeros((2 * h, 6 * h), f32)
    for g in range(3):             # 0=r, 1=z, 2=n
        whh = whh.at[0:h, (2 * g) * h:(2 * g + 1) * h].set(wf[g * h:(g + 1) * h, :].T)
        whh = whh.at[h:2 * h, (2 * g + 1) * h:(2 * g + 2) * h].set(wb[g * h:(g + 1) * h, :].T)

    # Fused classifier weight: rows ordered [max_f|max_b|avg_f|avg_b|prod(+pad)].
    w1_t = p["w1"].astype(f32).T                                    # (4H+Ep, top)
    w1 = jnp.zeros((4 * h + ep_pad, top), f32).at[0:4 * h + ep, :].set(w1_t)

    prod_table = jnp.zeros((p["prod_table"].shape[0], ep_pad), f32)
    prod_table = prod_table.at[:, 0:ep].set(p["prod_table"].astype(f32))

    return {
        "rnn_units": h,
        "ep_pad": ep_pad,
        "emb_tables": [t.astype(f32) for t in p["emb_tables"]],
        "prod_table_pad": prod_table,
        "wi": wi,                                                   # (D, 6H)
        "bi": bi,                                                   # (1, 6H)
        "whh": whh,                                                 # (2H, 6H)
        "bhn": jnp.concatenate(
            [p["bhh_f"][2 * h:], p["bhh_b"][2 * h:]])[None, :].astype(f32),
        "w1": w1,                                                   # (4H+Ep_pad, top)
        "b1": p["b1"][None, :].astype(f32),
        "w2": p["w2"].astype(f32).T,                                # (top, 1)
        "b2": p["b2"][None, :].astype(f32),
    }


def _auto_batch_block(B, T, H, D):
    """Largest batch tile (multiple of 8, <=128) whose two (T, bB, 3H) gate
    scratches plus double-buffered x tile stay within ~10 MiB of VMEM."""
    budget = 10 * 1024 * 1024
    per_row = T * (6 * H + 2 * D) * 4
    bb = budget // max(per_row, 1)
    bb = max(8, min(128, (bb // 8) * 8))
    b_pad = ((B + 7) // 8) * 8
    return min(bb, b_pad)


def transactions_rnn2_pallas(cat_inputs, product_feature, packed, *, batch_block=None):
    # Embedding gathers stay in plain JAX (glue), done directly in time-major
    # order so no (B,T,D)->(T,B,D) activation transpose is needed.
    x_tm = jnp.concatenate(
        [jnp.take(tbl, idx.T, axis=0)
         for tbl, idx in zip(packed["emb_tables"], cat_inputs)],
        axis=-1)                                                    # (T, B, D) f32
    prod = jnp.take(packed["prod_table_pad"], product_feature, axis=0)  # (B, Ep_pad)
    # nn.Dropout2d(0.1) is identity in eval mode (inference forward).

    T, B, D = x_tm.shape
    H = packed["rnn_units"]
    ep_pad = packed["ep_pad"]

    bB = batch_block if batch_block is not None else _auto_batch_block(B, T, H, D)
    bB = max(8, (bB // 8) * 8)
    n_blocks = pl.cdiv(B, bB)
    B_pad = n_blocks * bB
    if B_pad != B:
        x_tm = jnp.pad(x_tm, ((0, 0), (0, B_pad - B), (0, 0)))
        prod = jnp.pad(prod, ((0, B_pad - B), (0, 0)))

    def _resident_spec(arr):
        zeros = (0,) * arr.ndim
        return pl.BlockSpec(arr.shape, lambda i, _z=zeros: _z)      # same block every step

    weights = [packed["wi"], packed["bi"],
               packed["whh"], packed["bhn"],
               packed["w1"], packed["b1"], packed["w2"], packed["b2"]]

    grid_spec = pltpu.PrefetchScalarGridSpec(
        num_scalar_prefetch=0,
        grid=(n_blocks,),
        in_specs=[
            pl.BlockSpec((T, bB, D), lambda i: (0, i, 0)),          # x batch tile
            pl.BlockSpec((bB, ep_pad), lambda i: (i, 0)),           # product tile
        ] + [_resident_spec(w) for w in weights],
        out_specs=pl.BlockSpec((bB, 1), lambda i: (i, 0)),
        scratch_shapes=[
            pltpu.VMEM((T, bB, 3 * H), jnp.float32),                # GI forward
            pltpu.VMEM((T, bB, 3 * H), jnp.float32),                # GI backward
        ],
    )

    out = pl.pallas_call(
        _bigru_classifier_kernel,
        out_shape=jax.ShapeDtypeStruct((B_pad, 1), jnp.float32),
        grid_spec=grid_spec,
        compiler_params=pltpu.CompilerParams(
            dimension_semantics=("parallel",),      # batch tiles split across v7x TCs
            vmem_limit_bytes=48 * 1024 * 1024,      # fits v5e/v6e/v7x scoped VMEM
        ),
    )(x_tm, prod, *weights)
    return out[:B]


def reference_forward(cat_inputs, product_feature, p):
    """Pure-JAX reference mirroring the PyTorch forward (eval mode)."""
    hi = jax.lax.Precision.HIGHEST
    embeds = [jnp.take(tbl, idx, axis=0)
              for tbl, idx in zip(p["emb_tables"], cat_inputs)]
    x = jnp.concatenate(embeds, axis=-1).astype(jnp.float32)        # (B, T, D)
    prod = jnp.take(p["prod_table"], product_feature, axis=0).astype(jnp.float32)
    H = p["rnn_units"]

    def gru_dir(x_seq, wih, whh, bih, bhh):
        b = x_seq.shape[0]

        def step(h, x_t):
            gi = jnp.dot(x_t, wih.T, precision=hi) + bih
            gh = jnp.dot(h, whh.T, precision=hi) + bhh
            r = jax.nn.sigmoid(gi[:, :H] + gh[:, :H])
            z = jax.nn.sigmoid(gi[:, H:2 * H] + gh[:, H:2 * H])
            n = jnp.tanh(gi[:, 2 * H:] + r * gh[:, 2 * H:])
            h = (1.0 - z) * n + z * h
            return h, h

        _, hs = lax.scan(step, jnp.zeros((b, H), jnp.float32), jnp.swapaxes(x_seq, 0, 1))
        return jnp.swapaxes(hs, 0, 1)                               # (B, T, H)

    hf = gru_dir(x, p["wih_f"], p["whh_f"], p["bih_f"], p["bhh_f"])
    hb = gru_dir(x[:, ::-1, :], p["wih_b"], p["whh_b"], p["bih_b"], p["bhh_b"])[:, ::-1, :]
    states = jnp.concatenate([hf, hb], axis=-1)                     # (B, T, 2H)
    rnn_max = states.max(axis=1)
    rnn_avg = states.sum(axis=1) / states.shape[1]
    combined = jnp.concatenate([rnn_max, rnn_avg, prod], axis=-1)
    hidden = jnp.maximum(jnp.dot(combined, p["w1"].T, precision=hi) + p["b1"], 0.0)
    return jnp.dot(hidden, p["w2"].T, precision=hi) + p["b2"]


if __name__ == "__main__":
    # Small synthetic config: 3 categorical transaction features + product.
    B, T = 16, 8
    rnn_units = 128                 # module default; keeps gate slices 128-aligned
    top_units = 32
    cat_specs = [(10, 6), (10, 6), (10, 4)]      # (cardinality, embed_dim) -> D = 16
    prod_spec = (10, 8)                          # product embedding dim = 8

    key = jax.random.PRNGKey(0)
    k_par, k_c0, k_c1, k_c2, k_p = jax.random.split(key, 5)
    params = init_params(k_par, cat_specs, prod_spec, rnn_units, top_units)
    packed = prepack_params(params)              # one-time host-side prepacking

    cat_inputs = [
        jax.random.randint(k_c0, (B, T), 0, cat_specs[0][0] + 1),
        jax.random.randint(k_c1, (B, T), 0, cat_specs[1][0] + 1),
        jax.random.randint(k_c2, (B, T), 0, cat_specs[2][0] + 1),
    ]
    product_feature = jax.random.randint(k_p, (B,), 0, prod_spec[0] + 1)

    fwd = jax.jit(lambda ci, pf: transactions_rnn2_pallas(ci, pf, packed))
    logit = jax.block_until_ready(fwd(cat_inputs, product_feature))

    ref = jax.block_until_ready(reference_forward(cat_inputs, product_feature, params))
    assert logit.shape == (B, 1), logit.shape
    assert jnp.allclose(logit, ref, rtol=1e-4, atol=1e-4), (logit, ref)

    print("KERNEL_OK")
</pallas_src>

<mosaic_0001>
module attributes {stable_mosaic.version = 11 : i64} {
  func.func @_bigru_classifier_kernel(%arg0: i32, %arg1: memref<8x16x16xf32, #tpu.memory_space<vmem>>, %arg2: memref<16x128xf32, #tpu.memory_space<vmem>>, %arg3: memref<16x768xf32, #tpu.memory_space<vmem>>, %arg4: memref<1x768xf32, #tpu.memory_space<vmem>>, %arg5: memref<256x768xf32, #tpu.memory_space<vmem>>, %arg6: memref<1x256xf32, #tpu.memory_space<vmem>>, %arg7: memref<640x32xf32, #tpu.memory_space<vmem>>, %arg8: memref<1x32xf32, #tpu.memory_space<vmem>>, %arg9: memref<32x1xf32, #tpu.memory_space<vmem>>, %arg10: memref<1x1xf32, #tpu.memory_space<vmem>>, %arg11: memref<16x1xf32, #tpu.memory_space<vmem>>, %arg12: memref<8x16x384xf32, #tpu.memory_space<vmem>>, %arg13: memref<8x16x384xf32, #tpu.memory_space<vmem>>) attributes {dimension_semantics = [#tpu.dimension_semantics<parallel>], iteration_bounds = array<i64: 1>, scalar_prefetch = 0 : i64, scratch_operands = 2 : i64, tpu.core_type = #tpu.core_type<tc>, window_params = [{transform_indices = @transform_0, window_bounds = array<i64: 8, 16, 16>}, {transform_indices = @transform_1, window_bounds = array<i64: 16, 128>}, {pipeline_mode = #tpu.pipeline_mode<synchronous>, transform_indices = @transform_2, window_bounds = array<i64: 16, 768>}, {pipeline_mode = #tpu.pipeline_mode<synchronous>, transform_indices = @transform_3, window_bounds = array<i64: 1, 768>}, {pipeline_mode = #tpu.pipeline_mode<synchronous>, transform_indices = @transform_4, window_bounds = array<i64: 256, 768>}, {pipeline_mode = #tpu.pipeline_mode<synchronous>, transform_indices = @transform_5, window_bounds = array<i64: 1, 256>}, {pipeline_mode = #tpu.pipeline_mode<synchronous>, transform_indices = @transform_6, window_bounds = array<i64: 640, 32>}, {pipeline_mode = #tpu.pipeline_mode<synchronous>, transform_indices = @transform_7, window_bounds = array<i64: 1, 32>}, {pipeline_mode = #tpu.pipeline_mode<synchronous>, transform_indices = @transform_8, window_bounds = array<i64: 32, 1>}, {pipeline_mode = #tpu.pipeline_mode<synchronous>, transform_indices = @transform_9, window_bounds = array<i64: 1, 1>}, {transform_indices = @transform_10, window_bounds = array<i64: 16, 1>}]} {
    %c0 = arith.constant 0 : index
    %c0_0 = arith.constant 0 : index
    %c0_1 = arith.constant 0 : index
    %0 = vector.load %arg1[%c0, %c0_0, %c0_1] : memref<8x16x16xf32, #tpu.memory_space<vmem>>, vector<8x16x16xf32>
    %1 = vector.shape_cast %0 : vector<8x16x16xf32> to vector<128x16xf32>
    %c0_2 = arith.constant 0 : index
    %c0_3 = arith.constant 0 : index
    %2 = vector.load %arg3[%c0_2, %c0_3] : memref<16x768xf32, #tpu.memory_space<vmem>>, vector<16x768xf32>
    %cst = arith.constant dense<0.000000e+00> : vector<128x768xf32>
    %3 = tpu.matmul %1, %2, %cst {dimension_numbers = #tpu.dot_dimension_numbers<[1], [0], [0], [1], [0, 0, 1, 1], [], []>} : vector<128x16xf32>, vector<16x768xf32>, vector<128x768xf32> -> vector<128x768xf32>
    %c0_4 = arith.constant 0 : index
    %c0_5 = arith.constant 0 : index
    %4 = vector.load %arg4[%c0_4, %c0_5] : memref<1x768xf32, #tpu.memory_space<vmem>>, vector<1x768xf32>
    %5 = vector.broadcast %4 : vector<1x768xf32> to vector<128x768xf32>
    %6 = arith.addf %3, %5 : vector<128x768xf32>
    %7 = vector.shape_cast %6 : vector<128x768xf32> to vector<8x16x768xf32>
    %8 = vector.extract_strided_slice %7 {offsets = [0, 0, 0], sizes = [8, 16, 384], strides = [1, 1, 1]} : vector<8x16x768xf32> to vector<8x16x384xf32>
    %c0_6 = arith.constant 0 : index
    %c0_7 = arith.constant 0 : index
    %c0_8 = arith.constant 0 : index
    %9 = vector.load %arg12[%c0_6, %c0_7, %c0_8] : memref<8x16x384xf32, #tpu.memory_space<vmem>>, vector<8x16x384xf32>
    tpu.vector_store %arg12[%c0_6, %c0_7, %c0_8], %8 {strides = array<i32>} : memref<8x16x384xf32, #tpu.memory_space<vmem>>, vector<8x16x384xf32>,
    %10 = vector.extract_strided_slice %7 {offsets = [0, 0, 384], sizes = [8, 16, 384], strides = [1, 1, 1]} : vector<8x16x768xf32> to vector<8x16x384xf32>
    %c0_9 = arith.constant 0 : index
    %c0_10 = arith.constant 0 : index
    %c0_11 = arith.constant 0 : index
    %11 = vector.load %arg13[%c0_9, %c0_10, %c0_11] : memref<8x16x384xf32, #tpu.memory_space<vmem>>, vector<8x16x384xf32>
    tpu.vector_store %arg13[%c0_9, %c0_10, %c0_11], %10 {strides = array<i32>} : memref<8x16x384xf32, #tpu.memory_space<vmem>>, vector<8x16x384xf32>,
    %c0_12 = arith.constant 0 : index
    %c0_13 = arith.constant 0 : index
    %12 = vector.load %arg5[%c0_12, %c0_13] : memref<256x768xf32, #tpu.memory_space<vmem>>, vector<256x768xf32>
    %c0_14 = arith.constant 0 : index
    %c0_15 = arith.constant 0 : index
    %13 = vector.load %arg6[%c0_14, %c0_15] : memref<1x256xf32, #tpu.memory_space<vmem>>, vector<1x256xf32>
    %cst_16 = arith.constant 0.000000e+00 : f32
    %14 = vector.broadcast %cst_16 : f32 to vector<16x256xf32>
    %cst_17 = arith.constant 0xFF800000 : f32
    %15 = vector.broadcast %cst_17 : f32 to vector<16x256xf32>
    %c0_i32 = arith.constant 0 : i32
    %16 = arith.index_cast %c0_i32 : i32 to index
    %c0_18 = arith.constant 0 : index
    %c0_19 = arith.constant 0 : index
    %17 = vector.load %arg12[%16, %c0_18, %c0_19] : memref<8x16x384xf32, #tpu.memory_space<vmem>>, vector<1x16x384xf32>
    %18 = vector.shape_cast %17 : vector<1x16x384xf32> to vector<16x384xf32>
    %c7_i32 = arith.constant 7 : i32
    %19 = arith.subi %c7_i32, %c0_i32 : i32
    %20 = arith.index_cast %19 : i32 to index
    %c0_20 = arith.constant 0 : index
    %c0_21 = arith.constant 0 : index
    %21 = vector.load %arg13[%20, %c0_20, %c0_21] : memref<8x16x384xf32, #tpu.memory_space<vmem>>, vector<1x16x384xf32>
    %22 = vector.shape_cast %21 : vector<1x16x384xf32> to vector<16x384xf32>
    %cst_22 = arith.constant dense<0.000000e+00> : vector<16x768xf32>
    %23 = tpu.matmul %14, %12, %cst_22 {dimension_numbers = #tpu.dot_dimension_numbers<[1], [0], [0], [1], [0, 0, 1, 1], [], []>} : vector<16x256xf32>, vector<256x768xf32>, vector<16x768xf32> -> vector<16x768xf32>
    %24 = vector.extract_strided_slice %18 {offsets = [0, 0], sizes = [16, 128], strides = [1, 1]} : vector<16x384xf32> to vector<16x128xf32>
    %25 = vector.extract_strided_slice %22 {offsets = [0, 0], sizes = [16, 128], strides = [1, 1]} : vector<16x384xf32> to vector<16x128xf32>
    %26 = tpu.concatenate %24, %25 in 1 : vector<16x128xf32>, vector<16x128xf32> -> vector<16x256xf32>
    %27 = vector.extract_strided_slice %18 {offsets = [0, 128], sizes = [16, 128], strides = [1, 1]} : vector<16x384xf32> to vector<16x128xf32>
    %28 = vector.extract_strided_slice %22 {offsets = [0, 128], sizes = [16, 128], strides = [1, 1]} : vector<16x384xf32> to vector<16x128xf32>
    %29 = tpu.concatenate %27, %28 in 1 : vector<16x128xf32>, vector<16x128xf32> -> vector<16x256xf32>
    %30 = vector.extract_strided_slice %18 {offsets = [0, 256], sizes = [16, 128], strides = [1, 1]} : vector<16x384xf32> to vector<16x128xf32>
    %31 = vector.extract_strided_slice %22 {offsets = [0, 256], sizes = [16, 128], strides = [1, 1]} : vector<16x384xf32> to vector<16x128xf32>
    %32 = tpu.concatenate %30, %31 in 1 : vector<16x128xf32>, vector<16x128xf32> -> vector<16x256xf32>
    %33 = vector.extract_strided_slice %23 {offsets = [0, 0], sizes = [16, 256], strides = [1, 1]} : vector<16x768xf32> to vector<16x256xf32>
    %34 = arith.addf %26, %33 : vector<16x256xf32>
    %35 = arith.negf %34 : vector<16x256xf32>
    %36 = math.exp %35 : vector<16x256xf32>
    %cst_23 = arith.constant 1.000000e+00 : f32
    %37 = vector.broadcast %cst_23 : f32 to vector<16x256xf32>
    %38 = arith.addf %37, %36 : vector<16x256xf32>
    %39 = arith.divf %37, %38 : vector<16x256xf32>
    %40 = vector.extract_strided_slice %23 {offsets = [0, 256], sizes = [16, 256], strides = [1, 1]} : vector<16x768xf32> to vector<16x256xf32>
    %41 = arith.addf %29, %40 : vector<16x256xf32>
    %42 = arith.negf %41 : vector<16x256xf32>
    %43 = math.exp %42 : vector<16x256xf32>
    %cst_24 = arith.constant 1.000000e+00 : f32
    %44 = vector.broadcast %cst_24 : f32 to vector<16x256xf32>
    %45 = arith.addf %44, %43 : vector<16x256xf32>
    %46 = arith.divf %44, %45 : vector<16x256xf32>
    %47 = vector.extract_strided_slice %23 {offsets = [0, 512], sizes = [16, 256], strides = [1, 1]} : vector<16x768xf32> to vector<16x256xf32>
    %48 = vector.broadcast %13 : vector<1x256xf32> to vector<16x256xf32>
    %49 = arith.addf %47, %48 : vector<16x256xf32>
    %50 = arith.mulf %39, %49 : vector<16x256xf32>
    %51 = arith.addf %32, %50 : vector<16x256xf32>
    %52 = math.tanh %51 : vector<16x256xf32>
    %cst_25 = arith.constant 1.000000e+00 : f32
    %53 = vector.broadcast %cst_25 : f32 to vector<16x256xf32>
    %54 = arith.subf %53, %46 : vector<16x256xf32>
    %55 = arith.mulf %54, %52 : vector<16x256xf32>
    %56 = arith.mulf %46, %14 : vector<16x256xf32>
    %57 = arith.addf %55, %56 : vector<16x256xf32>
    %58 = arith.maximumf %15, %57 : vector<16x256xf32>
    %59 = arith.addf %14, %57 : vector<16x256xf32>
    %c1_i32 = arith.constant 1 : i32
    %60 = arith.index_cast %c1_i32 : i32 to index
    %c0_26 = arith.constant 0 : index
    %c0_27 = arith.constant 0 : index
    %61 = vector.load %arg12[%60, %c0_26, %c0_27] : memref<8x16x384xf32, #tpu.memory_space<vmem>>, vector<1x16x384xf32>
    %62 = vector.shape_cast %61 : vector<1x16x384xf32> to vector<16x384xf32>
    %c7_i32_28 = arith.constant 7 : i32
    %63 = arith.subi %c7_i32_28, %c1_i32 : i32
    %64 = arith.index_cast %63 : i32 to index
    %c0_29 = arith.constant 0 : index
    %c0_30 = arith.constant 0 : index
    %65 = vector.load %arg13[%64, %c0_29, %c0_30] : memref<8x16x384xf32, #tpu.memory_space<vmem>>, vector<1x16x384xf32>
    %66 = vector.shape_cast %65 : vector<1x16x384xf32> to vector<16x384xf32>
    %cst_31 = arith.constant dense<0.000000e+00> : vector<16x768xf32>
    %67 = tpu.matmul %57, %12, %cst_31 {dimension_numbers = #tpu.dot_dimension_numbers<[1], [0], [0], [1], [0, 0, 1, 1], [], []>} : vector<16x256xf32>, vector<256x768xf32>, vector<16x768xf32> -> vector<16x768xf32>
    %68 = vector.extract_strided_slice %62 {offsets = [0, 0], sizes = [16, 128], strides = [1, 1]} : vector<16x384xf32> to vector<16x128xf32>
    %69 = vector.extract_strided_slice %66 {offsets = [0, 0], sizes = [16, 128], strides = [1, 1]} : vector<16x384xf32> to vector<16x128xf32>
    %70 = tpu.concatenate %68, %69 in 1 : vector<16x128xf32>, vector<16x128xf32> -> vector<16x256xf32>
    %71 = vector.extract_strided_slice %62 {offsets = [0, 128], sizes = [16, 128], strides = [1, 1]} : vector<16x384xf32> to vector<16x128xf32>
    %72 = vector.extract_strided_slice %66 {offsets = [0, 128], sizes = [16, 128], strides = [1, 1]} : vector<16x384xf32> to vector<16x128xf32>
    %73 = tpu.concatenate %71, %72 in 1 : vector<16x128xf32>, vector<16x128xf32> -> vector<16x256xf32>
    %74 = vector.extract_strided_slice %62 {offsets = [0, 256], sizes = [16, 128], strides = [1, 1]} : vector<16x384xf32> to vector<16x128xf32>
    %75 = vector.extract_strided_slice %66 {offsets = [0, 256], sizes = [16, 128], strides = [1, 1]} : vector<16x384xf32> to vector<16x128xf32>
    %76 = tpu.concatenate %74, %75 in 1 : vector<16x128xf32>, vector<16x128xf32> -> vector<16x256xf32>
    %77 = vector.extract_strided_slice %67 {offsets = [0, 0], sizes = [16, 256], strides = [1, 1]} : vector<16x768xf32> to vector<16x256xf32>
    %78 = arith.addf %70, %77 : vector<16x256xf32>
    %79 = arith.negf %78 : vector<16x256xf32>
    %80 = math.exp %79 : vector<16x256xf32>
    %cst_32 = arith.constant 1.000000e+00 : f32
    %81 = vector.broadcast %cst_32 : f32 to vector<16x256xf32>
    %82 = arith.addf %81, %80 : vector<16x256xf32>
    %83 = arith.divf %81, %82 : vector<16x256xf32>
    %84 = vector.extract_strided_slice %67 {offsets = [0, 256], sizes = [16, 256], strides = [1, 1]} : vector<16x768xf32> to vector<16x256xf32>
    %85 = arith.addf %73, %84 : vector<16x256xf32>
    %86 = arith.negf %85 : vector<16x256xf32>
    %87 = math.exp %86 : vector<16x256xf32>
    %cst_33 = arith.constant 1.000000e+00 : f32
    %88 = vector.broadcast %cst_33 : f32 to vector<16x256xf32>
    %89 = arith.addf %88, %87 : vector<16x256xf32>
    %90 = arith.divf %88, %89 : vector<16x256xf32>
    %91 = vector.extract_strided_slice %67 {offsets = [0, 512], sizes = [16, 256], strides = [1, 1]} : vector<16x768xf32> to vector<16x256xf32>
    %92 = vector.broadcast %13 : vector<1x256xf32> to vector<16x256xf32>
    %93 = arith.addf %91, %92 : vector<16x256xf32>
    %94 = arith.mulf %83, %93 : vector<16x256xf32>
    %95 = arith.addf %76, %94 : vector<16x256xf32>
    %96 = math.tanh %95 : vector<16x256xf32>
    %cst_34 = arith.constant 1.000000e+00 : f32
    %97 = vector.broadcast %cst_34 : f32 to vector<16x256xf32>
    %98 = arith.subf %97, %90 : vector<16x256xf32>
    %99 = arith.mulf %98, %96 : vector<16x256xf32>
    %100 = arith.mulf %90, %57 : vector<16x256xf32>
    %101 = arith.addf %99, %100 : vector<16x256xf32>
    %102 = arith.maximumf %58, %101 : vector<16x256xf32>
    %103 = arith.addf %59, %101 : vector<16x256xf32>
    %c2_i32 = arith.constant 2 : i32
    %104 = arith.index_cast %c2_i32 : i32 to index
    %c0_35 = arith.constant 0 : index
    %c0_36 = arith.constant 0 : index
    %105 = vector.load %arg12[%104, %c0_35, %c0_36] : memref<8x16x384xf32, #tpu.memory_space<vmem>>, vector<1x16x384xf32>
    %106 = vector.shape_cast %105 : vector<1x16x384xf32> to vector<16x384xf32>
    %c7_i32_37 = arith.constant 7 : i32
    %107 = arith.subi %c7_i32_37, %c2_i32 : i32
    %108 = arith.index_cast %107 : i32 to index
    %c0_38 = arith.constant 0 : index
    %c0_39 = arith.constant 0 : index
    %109 = vector.load %arg13[%108, %c0_38, %c0_39] : memref<8x16x384xf32, #tpu.memory_space<vmem>>, vector<1x16x384xf32>
    %110 = vector.shape_cast %109 : vector<1x16x384xf32> to vector<16x384xf32>
    %cst_40 = arith.constant dense<0.000000e+00> : vector<16x768xf32>
    %111 = tpu.matmul %101, %12, %cst_40 {dimension_numbers = #tpu.dot_dimension_numbers<[1], [0], [0], [1], [0, 0, 1, 1], [], []>} : vector<16x256xf32>, vector<256x768xf32>, vector<16x768xf32> -> vector<16x768xf32>
    %112 = vector.extract_strided_slice %106 {offsets = [0, 0], sizes = [16, 128], strides = [1, 1]} : vector<16x384xf32> to vector<16x128xf32>
    %113 = vector.extract_strided_slice %110 {offsets = [0, 0], sizes = [16, 128], strides = [1, 1]} : vector<16x384xf32> to vector<16x128xf32>
    %114 = tpu.concatenate %112, %113 in 1 : vector<16x128xf32>, vector<16x128xf32> -> vector<16x256xf32>
    %115 = vector.extract_strided_slice %106 {offsets = [0, 128], sizes = [16, 128], strides = [1, 1]} : vector<16x384xf32> to vector<16x128xf32>
    %116 = vector.extract_strided_slice %110 {offsets = [0, 128], sizes = [16, 128], strides = [1, 1]} : vector<16x384xf32> to vector<16x128xf32>
    %117 = tpu.concatenate %115, %116 in 1 : vector<16x128xf32>, vector<16x128xf32> -> vector<16x256xf32>
    %118 = vector.extract_strided_slice %106 {offsets = [0, 256], sizes = [16, 128], strides = [1, 1]} : vector<16x384xf32> to vector<16x128xf32>
    %119 = vector.extract_strided_slice %110 {offsets = [0, 256], sizes = [16, 128], strides = [1, 1]} : vector<16x384xf32> to vector<16x128xf32>
    %120 = tpu.concatenate %118, %119 in 1 : vector<16x128xf32>, vector<16x128xf32> -> vector<16x256xf32>
    %121 = vector.extract_strided_slice %111 {offsets = [0, 0], sizes = [16, 256], strides = [1, 1]} : vector<16x768xf32> to vector<16x256xf32>
    %122 = arith.addf %114, %121 : vector<16x256xf32>
    %123 = arith.negf %122 : vector<16x256xf32>
    %124 = math.exp %123 : vector<16x256xf32>
    %cst_41 = arith.constant 1.000000e+00 : f32
    %125 = vector.broadcast %cst_41 : f32 to vector<16x256xf32>
    %126 = arith.addf %125, %124 : vector<16x256xf32>
    %127 = arith.divf %125, %126 : vector<16x256xf32>
    %128 = vector.extract_strided_slice %111 {offsets = [0, 256], sizes = [16, 256], strides = [1, 1]} : vector<16x768xf32> to vector<16x256xf32>
    %129 = arith.addf %117, %128 : vector<16x256xf32>
    %130 = arith.negf %129 : vector<16x256xf32>
    %131 = math.exp %130 : vector<16x256xf32>
    %cst_42 = arith.constant 1.000000e+00 : f32
    %132 = vector.broadcast %cst_42 : f32 to vector<16x256xf32>
    %133 = arith.addf %132, %131 : vector<16x256xf32>
    %134 = arith.divf %132, %133 : vector<16x256xf32>
    %135 = vector.extract_strided_slice %111 {offsets = [0, 512], sizes = [16, 256], strides = [1, 1]} : vector<16x768xf32> to vector<16x256xf32>
    %136 = vector.broadcast %13 : vector<1x256xf32> to vector<16x256xf32>
    %137 = arith.addf %135, %136 : vector<16x256xf32>
    %138 = arith.mulf %127, %137 : vector<16x256xf32>
    %139 = arith.addf %120, %138 : vector<16x256xf32>
    %140 = math.tanh %139 : vector<16x256xf32>
    %cst_43 = arith.constant 1.000000e+00 : f32
    %141 = vector.broadcast %cst_43 : f32 to vector<16x256xf32>
    %142 = arith.subf %141, %134 : vector<16x256xf32>
    %143 = arith.mulf %142, %140 : vector<16x256xf32>
    %144 = arith.mulf %134, %101 : vector<16x256xf32>
    %145 = arith.addf %143, %144 : vector<16x256xf32>
    %146 = arith.maximumf %102, %145 : vector<16x256xf32>
    %147 = arith.addf %103, %145 : vector<16x256xf32>
    %c3_i32 = arith.constant 3 : i32
    %148 = arith.index_cast %c3_i32 : i32 to index
    %c0_44 = arith.constant 0 : index
    %c0_45 = arith.constant 0 : index
    %149 = vector.load %arg12[%148, %c0_44, %c0_45] : memref<8x16x384xf32, #tpu.memory_space<vmem>>, vector<1x16x384xf32>
    %150 = vector.shape_cast %149 : vector<1x16x384xf32> to vector<16x384xf32>
    %c7_i32_46 = arith.constant 7 : i32
    %151 = arith.subi %c7_i32_46, %c3_i32 : i32
    %152 = arith.index_cast %151 : i32 to index
    %c0_47 = arith.constant 0 : index
    %c0_48 = arith.constant 0 : index
    %153 = vector.load %arg13[%152, %c0_47, %c0_48] : memref<8x16x384xf32, #tpu.memory_space<vmem>>, vector<1x16x384xf32>
    %154 = vector.shape_cast %153 : vector<1x16x384xf32> to vector<16x384xf32>
    %cst_49 = arith.constant dense<0.000000e+00> : vector<16x768xf32>
    %155 = tpu.matmul %145, %12, %cst_49 {dimension_numbers = #tpu.dot_dimension_numbers<[1], [0], [0], [1], [0, 0, 1, 1], [], []>} : vector<16x256xf32>, vector<256x768xf32>, vector<16x768xf32> -> vector<16x768xf32>
    %156 = vector.extract_strided_slice %150 {offsets = [0, 0], sizes = [16, 128], strides = [1, 1]} : vector<16x384xf32> to vector<16x128xf32>
    %157 = vector.extract_strided_slice %154 {offsets = [0, 0], sizes = [16, 128], strides = [1, 1]} : vector<16x384xf32> to vector<16x128xf32>
    %158 = tpu.concatenate %156, %157 in 1 : vector<16x128xf32>, vector<16x128xf32> -> vector<16x256xf32>
    %159 = vector.extract_strided_slice %150 {offsets = [0, 128], sizes = [16, 128], strides = [1, 1]} : vector<16x384xf32> to vector<16x128xf32>
    %160 = vector.extract_strided_slice %154 {offsets = [0, 128], sizes = [16, 128], strides = [1, 1]} : vector<16x384xf32> to vector<16x128xf32>
    %161 = tpu.concatenate %159, %160 in 1 : vector<16x128xf32>, vector<16x128xf32> -> vector<16x256xf32>
    %162 = vector.extract_strided_slice %150 {offsets = [0, 256], sizes = [16, 128], strides = [1, 1]} : vector<16x384xf32> to vector<16x128xf32>
    %163 = vector.extract_strided_slice %154 {offsets = [0, 256], sizes = [16, 128], strides = [1, 1]} : vector<16x384xf32> to vector<16x128xf32>
    %164 = tpu.concatenate %162, %163 in 1 : vector<16x128xf32>, vector<16x128xf32> -> vector<16x256xf32>
    %165 = vector.extract_strided_slice %155 {offsets = [0, 0], sizes = [16, 256], strides = [1, 1]} : vector<16x768xf32> to vector<16x256xf32>
    %166 = arith.addf %158, %165 : vector<16x256xf32>
    %167 = arith.negf %166 : vector<16x256xf32>
    %168 = math.exp %167 : vector<16x256xf32>
    %cst_50 = arith.constant 1.000000e+00 : f32
    %169 = vector.broadcast %cst_50 : f32 to vector<16x256xf32>
    %170 = arith.addf %169, %168 : vector<16x256xf32>
    %171 = arith.divf %169, %170 : vector<16x256xf32>
    %172 = vector.extract_strided_slice %155 {offsets = [0, 256], sizes = [16, 256], strides = [1, 1]} : vector<16x768xf32> to vector<16x256xf32>
    %173 = arith.addf %161, %172 : vector<16x256xf32>
    %174 = arith.negf %173 : vector<16x256xf32>
    %175 = math.exp %174 : vector<16x256xf32>
    %cst_51 = arith.constant 1.000000e+00 : f32
    %176 = vector.broadcast %cst_51 : f32 to vector<16x256xf32>
    %177 = arith.addf %176, %175 : vector<16x256xf32>
    %178 = arith.divf %176, %177 : vector<16x256xf32>
    %179 = vector.extract_strided_slice %155 {offsets = [0, 512], sizes = [16, 256], strides = [1, 1]} : vector<16x768xf32> to vector<16x256xf32>
    %180 = vector.broadcast %13 : vector<1x256xf32> to vector<16x256xf32>
    %181 = arith.addf %179, %180 : vector<16x256xf32>
    %182 = arith.mulf %171, %181 : vector<16x256xf32>
    %183 = arith.addf %164, %182 : vector<16x256xf32>
    %184 = math.tanh %183 : vector<16x256xf32>
    %cst_52 = arith.constant 1.000000e+00 : f32
    %185 = vector.broadcast %cst_52 : f32 to vector<16x256xf32>
    %186 = arith.subf %185, %178 : vector<16x256xf32>
    %187 = arith.mulf %186, %184 : vector<16x256xf32>
    %188 = arith.mulf %178, %145 : vector<16x256xf32>
    %189 = arith.addf %187, %188 : vector<16x256xf32>
    %190 = arith.maximumf %146, %189 : vector<16x256xf32>
    %191 = arith.addf %147, %189 : vector<16x256xf32>
    %c4_i32 = arith.constant 4 : i32
    %192 = arith.index_cast %c4_i32 : i32 to index
    %c0_53 = arith.constant 0 : index
    %c0_54 = arith.constant 0 : index
    %193 = vector.load %arg12[%192, %c0_53, %c0_54] : memref<8x16x384xf32, #tpu.memory_space<vmem>>, vector<1x16x384xf32>
    %194 = vector.shape_cast %193 : vector<1x16x384xf32> to vector<16x384xf32>
    %c7_i32_55 = arith.constant 7 : i32
    %195 = arith.subi %c7_i32_55, %c4_i32 : i32
    %196 = arith.index_cast %195 : i32 to index
    %c0_56 = arith.constant 0 : index
    %c0_57 = arith.constant 0 : index
    %197 = vector.load %arg13[%196, %c0_56, %c0_57] : memref<8x16x384xf32, #tpu.memory_space<vmem>>, vector<1x16x384xf32>
    %198 = vector.shape_cast %197 : vector<1x16x384xf32> to vector<16x384xf32>
    %cst_58 = arith.constant dense<0.000000e+00> : vector<16x768xf32>
    %199 = tpu.matmul %189, %12, %cst_58 {dimension_numbers = #tpu.dot_dimension_numbers<[1], [0], [0], [1], [0, 0, 1, 1], [], []>} : vector<16x256xf32>, vector<256x768xf32>, vector<16x768xf32> -> vector<16x768xf32>
    %200 = vector.extract_strided_slice %194 {offsets = [0, 0], sizes = [16, 128], strides = [1, 1]} : vector<16x384xf32> to vector<16x128xf32>
    %201 = vector.extract_strided_slice %198 {offsets = [0, 0], sizes = [16, 128], strides = [1, 1]} : vector<16x384xf32> to vector<16x128xf32>
    %202 = tpu.concatenate %200, %201 in 1 : vector<16x128xf32>, vector<16x128xf32> -> vector<16x256xf32>
    %203 = vector.extract_strided_slice %194 {offsets = [0, 128], sizes = [16, 128], strides = [1, 1]} : vector<16x384xf32> to vector<16x128xf32>
    %204 = vector.extract_strided_slice %198 {offsets = [0, 128], sizes = [16, 128], strides = [1, 1]} : vector<16x384xf32> to vector<16x128xf32>
    %205 = tpu.concatenate %203, %204 in 1 : vector<16x128xf32>, vector<16x128xf32> -> vector<16x256xf32>
    %206 = vector.extract_strided_slice %194 {offsets = [0, 256], sizes = [16, 128], strides = [1, 1]} : vector<16x384xf32> to vector<16x128xf32>
    %207 = vector.extract_strided_slice %198 {offsets = [0, 256], sizes = [16, 128], strides = [1, 1]} : vector<16x384xf32> to vector<16x128xf32>
    %208 = tpu.concatenate %206, %207 in 1 : vector<16x128xf32>, vector<16x128xf32> -> vector<16x256xf32>
    %209 = vector.extract_strided_slice %199 {offsets = [0, 0], sizes = [16, 256], strides = [1, 1]} : vector<16x768xf32> to vector<16x256xf32>
    %210 = arith.addf %202, %209 : vector<16x256xf32>
    %211 = arith.negf %210 : vector<16x256xf32>
    %212 = math.exp %211 : vector<16x256xf32>
    %cst_59 = arith.constant 1.000000e+00 : f32
    %213 = vector.broadcast %cst_59 : f32 to vector<16x256xf32>
    %214 = arith.addf %213, %212 : vector<16x256xf32>
    %215 = arith.divf %213, %214 : vector<16x256xf32>
    %216 = vector.extract_strided_slice %199 {offsets = [0, 256], sizes = [16, 256], strides = [1, 1]} : vector<16x768xf32> to vector<16x256xf32>
    %217 = arith.addf %205, %216 : vector<16x256xf32>
    %218 = arith.negf %217 : vector<16x256xf32>
    %219 = math.exp %218 : vector<16x256xf32>
    %cst_60 = arith.constant 1.000000e+00 : f32
    %220 = vector.broadcast %cst_60 : f32 to vector<16x256xf32>
    %221 = arith.addf %220, %219 : vector<16x256xf32>
    %222 = arith.divf %220, %221 : vector<16x256xf32>
    %223 = vector.extract_strided_slice %199 {offsets = [0, 512], sizes = [16, 256], strides = [1, 1]} : vector<16x768xf32> to vector<16x256xf32>
    %224 = vector.broadcast %13 : vector<1x256xf32> to vector<16x256xf32>
    %225 = arith.addf %223, %224 : vector<16x256xf32>
    %226 = arith.mulf %215, %225 : vector<16x256xf32>
    %227 = arith.addf %208, %226 : vector<16x256xf32>
    %228 = math.tanh %227 : vector<16x256xf32>
    %cst_61 = arith.constant 1.000000e+00 : f32
    %229 = vector.broadcast %cst_61 : f32 to vector<16x256xf32>
    %230 = arith.subf %229, %222 : vector<16x256xf32>
    %231 = arith.mulf %230, %228 : vector<16x256xf32>
    %232 = arith.mulf %222, %189 : vector<16x256xf32>
    %233 = arith.addf %231, %232 : vector<16x256xf32>
    %234 = arith.maximumf %190, %233 : vector<16x256xf32>
    %235 = arith.addf %191, %233 : vector<16x256xf32>
    %c5_i32 = arith.constant 5 : i32
    %236 = arith.index_cast %c5_i32 : i32 to index
    %c0_62 = arith.constant 0 : index
    %c0_63 = arith.constant 0 : index
    %237 = vector.load %arg12[%236, %c0_62, %c0_63] : memref<8x16x384xf32, #tpu.memory_space<vmem>>, vector<1x16x384xf32>
    %238 = vector.shape_cast %237 : vector<1x16x384xf32> to vector<16x384xf32>
    %c7_i32_64 = arith.constant 7 : i32
    %239 = arith.subi %c7_i32_64, %c5_i32 : i32
    %240 = arith.index_cast %239 : i32 to index
    %c0_65 = arith.constant 0 : index
    %c0_66 = arith.constant 0 : index
    %241 = vector.load %arg13[%240, %c0_65, %c0_66] : memref<8x16x384xf32, #tpu.memory_space<vmem>>, vector<1x16x384xf32>
    %242 = vector.shape_cast %241 : vector<1x16x384xf32> to vector<16x384xf32>
    %cst_67 = arith.constant dense<0.000000e+00> : vector<16x768xf32>
    %243 = tpu.matmul %233, %12, %cst_67 {dimension_numbers = #tpu.dot_dimension_numbers<[1], [0], [0], [1], [0, 0, 1, 1], [], []>} : vector<16x256xf32>, vector<256x768xf32>, vector<16x768xf32> -> vector<16x768xf32>
    %244 = vector.extract_strided_slice %238 {offsets = [0, 0], sizes = [16, 128], strides = [1, 1]} : vector<16x384xf32> to vector<16x128xf32>
    %245 = vector.extract_strided_slice %242 {offsets = [0, 0], sizes = [16, 128], strides = [1, 1]} : vector<16x384xf32> to vector<16x128xf32>
    %246 = tpu.concatenate %244, %245 in 1 : vector<16x128xf32>, vector<16x128xf32> -> vector<16x256xf32>
    %247 = vector.extract_strided_slice %238 {offsets = [0, 128], sizes = [16, 128], strides = [1, 1]} : vector<16x384xf32> to vector<16x128xf32>
    %248 = vector.extract_strided_slice %242 {offsets = [0, 128], sizes = [16, 128], strides = [1, 1]} : vector<16x384xf32> to vector<16x128xf32>
    %249 = tpu.concatenate %247, %248 in 1 : vector<16x128xf32>, vector<16x128xf32> -> vector<16x256xf32>
    %250 = vector.extract_strided_slice %238 {offsets = [0, 256], sizes = [16, 128], strides = [1, 1]} : vector<16x384xf32> to vector<16x128xf32>
    %251 = vector.extract_strided_slice %242 {offsets = [0, 256], sizes = [16, 128], strides = [1, 1]} : vector<16x384xf32> to vector<16x128xf32>
    %252 = tpu.concatenate %250, %251 in 1 : vector<16x128xf32>, vector<16x128xf32> -> vector<16x256xf32>
    %253 = vector.extract_strided_slice %243 {offsets = [0, 0], sizes = [16, 256], strides = [1, 1]} : vector<16x768xf32> to vector<16x256xf32>
    %254 = arith.addf %246, %253 : vector<16x256xf32>
    %255 = arith.negf %254 : vector<16x256xf32>
    %256 = math.exp %255 : vector<16x256xf32>
    %cst_68 = arith.constant 1.000000e+00 : f32
    %257 = vector.broadcast %cst_68 : f32 to vector<16x256xf32>
    %258 = arith.addf %257, %256 : vector<16x256xf32>
    %259 = arith.divf %257, %258 : vector<16x256xf32>
    %260 = vector.extract_strided_slice %243 {offsets = [0, 256], sizes = [16, 256], strides = [1, 1]} : vector<16x768xf32> to vector<16x256xf32>
    %261 = arith.addf %249, %260 : vector<16x256xf32>
    %262 = arith.negf %261 : vector<16x256xf32>
    %263 = math.exp %262 : vector<16x256xf32>
    %cst_69 = arith.constant 1.000000e+00 : f32
    %264 = vector.broadcast %cst_69 : f32 to vector<16x256xf32>
    %265 = arith.addf %264, %263 : vector<16x256xf32>
    %266 = arith.divf %264, %265 : vector<16x256xf32>
    %267 = vector.extract_strided_slice %243 {offsets = [0, 512], sizes = [16, 256], strides = [1, 1]} : vector<16x768xf32> to vector<16x256xf32>
    %268 = vector.broadcast %13 : vector<1x256xf32> to vector<16x256xf32>
    %269 = arith.addf %267, %268 : vector<16x256xf32>
    %270 = arith.mulf %259, %269 : vector<16x256xf32>
    %271 = arith.addf %252, %270 : vector<16x256xf32>
    %272 = math.tanh %271 : vector<16x256xf32>
    %cst_70 = arith.constant 1.000000e+00 : f32
    %273 = vector.broadcast %cst_70 : f32 to vector<16x256xf32>
    %274 = arith.subf %273, %266 : vector<16x256xf32>
    %275 = arith.mulf %274, %272 : vector<16x256xf32>
    %276 = arith.mulf %266, %233 : vector<16x256xf32>
    %277 = arith.addf %275, %276 : vector<16x256xf32>
    %278 = arith.maximumf %234, %277 : vector<16x256xf32>
    %279 = arith.addf %235, %277 : vector<16x256xf32>
    %c6_i32 = arith.constant 6 : i32
    %280 = arith.index_cast %c6_i32 : i32 to index
    %c0_71 = arith.constant 0 : index
    %c0_72 = arith.constant 0 : index
    %281 = vector.load %arg12[%280, %c0_71, %c0_72] : memref<8x16x384xf32, #tpu.memory_space<vmem>>, vector<1x16x384xf32>
    %282 = vector.shape_cast %281 : vector<1x16x384xf32> to vector<16x384xf32>
    %c7_i32_73 = arith.constant 7 : i32
    %283 = arith.subi %c7_i32_73, %c6_i32 : i32
    %284 = arith.index_cast %283 : i32 to index
    %c0_74 = arith.constant 0 : index
    %c0_75 = arith.constant 0 : index
    %285 = vector.load %arg13[%284, %c0_74, %c0_75] : memref<8x16x384xf32, #tpu.memory_space<vmem>>, vector<1x16x384xf32>
    %286 = vector.shape_cast %285 : vector<1x16x384xf32> to vector<16x384xf32>
    %cst_76 = arith.constant dense<0.000000e+00> : vector<16x768xf32>
    %287 = tpu.matmul %277, %12, %cst_76 {dimension_numbers = #tpu.dot_dimension_numbers<[1], [0], [0], [1], [0, 0, 1, 1], [], []>} : vector<16x256xf32>, vector<256x768xf32>, vector<16x768xf32> -> vector<16x768xf32>
    %288 = vector.extract_strided_slice %282 {offsets = [0, 0], sizes = [16, 128], strides = [1, 1]} : vector<16x384xf32> to vector<16x128xf32>
    %289 = vector.extract_strided_slice %286 {offsets = [0, 0], sizes = [16, 128], strides = [1, 1]} : vector<16x384xf32> to vector<16x128xf32>
    %290 = tpu.concatenate %288, %289 in 1 : vector<16x128xf32>, vector<16x128xf32> -> vector<16x256xf32>
    %291 = vector.extract_strided_slice %282 {offsets = [0, 128], sizes = [16, 128], strides = [1, 1]} : vector<16x384xf32> to vector<16x128xf32>
    %292 = vector.extract_strided_slice %286 {offsets = [0, 128], sizes = [16, 128], strides = [1, 1]} : vector<16x384xf32> to vector<16x128xf32>
    %293 = tpu.concatenate %291, %292 in 1 : vector<16x128xf32>, vector<16x128xf32> -> vector<16x256xf32>
    %294 = vector.extract_strided_slice %282 {offsets = [0, 256], sizes = [16, 128], strides = [1, 1]} : vector<16x384xf32> to vector<16x128xf32>
    %295 = vector.extract_strided_slice %286 {offsets = [0, 256], sizes = [16, 128], strides = [1, 1]} : vector<16x384xf32> to vector<16x128xf32>
    %296 = tpu.concatenate %294, %295 in 1 : vector<16x128xf32>, vector<16x128xf32> -> vector<16x256xf32>
    %297 = vector.extract_strided_slice %287 {offsets = [0, 0], sizes = [16, 256], strides = [1, 1]} : vector<16x768xf32> to vector<16x256xf32>
    %298 = arith.addf %290, %297 : vector<16x256xf32>
    %299 = arith.negf %298 : vector<16x256xf32>
    %300 = math.exp %299 : vector<16x256xf32>
    %cst_77 = arith.constant 1.000000e+00 : f32
    %301 = vector.broadcast %cst_77 : f32 to vector<16x256xf32>
    %302 = arith.addf %301, %300 : vector<16x256xf32>
    %303 = arith.divf %301, %302 : vector<16x256xf32>
    %304 = vector.extract_strided_slice %287 {offsets = [0, 256], sizes = [16, 256], strides = [1, 1]} : vector<16x768xf32> to vector<16x256xf32>
    %305 = arith.addf %293, %304 : vector<16x256xf32>
    %306 = arith.negf %305 : vector<16x256xf32>
    %307 = math.exp %306 : vector<16x256xf32>
    %cst_78 = arith.constant 1.000000e+00 : f32
    %308 = vector.broadcast %cst_78 : f32 to vector<16x256xf32>
    %309 = arith.addf %308, %307 : vector<16x256xf32>
    %310 = arith.divf %308, %309 : vector<16x256xf32>
    %311 = vector.extract_strided_slice %287 {offsets = [0, 512], sizes = [16, 256], strides = [1, 1]} : vector<16x768xf32> to vector<16x256xf32>
    %312 = vector.broadcast %13 : vector<1x256xf32> to vector<16x256xf32>
    %313 = arith.addf %311, %312 : vector<16x256xf32>
    %314 = arith.mulf %303, %313 : vector<16x256xf32>
    %315 = arith.addf %296, %314 : vector<16x256xf32>
    %316 = math.tanh %315 : vector<16x256xf32>
    %cst_79 = arith.constant 1.000000e+00 : f32
    %317 = vector.broadcast %cst_79 : f32 to vector<16x256xf32>
    %318 = arith.subf %317, %310 : vector<16x256xf32>
    %319 = arith.mulf %318, %316 : vector<16x256xf32>
    %320 = arith.mulf %310, %277 : vector<16x256xf32>
    %321 = arith.addf %319, %320 : vector<16x256xf32>
    %322 = arith.maximumf %278, %321 : vector<16x256xf32>
    %323 = arith.addf %279, %321 : vector<16x256xf32>
    %c7_i32_80 = arith.constant 7 : i32
    %324 = arith.index_cast %c7_i32_80 : i32 to index
    %c0_81 = arith.constant 0 : index
    %c0_82 = arith.constant 0 : index
    %325 = vector.load %arg12[%324, %c0_81, %c0_82] : memref<8x16x384xf32, #tpu.memory_space<vmem>>, vector<1x16x384xf32>
    %326 = vector.shape_cast %325 : vector<1x16x384xf32> to vector<16x384xf32>
    %c7_i32_83 = arith.constant 7 : i32
    %327 = arith.subi %c7_i32_83, %c7_i32_80 : i32
    %328 = arith.index_cast %327 : i32 to index
    %c0_84 = arith.constant 0 : index
    %c0_85 = arith.constant 0 : index
    %329 = vector.load %arg13[%328, %c0_84, %c0_85] : memref<8x16x384xf32, #tpu.memory_space<vmem>>, vector<1x16x384xf32>
    %330 = vector.shape_cast %329 : vector<1x16x384xf32> to vector<16x384xf32>
    %cst_86 = arith.constant dense<0.000000e+00> : vector<16x768xf32>
    %331 = tpu.matmul %321, %12, %cst_86 {dimension_numbers = #tpu.dot_dimension_numbers<[1], [0], [0], [1], [0, 0, 1, 1], [], []>} : vector<16x256xf32>, vector<256x768xf32>, vector<16x768xf32> -> vector<16x768xf32>
    %332 = vector.extract_strided_slice %326 {offsets = [0, 0], sizes = [16, 128], strides = [1, 1]} : vector<16x384xf32> to vector<16x128xf32>
    %333 = vector.extract_strided_slice %330 {offsets = [0, 0], sizes = [16, 128], strides = [1, 1]} : vector<16x384xf32> to vector<16x128xf32>
    %334 = tpu.concatenate %332, %333 in 1 : vector<16x128xf32>, vector<16x128xf32> -> vector<16x256xf32>
    %335 = vector.extract_strided_slice %326 {offsets = [0, 128], sizes = [16, 128], strides = [1, 1]} : vector<16x384xf32> to vector<16x128xf32>
    %336 = vector.extract_strided_slice %330 {offsets = [0, 128], sizes = [16, 128], strides = [1, 1]} : vector<16x384xf32> to vector<16x128xf32>
    %337 = tpu.concatenate %335, %336 in 1 : vector<16x128xf32>, vector<16x128xf32> -> vector<16x256xf32>
    %338 = vector.extract_strided_slice %326 {offsets = [0, 256], sizes = [16, 128], strides = [1, 1]} : vector<16x384xf32> to vector<16x128xf32>
    %339 = vector.extract_strided_slice %330 {offsets = [0, 256], sizes = [16, 128], strides = [1, 1]} : vector<16x384xf32> to vector<16x128xf32>
    %340 = tpu.concatenate %338, %339 in 1 : vector<16x128xf32>, vector<16x128xf32> -> vector<16x256xf32>
    %341 = vector.extract_strided_slice %331 {offsets = [0, 0], sizes = [16, 256], strides = [1, 1]} : vector<16x768xf32> to vector<16x256xf32>
    %342 = arith.addf %334, %341 : vector<16x256xf32>
    %343 = arith.negf %342 : vector<16x256xf32>
    %344 = math.exp %343 : vector<16x256xf32>
    %cst_87 = arith.constant 1.000000e+00 : f32
    %345 = vector.broadcast %cst_87 : f32 to vector<16x256xf32>
    %346 = arith.addf %345, %344 : vector<16x256xf32>
    %347 = arith.divf %345, %346 : vector<16x256xf32>
    %348 = vector.extract_strided_slice %331 {offsets = [0, 256], sizes = [16, 256], strides = [1, 1]} : vector<16x768xf32> to vector<16x256xf32>
    %349 = arith.addf %337, %348 : vector<16x256xf32>
    %350 = arith.negf %349 : vector<16x256xf32>
    %351 = math.exp %350 : vector<16x256xf32>
    %cst_88 = arith.constant 1.000000e+00 : f32
    %352 = vector.broadcast %cst_88 : f32 to vector<16x256xf32>
    %353 = arith.addf %352, %351 : vector<16x256xf32>
    %354 = arith.divf %352, %353 : vector<16x256xf32>
    %355 = vector.extract_strided_slice %331 {offsets = [0, 512], sizes = [16, 256], strides = [1, 1]} : vector<16x768xf32> to vector<16x256xf32>
    %356 = vector.broadcast %13 : vector<1x256xf32> to vector<16x256xf32>
    %357 = arith.addf %355, %356 : vector<16x256xf32>
    %358 = arith.mulf %347, %357 : vector<16x256xf32>
    %359 = arith.addf %340, %358 : vector<16x256xf32>
    %360 = math.tanh %359 : vector<16x256xf32>
    %cst_89 = arith.constant 1.000000e+00 : f32
    %361 = vector.broadcast %cst_89 : f32 to vector<16x256xf32>
    %362 = arith.subf %361, %354 : vector<16x256xf32>
    %363 = arith.mulf %362, %360 : vector<16x256xf32>
    %364 = arith.mulf %354, %321 : vector<16x256xf32>
    %365 = arith.addf %363, %364 : vector<16x256xf32>
    %366 = arith.maximumf %322, %365 : vector<16x256xf32>
    %367 = arith.addf %323, %365 : vector<16x256xf32>
    %c8_i32 = arith.constant 8 : i32
    %cst_90 = arith.constant 1.250000e-01 : f32
    %368 = vector.broadcast %cst_90 : f32 to vector<16x256xf32>
    %369 = arith.mulf %367, %368 : vector<16x256xf32>
    %c0_91 = arith.constant 0 : index
    %c0_92 = arith.constant 0 : index
    %370 = vector.load %arg2[%c0_91, %c0_92] : memref<16x128xf32, #tpu.memory_space<vmem>>, vector<16x128xf32>
    %371 = tpu.concatenate %366, %369, %370 in 1 : vector<16x256xf32>, vector<16x256xf32>, vector<16x128xf32> -> vector<16x640xf32>
    %c0_93 = arith.constant 0 : index
    %c0_94 = arith.constant 0 : index
    %372 = vector.load %arg7[%c0_93, %c0_94] : memref<640x32xf32, #tpu.memory_space<vmem>>, vector<640x32xf32>
    %cst_95 = arith.constant dense<0.000000e+00> : vector<16x32xf32>
    %373 = tpu.matmul %371, %372, %cst_95 {dimension_numbers = #tpu.dot_dimension_numbers<[1], [0], [0], [1], [0, 0, 1, 1], [], []>} : vector<16x640xf32>, vector<640x32xf32>, vector<16x32xf32> -> vector<16x32xf32>
    %c0_96 = arith.constant 0 : index
    %c0_97 = arith.constant 0 : index
    %374 = vector.load %arg8[%c0_96, %c0_97] : memref<1x32xf32, #tpu.memory_space<vmem>>, vector<1x32xf32>
    %375 = vector.broadcast %374 : vector<1x32xf32> to vector<16x32xf32>
    %376 = arith.addf %373, %375 : vector<16x32xf32>
    %cst_98 = arith.constant 0.000000e+00 : f32
    %377 = vector.broadcast %cst_98 : f32 to vector<16x32xf32>
    %378 = arith.maximumf %376, %377 : vector<16x32xf32>
    %c0_99 = arith.constant 0 : index
    %c0_100 = arith.constant 0 : index
    %379 = vector.load %arg9[%c0_99, %c0_100] : memref<32x1xf32, #tpu.memory_space<vmem>>, vector<32x1xf32>
    %cst_101 = arith.constant dense<0.000000e+00> : vector<16x1xf32>
    %380 = tpu.matmul %378, %379, %cst_101 {dimension_numbers = #tpu.dot_dimension_numbers<[1], [0], [0], [1], [0, 0, 1, 1], [], []>} : vector<16x32xf32>, vector<32x1xf32>, vector<16x1xf32> -> vector<16x1xf32>
    %c0_102 = arith.constant 0 : index
    %c0_103 = arith.constant 0 : index
    %381 = vector.load %arg10[%c0_102, %c0_103] : memref<1x1xf32, #tpu.memory_space<vmem>>, vector<1x1xf32>
    %382 = vector.broadcast %381 : vector<1x1xf32> to vector<16x1xf32>
    %383 = arith.addf %380, %382 : vector<16x1xf32>
    %c0_104 = arith.constant 0 : index
    %c0_105 = arith.constant 0 : index
    %384 = vector.load %arg11[%c0_104, %c0_105] : memref<16x1xf32, #tpu.memory_space<vmem>>, vector<16x1xf32>
    tpu.vector_store %arg11[%c0_104, %c0_105], %383 {strides = array<i32>} : memref<16x1xf32, #tpu.memory_space<vmem>>, vector<16x1xf32>,
    return
  }
  func.func @transform_0(%arg0: i32) -> (i32, i32, i32) {
    %c0_i32 = arith.constant 0 : i32
    %c0_i32_0 = arith.constant 0 : i32
    %c0_i32_1 = arith.constant 0 : i32
    return %c0_i32, %arg0, %c0_i32_0 : i32, i32, i32
  }
  func.func @transform_1(%arg0: i32) -> (i32, i32) {
    %c0_i32 = arith.constant 0 : i32
    %c0_i32_0 = arith.constant 0 : i32
    return %arg0, %c0_i32 : i32, i32
  }
  func.func @transform_2(%arg0: i32) -> (i32, i32) {
    %c0_i32 = arith.constant 0 : i32
    %c0_i32_0 = arith.constant 0 : i32
    %c0_i32_1 = arith.constant 0 : i32
    return %c0_i32, %c0_i32_0 : i32, i32
  }
  func.func @transform_3(%arg0: i32) -> (i32, i32) {
    %c0_i32 = arith.constant 0 : i32
    %c0_i32_0 = arith.constant 0 : i32
    %c0_i32_1 = arith.constant 0 : i32
    return %c0_i32, %c0_i32_0 : i32, i32
  }
  func.func @transform_4(%arg0: i32) -> (i32, i32) {
    %c0_i32 = arith.constant 0 : i32
    %c0_i32_0 = arith.constant 0 : i32
    %c0_i32_1 = arith.constant 0 : i32
    return %c0_i32, %c0_i32_0 : i32, i32
  }
  func.func @transform_5(%arg0: i32) -> (i32, i32) {
    %c0_i32 = arith.constant 0 : i32
    %c0_i32_0 = arith.constant 0 : i32
    %c0_i32_1 = arith.constant 0 : i32
    return %c0_i32, %c0_i32_0 : i32, i32
  }
  func.func @transform_6(%arg0: i32) -> (i32, i32) {
    %c0_i32 = arith.constant 0 : i32
    %c0_i32_0 = arith.constant 0 : i32
    %c0_i32_1 = arith.constant 0 : i32
    return %c0_i32, %c0_i32_0 : i32, i32
  }
  func.func @transform_7(%arg0: i32) -> (i32, i32) {
    %c0_i32 = arith.constant 0 : i32
    %c0_i32_0 = arith.constant 0 : i32
    %c0_i32_1 = arith.constant 0 : i32
    return %c0_i32, %c0_i32_0 : i32, i32
  }
  func.func @transform_8(%arg0: i32) -> (i32, i32) {
    %c0_i32 = arith.constant 0 : i32
    %c0_i32_0 = arith.constant 0 : i32
    %c0_i32_1 = arith.constant 0 : i32
    return %c0_i32, %c0_i32_0 : i32, i32
  }
  func.func @transform_9(%arg0: i32) -> (i32, i32) {
    %c0_i32 = arith.constant 0 : i32
    %c0_i32_0 = arith.constant 0 : i32
    %c0_i32_1 = arith.constant 0 : i32
    return %c0_i32, %c0_i32_0 : i32, i32
  }
  func.func @transform_10(%arg0: i32) -> (i32, i32) {
    %c0_i32 = arith.constant 0 : i32
    %c0_i32_0 = arith.constant 0 : i32
    return %arg0, %c0_i32 : i32, i32
  }
}

</mosaic_0001>

<bundles_post_ra>
// kernel: _lambda_.1
= control target key start
LH: loop header
LB: loop body
LE: loop exit
PB: predicated region body
PF: predicated region fallthrough
CT: control target
= control target key end

     0   :  { %v9139_v3 = vmov 0.0   ;;  %vm97_vm0 = vcmask 130048   ;;  %vm3982_vm1 = vcmask 261120   ;;  %vm4064_vm2 = vcmask 7168   ;;  %s9128_s2 = inlined_call_operand.vmem [shape: f32[16,768], index: 2, kind: input, shape index: {}]   ;;  %s9129_s0 = inlined_call_operand.vmem [shape: f32[8,16,16], index: 0, kind: input, shape index: {}]   ;;  %s9130_s4 = inlined_call_operand.vmem [shape: f32[256,768], index: 4, kind: input, shape index: {}]   ;;  %s9131_s3 = inlined_call_operand.vmem [shape: f32[1,768], index: 3, kind: input, shape index: {}]   ;;  %s9132_s5 = inlined_call_operand.vmem [shape: f32[1,256], index: 5, kind: input, shape index: {}]   ;;  %s9133_s6 = inlined_call_operand.vmem [shape: f32[640,32], index: 6, kind: input, shape index: {}]   ;;  %s9134_s1 = inlined_call_operand.vmem [shape: f32[16,128], index: 1, kind: input, shape index: {}]   ;;  %s9135_s8 = inlined_call_operand.vmem [shape: f32[32,1], index: 8, kind: input, shape index: {}]   ;;  %s9136_s9 = inlined_call_operand.<no memory space> [shape: f32[1,1], index: 9, kind: input, shape index: {}]   ;;  %s9137_s7 = inlined_call_operand.vmem [shape: f32[1,32], index: 7, kind: input, shape index: {}]   ;;  %s9138_s10 = inlined_call_operand.vmem [shape: f32[16,1], index: 10, kind: output, shape index: {}]  }
   0x1   :  { %v54_v0 = vld [vmem:[%s9128_s2 + $0x8] sm:$0xff]  ;;  %v60_v1 = vld [vmem:[%s9128_s2 + $0x38] sm:$0xff]  ;;  %v53_v2 = vld [vmem:[%s9128_s2] sm:$0xff]  ;;  %210 = vmatprep.mubr.f32.mxu0 %v9139_v3  ;;  %288 = vmatprep.mubr.f32.mxu1 %v9139_v3 }
   0x2   :  { %v4333_v4 = vpack.c.bf16 %v60_v1, %v54_v0  ;;  %v59_v5 = vld [vmem:[%s9128_s2 + $0x30] sm:$0xff]  ;;  %v56_v7 = vld [vmem:[%s9128_s2 + $0x18] sm:$0xff]  ;;  %v62_v8 = vld [vmem:[%s9128_s2 + $0x48] sm:$0xff] }
   0x3   :  { %v4335_v6 = vpack.c.bf16 %v59_v5, %v53_v2  ;;  %v55_v9 = vld [vmem:[%s9128_s2 + $0x10] sm:$0xff]  ;;  %v4337_v10 = vpack.c.bf16 %v62_v8, %v56_v7  ;;  %v61_v11 = vld [vmem:[%s9128_s2 + $0x40] sm:$0xff]  ;;  %v6398_v13 = vld [vmem:[%s9129_s0 + $0x68] sm:$0xff] }
   0x4   :  { %4334 = vmatprep.subr.bf16.mxu0 %v4333_v4  ;;  %5985 = vmatprep.subr.bf16.mxu1 %v4333_v4  ;;  %v6393_v12 = vld [vmem:[%s9129_s0] sm:$0xff]  ;;  %v4339_v14 = vpack.c.bf16 %v61_v11, %v55_v9  ;;  %v58_v15 = vld [vmem:[%s9128_s2 + $0x28] sm:$0xff]  ;;  %v64_v16 = vld [vmem:[%s9128_s2 + $0x58] sm:$0xff] }
   0x5   :  { %4336 = vmatpush1.bf16.msra.mxu0 %v4335_v6  ;;  %5986 = vmatpush1.bf16.msra.mxu1 %v4335_v6  ;;  %v57_v17 = vld [vmem:[%s9128_s2 + $0x20] sm:$0xff]  ;;  %v63_v18 = vld [vmem:[%s9128_s2 + $0x50] sm:$0xff]  ;;  %v4341_v19 = vpack.c.bf16 %v64_v16, %v58_v15  ;;  %v726_v21 = vld [vmem:[%s9130_s4 + $0x8] sm:$0xff] }
   0x6   :  { %4338 = vmatprep.subr.bf16.mxu1 %v4337_v10  ;;  %v4343_v20 = vpack.c.bf16 %v63_v18, %v57_v17  ;;  %v732_v22 = vld [vmem:[%s9130_s4 + $0x38] sm:$0xff]  ;;  %v6428_v24 = vld [vmem:[%s9129_s0 + $0x8] sm:$0xff]  ;;  %v6433_v25 = vld [vmem:[%s9129_s0 + $0x70] sm:$0xff] }
   0x7   :  { %v6422_v23 = vpack.c.bf16 %v732_v22, %v726_v21  ;;  %4342 = vmatprep.subr.bf16.mxu0 %v4341_v19  ;;  %v6446_v26 = vld [vmem:[%s9129_s0 + $0x10] sm:$0xff]  ;;  %v6451_v27 = vld [vmem:[%s9129_s0 + $0x78] sm:$0xff]  ;;  %v725_v28 = vld [vmem:[%s9130_s4] sm:$0xff] }
   0x8   :  { %4071 = vmatmul.mubr.msk.f32.vlgmr.msra.gmra.mrb[0].mxu0 %vm97_vm0, %v6393_v12  ;;  %4084 = vmatmul.mubr.msk.f32.vlgmr.msra.gmra.mrb[0].mxu1 %vm97_vm0, %v6398_v13  ;;  %v731_v29 = vld [vmem:[%s9130_s4 + $0x30] sm:$0xff]  ;;  %v738_v30 = vld [vmem:[%s9130_s4 + $0x68] sm:$0xff]  ;;  %v744_v31 = vld [vmem:[%s9130_s4 + $0x98] sm:$0xff] }
   0x9   :  { %9333 = vst [vmem:[#allocation5_spill] sm:$0xff] %v6422_v23  ;;  %4340 = vmatpush1.bf16.msra.mxu1 %v4339_v14  ;;  %216 = vmatprep.mubr.f32.mxu0 %v9139_v3  ;;  %v6474_v32 = vld [vmem:[%s9129_s0 + $0x18] sm:$0xff]  ;;  %v6476_v33 = vpack.c.bf16 %v731_v29, %v725_v28  ;;  %v6478_v34 = vpack.c.bf16 %v744_v31, %v738_v30  ;;  %v737_v35 = vld [vmem:[%s9130_s4 + $0x60] sm:$0xff]  ;;  %v743_v36 = vld [vmem:[%s9130_s4 + $0x90] sm:$0xff] }
   0xa   :  { %294 = vmatprep.mubr.f32.mxu1 %v9139_v3  ;;  %4344 = vmatpush1.bf16.msra.mxu0 %v4343_v20  ;;  %v750_v37 = vld [vmem:[%s9130_s4 + $0xc8] sm:$0xff]  ;;  %v756_v38 = vld [vmem:[%s9130_s4 + $0xf8] sm:$0xff]  ;;  %v6501_v39 = vld [vmem:[%s9129_s0 + $0x20] sm:$0xff]  ;;  %v6503_v40 = vpack.c.bf16 %v743_v36, %v737_v35 }
   0xb   :  { %4346 = vmatprep.subr.bf16.mxu1 %v6422_v23  ;;  %v6507_v41 = vpack.c.bf16 %v756_v38, %v750_v37  ;;  %v749_v42 = vld [vmem:[%s9130_s4 + $0xc0] sm:$0xff]  ;;  %v755_v43 = vld [vmem:[%s9130_s4 + $0xf0] sm:$0xff]  ;;  %v762_v44 = vld [vmem:[%s9130_s4 + $0x128] sm:$0xff] }
   0xc   :  { %4072 = vmatmul.mubr.msk.f32.gmra.mrb[2].mxu0 %vm97_vm0, %v6428_v24  ;;  %4085 = vmatmul.mubr.msk.f32.gmra.mrb[2].mxu1 %vm97_vm0, %v6433_v25  ;;  %v768_v45 = vld [vmem:[%s9130_s4 + $0x158] sm:$0xff]  ;;  %v6530_v46 = vld [vmem:[%s9129_s0 + $0x28] sm:$0xff]  ;;  %v6532_v47 = vpack.c.bf16 %v755_v43, %v749_v42  ;;  %v761_v51 = vld [vmem:[%s9130_s4 + $0x120] sm:$0xff] }
   0xd   :  { %222 = vmatprep.mubr.f32.mxu0 %v9139_v3  ;;  %300 = vmatprep.mubr.f32.mxu1 %v9139_v3  ;;  %v728_v48 = vld [vmem:[%s9130_s4 + $0x18] sm:$0xff]  ;;  %v734_v49 = vld [vmem:[%s9130_s4 + $0x48] sm:$0xff]  ;;  %v6542_v50 = vpack.c.bf16 %v768_v45, %v762_v44  ;;  %v767_v52 = vld [vmem:[%s9130_s4 + $0x150] sm:$0xff] }
   0xe   :  { %v774_v53 = vld [vmem:[%s9130_s4 + $0x188] sm:$0xff]  ;;  %v780_v54 = vld [vmem:[%s9130_s4 + $0x1b8] sm:$0xff]  ;;  %v6556_v55 = vpack.c.bf16 %v734_v49, %v728_v48  ;;  %v6567_v56 = vld [vmem:[%s9129_s0 + $0x30] sm:$0xff]  ;;  %v6569_v57 = vpack.c.bf16 %v767_v52, %v761_v51 }
   0xf   :  { %v6573_v58 = vpack.c.bf16 %v780_v54, %v774_v53  ;;  %v773_v59 = vld [vmem:[%s9130_s4 + $0x180] sm:$0xff]  ;;  %v779_v60 = vld [vmem:[%s9130_s4 + $0x1b0] sm:$0xff]  ;;  %v786_v61 = vld [vmem:[%s9130_s4 + $0x1e8] sm:$0xff] }
  0x10   :  { %4073 = vmatmul.mubr.msk.f32.gmra.mrb[4].mxu0 %vm97_vm0, %v6446_v26  ;;  %4086 = vmatmul.mubr.msk.f32.gmra.mrb[4].mxu1 %vm97_vm0, %v6451_v27  ;;  %9334 = vst [vmem:[#allocation6_spill] sm:$0xff] %v6556_v55  ;;  %v792_v62 = vld [vmem:[%s9130_s4 + $0x218] sm:$0xff]  ;;  %v6599_v0 = vpack.c.bf16 %v779_v60, %v773_v59  ;;  %v785_v2 = vld [vmem:[%s9130_s4 + $0x1e0] sm:$0xff]  ;;  %v791_v4 = vld [vmem:[%s9130_s4 + $0x210] sm:$0xff] }
  0x11   :  { %228 = vmatprep.mubr.f32.mxu0 %v9139_v3  ;;  %371 = vmatprep.mubr.f32.mxu1 %v9139_v3  ;;  %v6597_v63 = vld [vmem:[%s9129_s0 + $0x38] sm:$0xff]  ;;  %v6603_v1 = vpack.c.bf16 %v792_v62, %v786_v61  ;;  %v798_v5 = vld [vmem:[%s9130_s4 + $0x248] sm:$0xff]  ;;  %v6626_v7 = vld [vmem:[%s9129_s0 + $0x40] sm:$0xff]  ;;  %v6628_v8 = vpack.c.bf16 %v791_v4, %v785_v2 }
  0x12   :  { %4410 = vmatprep.subr.bf16.mxu0 %v6556_v55  ;;  %v804_v6 = vld [vmem:[%s9130_s4 + $0x278] sm:$0xff]  ;;  %v797_v10 = vld [vmem:[%s9130_s4 + $0x240] sm:$0xff]  ;;  %v803_v11 = vld [vmem:[%s9130_s4 + $0x270] sm:$0xff] }
  0x13   :  { %v6632_v9 = vpack.c.bf16 %v804_v6, %v798_v5  ;;  %v810_v14 = vld [vmem:[%s9130_s4 + $0x2a8] sm:$0xff]  ;;  %v816_v15 = vld [vmem:[%s9130_s4 + $0x2d8] sm:$0xff]  ;;  %v6657_v17 = vpack.c.bf16 %v803_v11, %v797_v10  ;;  %v809_v19 = vld [vmem:[%s9130_s4 + $0x2a0] sm:$0xff] }
  0x14   :  { %4074 = vmatmul.mubr.msk.f32.gmra.mrb[6].mxu0 %vm97_vm0, %v6474_v32  ;;  %4087 = vmatmul.mubr.msk.f32.vlgmr.msra.gmra.mrb[6].mxu1 %vm97_vm0, %v6393_v12  ;;  %v6655_v16 = vld [vmem:[%s9129_s0 + $0x48] sm:$0xff]  ;;  %v6661_v18 = vpack.c.bf16 %v816_v15, %v810_v14  ;;  %v815_v20 = vld [vmem:[%s9130_s4 + $0x2d0] sm:$0xff]  ;;  %v828_v22 = vld [vmem:[%s9130_s4 + $0x338] sm:$0xff] }
  0x15   :  { %4348 = vmatpush1.bf16.msra.mxu1 %v6476_v33  ;;  %234 = vmatprep.mubr.f32.mxu0 %v9139_v3  ;;  %v822_v21 = vld [vmem:[%s9130_s4 + $0x308] sm:$0xff]  ;;  %v6684_v28 = vld [vmem:[%s9129_s0 + $0x50] sm:$0xff]  ;;  %v6686_v29 = vpack.c.bf16 %v815_v20, %v809_v19  ;;  %v821_v31 = vld [vmem:[%s9130_s4 + $0x300] sm:$0xff] }
  0x16   :  { %377 = vmatprep.mubr.f32.mxu1 %v9139_v3  ;;  %4350 = vmatprep.subr.bf16.mxu1 %v6478_v34  ;;  %v6690_v30 = vpack.c.bf16 %v828_v22, %v822_v21  ;;  %v827_v35 = vld [vmem:[%s9130_s4 + $0x330] sm:$0xff]  ;;  %v834_v36 = vld [vmem:[%s9130_s4 + $0x368] sm:$0xff]  ;;  %v840_v37 = vld [vmem:[%s9130_s4 + $0x398] sm:$0xff] }
  0x17   :  { %v6713_v38 = vld [vmem:[%s9129_s0 + $0x58] sm:$0xff]  ;;  %v6715_v42 = vpack.c.bf16 %v827_v35, %v821_v31  ;;  %v6719_v43 = vpack.c.bf16 %v840_v37, %v834_v36  ;;  %v833_v44 = vld [vmem:[%s9130_s4 + $0x360] sm:$0xff]  ;;  %v839_v45 = vld [vmem:[%s9130_s4 + $0x390] sm:$0xff] }
  0x18   :  { %4075 = vmatmul.mubr.msk.f32.gmra.mrb[8].mxu0 %vm97_vm0, %v6501_v39  ;;  %4088 = vmatmul.mubr.msk.f32.gmra.mrb[8].mxu1 %vm97_vm0, %v6428_v24  ;;  %v846_v48 = vld [vmem:[%s9130_s4 + $0x3c8] sm:$0xff]  ;;  %v852_v49 = vld [vmem:[%s9130_s4 + $0x3f8] sm:$0xff]  ;;  %v6742_v51 = vld [vmem:[%s9129_s0 + $0x60] sm:$0xff]  ;;  %v6744_v52 = vpack.c.bf16 %v839_v45, %v833_v44 }
  0x19   :  { %4352 = vmatpush1.bf16.msra.mxu1 %v6503_v40  ;;  %240 = vmatprep.mubr.f32.mxu0 %v9139_v3  ;;  %9335 = vst [vmem:[#allocation7_spill] sm:$0xff] %v6719_v43  ;;  %v845_v53 = vld [vmem:[%s9130_s4 + $0x3c0] sm:$0xff]  ;;  %v6751_v54 = vpack.c.bf16 %v852_v49, %v846_v48  ;;  %v851_v59 = vld [vmem:[%s9130_s4 + $0x3f0] sm:$0xff]  ;;  %v858_v62 = vld [vmem:[%s9130_s4 + $0x428] sm:$0xff] }
  0x1a   :  { %383 = vmatprep.mubr.f32.mxu1 %v9139_v3  ;;  %4354 = vmatprep.subr.bf16.mxu1 %v6507_v41  ;;  %9336 = vst [vmem:[#allocation8_spill] sm:$0xff] %v6744_v52  ;;  %v727_v60 = vld [vmem:[%s9130_s4 + $0x10] sm:$0xff]  ;;  %v733_v61 = vld [vmem:[%s9130_s4 + $0x40] sm:$0xff]  ;;  %v864_v2 = vld [vmem:[%s9130_s4 + $0x458] sm:$0xff]  ;;  %v6780_v6 = vpack.c.bf16 %v851_v59, %v845_v53 }
  0x1b   :  { %9337 = vst [vmem:[#allocation9_spill] sm:$0xff] %v6751_v54  ;;  %v740_v4 = vld [vmem:[%s9130_s4 + $0x78] sm:$0xff]  ;;  %v746_v5 = vld [vmem:[%s9130_s4 + $0xa8] sm:$0xff]  ;;  %v6782_v10 = vpack.c.bf16 %v733_v61, %v727_v60  ;;  %v857_v11 = vld [vmem:[%s9130_s4 + $0x420] sm:$0xff]  ;;  %v6798_v20 = vpack.c.bf16 %v864_v2, %v858_v62 }
  0x1c   :  { %4076 = vmatmul.mubr.msk.f32.gmra.mrb[10].mxu0 %vm97_vm0, %v6530_v46  ;;  %4089 = vmatmul.mubr.msk.f32.gmra.mrb[10].mxu1 %vm97_vm0, %v6446_v26  ;;  %9338 = vst [vmem:[#allocation10_spill] sm:$0xff] %v6780_v6  ;;  %v863_v14 = vld [vmem:[%s9130_s4 + $0x450] sm:$0xff]  ;;  %v745_v19 = vld [vmem:[%s9130_s4 + $0xa0] sm:$0xff]  ;;  %v6800_v21 = vpack.c.bf16 %v746_v5, %v740_v4  ;;  %v870_v22 = vld [vmem:[%s9130_s4 + $0x488] sm:$0xff] }
  0x1d   :  { %4356 = vmatpush1.bf16.msra.mxu1 %v6532_v47  ;;  %246 = vmatprep.mubr.f32.mxu0 %v9139_v3  ;;  %9339 = vst [vmem:[#allocation11_spill] sm:$0xff] %v6782_v10  ;;  %v739_v15 = vld [vmem:[%s9130_s4 + $0x70] sm:$0xff]  ;;  %9340 = vst [vmem:[#allocation12_spill] sm:$0xff] %v6798_v20  ;;  %v876_v31 = vld [vmem:[%s9130_s4 + $0x4b8] sm:$0xff]  ;;  %v6820_v37 = vpack.c.bf16 %v863_v14, %v857_v11 }
  0x1e   :  { %389 = vmatprep.mubr.f32.mxu1 %v9139_v3  ;;  %4358 = vmatprep.subr.bf16.mxu1 %v6542_v50  ;;  %9341 = vst [vmem:[#allocation13_spill] sm:$0xff] %v6800_v21  ;;  %v752_v35 = vld [vmem:[%s9130_s4 + $0xd8] sm:$0xff]  ;;  %v758_v36 = vld [vmem:[%s9130_s4 + $0x108] sm:$0xff]  ;;  %v6822_v44 = vpack.c.bf16 %v745_v19, %v739_v15  ;;  %v875_v45 = vld [vmem:[%s9130_s4 + $0x4b0] sm:$0xff]  ;;  %v6840_v53 = vpack.c.bf16 %v876_v31, %v870_v22 }
  0x1f   :  { %9342 = vst [vmem:[#allocation14_spill] sm:$0xff] %v6820_v37  ;;  %v751_v48 = vld [vmem:[%s9130_s4 + $0xd0] sm:$0xff]  ;;  %v757_v49 = vld [vmem:[%s9130_s4 + $0x100] sm:$0xff]  ;;  %v6842_v59 = vpack.c.bf16 %v758_v36, %v752_v35  ;;  %v882_v60 = vld [vmem:[%s9130_s4 + $0x4e8] sm:$0xff] }
  0x20   :  { %4077 = vmatmul.mubr.msk.f32.gmra.mrb[12].mxu0 %vm97_vm0, %v6567_v56  ;;  %4090 = vmatmul.mubr.msk.f32.gmra.mrb[12].mxu1 %vm97_vm0, %v6474_v32  ;;  %9343 = vst [vmem:[#allocation15_spill] sm:$0xff] %v6822_v44  ;;  %9344 = vst [vmem:[#allocation16_spill] sm:$0xff] %v6840_v53  ;;  %v888_v61 = vld [vmem:[%s9130_s4 + $0x518] sm:$0xff]  ;;  %v770_v2 = vld [vmem:[%s9130_s4 + $0x168] sm:$0xff]  ;;  %v6864_v5 = vpack.c.bf16 %v757_v49, %v751_v48 }
  0x21   :  { %4360 = vmatpush1.bf16.msra.mxu1 %v6569_v57  ;;  %252 = vmatprep.mubr.f32.mxu0 %v9139_v3  ;;  %9345 = vst [vmem:[#allocation17_spill] sm:$0xff] %v6842_v59  ;;  %v764_v62 = vld [vmem:[%s9130_s4 + $0x138] sm:$0xff]  ;;  %v887_v11 = vld [vmem:[%s9130_s4 + $0x510] sm:$0xff]  ;;  %v769_v15 = vld [vmem:[%s9130_s4 + $0x160] sm:$0xff]  ;;  %v6882_v19 = vpack.c.bf16 %v888_v61, %v882_v60 }
  0x22   :  { %395 = vmatprep.mubr.f32.mxu1 %v9139_v3  ;;  %4362 = vmatprep.subr.bf16.mxu1 %v6573_v58  ;;  %9347 = vst [vmem:[#allocation19_spill] sm:$0xff] %v6864_v5  ;;  %v763_v14 = vld [vmem:[%s9130_s4 + $0x130] sm:$0xff]  ;;  %v6884_v22 = vpack.c.bf16 %v770_v2, %v764_v62  ;;  %v894_v31 = vld [vmem:[%s9130_s4 + $0x548] sm:$0xff]  ;;  %v900_v35 = vld [vmem:[%s9130_s4 + $0x578] sm:$0xff] }
  0x23   :  { %9348 = vst [vmem:[#allocation20_spill] sm:$0xff] %v6882_v19  ;;  %v776_v36 = vld [vmem:[%s9130_s4 + $0x198] sm:$0xff]  ;;  %v6906_v48 = vpack.c.bf16 %v769_v15, %v763_v14  ;;  %v899_v49 = vld [vmem:[%s9130_s4 + $0x570] sm:$0xff]  ;;  %v781_v61 = vld [vmem:[%s9130_s4 + $0x1c0] sm:$0xff]  ;;  %v6924_v62 = vpack.c.bf16 %v900_v35, %v894_v31 }
  0x24   :  { %4078 = vmatmul.mubr.msk.f32.gmra.mrb[14].mxu0 %vm97_vm0, %v6597_v63  ;;  %4091 = vmatmul.mubr.msk.f32.gmra.mrb[14].mxu1 %vm97_vm0, %v6501_v39  ;;  %9349 = vst [vmem:[#allocation21_spill] sm:$0xff] %v6884_v22  ;;  %v775_v60 = vld [vmem:[%s9130_s4 + $0x190] sm:$0xff]  ;;  %v788_v14 = vld [vmem:[%s9130_s4 + $0x1f8] sm:$0xff]  ;;  %v794_v15 = vld [vmem:[%s9130_s4 + $0x228] sm:$0xff] }
  0x25   :  { %4364 = vmatpush1.bf16.msra.mxu1 %v6599_v0  ;;  %258 = vmatprep.mubr.f32.mxu0 %v9139_v3  ;;  %9351 = vst [vmem:[#allocation23_spill] sm:$0xff] %v6906_v48  ;;  %9352 = vst [vmem:[#allocation24_spill] sm:$0xff] %v6924_v62  ;;  %v6948_v35 = vpack.c.bf16 %v781_v61, %v775_v60  ;;  %v6968_v60 = vpack.c.bf16 %v794_v15, %v788_v14  ;;  %v730_v61 = vld [vmem:[%s9130_s4 + $0x28] sm:$0xff] }
  0x26   :  { %401 = vmatprep.mubr.f32.mxu1 %v9139_v3  ;;  %4366 = vmatprep.subr.bf16.mxu1 %v6603_v1 }
  0x27   :  { %9355 = vst [vmem:[#allocation27_spill] sm:$0xff] %v6948_v35  ;;  %9357 = vst [vmem:[#allocation29_spill] sm:$0xff] %v6968_v60 }
  0x28   :  { %4079 = vmatmul.mubr.msk.f32.gmra.mrb[16].mxu0 %vm97_vm0, %v6626_v7  ;;  %4092 = vmatmul.mubr.msk.f32.gmra.mrb[16].mxu1 %vm97_vm0, %v6530_v46 }
  0x29   :  { %4368 = vmatpush1.bf16.msra.mxu1 %v6628_v8  ;;  %264 = vmatprep.mubr.f32.mxu0 %v9139_v3 }
  0x2a   :  { %407 = vmatprep.mubr.f32.mxu1 %v9139_v3  ;;  %4370 = vmatprep.subr.bf16.mxu1 %v6632_v9 }
  0x2c   :  { %4080 = vmatmul.mubr.msk.f32.gmra.mrb[18].mxu0 %vm97_vm0, %v6655_v16  ;;  %4093 = vmatmul.mubr.msk.f32.gmra.mrb[18].mxu1 %vm97_vm0, %v6567_v56 }
  0x2d   :  { %4372 = vmatpush1.bf16.msra.mxu1 %v6657_v17  ;;  %270 = vmatprep.mubr.f32.mxu0 %v9139_v3 }
  0x2e   :  { %413 = vmatprep.mubr.f32.mxu1 %v9139_v3  ;;  %4374 = vmatprep.subr.bf16.mxu1 %v6661_v18 }
  0x30   :  { %4081 = vmatmul.mubr.msk.f32.gmra.mrb[20].mxu0 %vm97_vm0, %v6684_v28  ;;  %4094 = vmatmul.mubr.msk.f32.gmra.mrb[20].mxu1 %vm97_vm0, %v6597_v63 }
  0x31   :  { %4376 = vmatpush1.bf16.msra.mxu1 %v6686_v29  ;;  %276 = vmatprep.mubr.f32.mxu0 %v9139_v3 }
  0x32   :  { %419 = vmatprep.mubr.f32.mxu1 %v9139_v3  ;;  %4378 = vmatprep.subr.bf16.mxu1 %v6690_v30 }
  0x34   :  { %4082 = vmatmul.mubr.msk.f32.gmra.mrb[22].mxu0 %vm97_vm0, %v6713_v38  ;;  %4095 = vmatmul.mubr.msk.f32.gmra.mrb[22].mxu1 %vm97_vm0, %v6626_v7 }
  0x35   :  { %4380 = vmatpush1.bf16.msra.mxu1 %v6715_v42  ;;  %282 = vmatprep.mubr.f32.mxu0 %v9139_v3 }
  0x36   :  { %425 = vmatprep.mubr.f32.mxu1 %v9139_v3  ;;  %4382 = vmatprep.subr.bf16.mxu1 %v6719_v43 }
  0x38   :  { %4083 = vmatmul.mubr.msk.f32.gmra.mrb[24].mxu0 %vm97_vm0, %v6742_v51  ;;  %4096 = vmatmul.mubr.msk.f32.gmra.mrb[24].mxu1 %vm97_vm0, %v6655_v16 }
  0x39   :  { %4384 = vmatpush1.bf16.msra.mxu1 %v6744_v52  ;;  %431 = vmatprep.mubr.f32.mxu1 %v9139_v3 }
  0x3a   :  { %532 = vmatprep.mubr.f32.mxu0 %v9139_v3  ;;  %4386 = vmatprep.subr.bf16.mxu1 %v6751_v54 }
  0x3c   :  { %4097 = vmatmul.mubr.msk.f32.gmra.mrb[26].mxu1 %vm97_vm0, %v6684_v28  ;;  %4103 = vmatmul.mubr.msk.f32.vlgmr.msra.gmra.mrb[26].mxu0 %vm97_vm0, %v6393_v12  ;;  %v869_v12 = vld [vmem:[%s9130_s4 + $0x480] sm:$0xff] }
  0x3d   :  { %4388 = vmatpush1.bf16.msra.mxu1 %v6780_v6  ;;  %4412 = vmatpush1.bf16.msra.mxu0 %v6782_v10  ;;  %v6862_v4 = vpack.c.bf16 %v875_v45, %v869_v12  ;;  %v782_v12 = vld [vmem:[%s9130_s4 + $0x1c8] sm:$0xff] }
  0x3e   :  { %437 = vmatprep.mubr.f32.mxu1 %v9139_v3  ;;  %538 = vmatprep.mubr.f32.mxu0 %v9139_v3  ;;  %v6926_v2 = vpack.c.bf16 %v782_v12, %v776_v36  ;;  %v911_v36 = vld [vmem:[%s9130_s4 + $0x5d0] sm:$0xff] }
  0x3f   :  { %4390 = vmatprep.subr.bf16.mxu1 %v6798_v20  ;;  %4414 = vmatprep.subr.bf16.mxu0 %v6800_v21  ;;  %9346 = vst [vmem:[#allocation18_spill] sm:$0xff] %v6862_v4  ;;  %v787_v12 = vld [vmem:[%s9130_s4 + $0x1f0] sm:$0xff] }
  0x40   :  { %4098 = vmatmul.mubr.msk.f32.gmra.mrb[28].mxu1 %vm97_vm0, %v6713_v38  ;;  %4104 = vmatmul.mubr.msk.f32.gmra.mrb[28].mxu0 %vm97_vm0, %v6428_v24  ;;  %v881_v24 = vld [vmem:[%s9130_s4 + $0x4e0] sm:$0xff]  ;;  %9353 = vst [vmem:[#allocation25_spill] sm:$0xff] %v6926_v2 }
  0x41   :  { %4392 = vmatpush1.bf16.msra.mxu1 %v6820_v37  ;;  %4416 = vmatpush1.bf16.msra.mxu0 %v6822_v44  ;;  %v6904_v45 = vpack.c.bf16 %v887_v11, %v881_v24  ;;  %v906_v24 = vld [vmem:[%s9130_s4 + $0x5a8] sm:$0xff]  ;;  %v912_v11 = vld [vmem:[%s9130_s4 + $0x5d8] sm:$0xff] }
  0x42   :  { %443 = vmatprep.mubr.f32.mxu1 %v9139_v3  ;;  %544 = vmatprep.mubr.f32.mxu0 %v9139_v3 }
  0x43   :  { %4394 = vmatprep.subr.bf16.mxu1 %v6840_v53  ;;  %4418 = vmatprep.subr.bf16.mxu0 %v6842_v59  ;;  %9350 = vst [vmem:[#allocation22_spill] sm:$0xff] %v6904_v45 }
  0x44   :  { %4099 = vmatmul.mubr.msk.f32.gmra.mrb[30].mxu1 %vm97_vm0, %v6742_v51  ;;  %4105 = vmatmul.mubr.msk.f32.gmra.mrb[30].mxu0 %vm97_vm0, %v6446_v26  ;;  %v893_v26 = vld [vmem:[%s9130_s4 + $0x540] sm:$0xff] }
  0x45   :  { %4396 = vmatpush1.bf16.msra.mxu1 %v6862_v4  ;;  %4420 = vmatpush1.bf16.msra.mxu0 %v6864_v5  ;;  %v6946_v31 = vpack.c.bf16 %v899_v49, %v893_v26  ;;  %v793_v26 = vld [vmem:[%s9130_s4 + $0x220] sm:$0xff]  ;;  %v6966_v49 = vpack.c.bf16 %v912_v11, %v906_v24  ;;  %v800_v24 = vld [vmem:[%s9130_s4 + $0x258] sm:$0xff]  ;;  %v806_v11 = vld [vmem:[%s9130_s4 + $0x288] sm:$0xff] }
  0x46   :  { %449 = vmatprep.mubr.f32.mxu1 %v9139_v3  ;;  %550 = vmatprep.mubr.f32.mxu0 %v9139_v3  ;;  %v6990_v15 = vpack.c.bf16 %v793_v26, %v787_v12  ;;  %v7010_v12 = vpack.c.bf16 %v806_v11, %v800_v24  ;;  %v742_v26 = vld [vmem:[%s9130_s4 + $0x88] sm:$0xff]  ;;  %v760_v4 = vld [vmem:[%s9130_s4 + $0x118] sm:$0xff] }
  0x47   :  { %4398 = vmatprep.subr.bf16.mxu1 %v6882_v19  ;;  %4422 = vmatprep.subr.bf16.mxu0 %v6884_v22  ;;  %9354 = vst [vmem:[#allocation26_spill] sm:$0xff] %v6946_v31  ;;  %9356 = vst [vmem:[#allocation28_spill] sm:$0xff] %v6966_v49  ;;  %v747_v19 = vld [vmem:[%s9130_s4 + $0xb0] sm:$0xff] }
  0x48   :  { %4100 = vmatmul.mubr.msk.f32.gmra.mrb[32].mxu1 %vm97_vm0, %v6398_v13  ;;  %4106 = vmatmul.mubr.msk.f32.gmra.mrb[32].mxu0 %vm97_vm0, %v6474_v32  ;;  %v905_v32 = vld [vmem:[%s9130_s4 + $0x5a0] sm:$0xff]  ;;  %9359 = vst [vmem:[#allocation31_spill] sm:$0xff] %v6990_v15  ;;  %9362 = vst [vmem:[#allocation33_spill] sm:$0xff] %v7010_v12 }
  0x49   :  { %4400 = vmatpush1.bf16.msra.mxu1 %v6904_v45  ;;  %4424 = vmatpush1.bf16.msra.mxu0 %v6906_v48  ;;  %v6988_v14 = vpack.c.bf16 %v911_v36, %v905_v32  ;;  %v735_v45 = vld [vmem:[%s9130_s4 + $0x50] sm:$0xff]  ;;  %v805_v32 = vld [vmem:[%s9130_s4 + $0x280] sm:$0xff] }
  0x4a   :  { %455 = vmatprep.mubr.f32.mxu1 %v9139_v3  ;;  %556 = vmatprep.mubr.f32.mxu0 %v9139_v3  ;;  %v736_v3 = vld [vmem:[%s9130_s4 + $0x58] sm:$0xff] }
  0x4b   :  { %4402 = vmatprep.subr.bf16.mxu1 %v6924_v62  ;;  %4426 = vmatprep.subr.bf16.mxu0 %v6926_v2  ;;  %9358 = vst [vmem:[#allocation30_spill] sm:$0xff] %v6988_v14  ;;  %v9360_v62 = vmov 0.0   ;;  %v7008_v36 = vpack.c.bf16 %v736_v3, %v730_v61  ;;  %v812_v3 = vld [vmem:[%s9130_s4 + $0x2b8] sm:$0xff]  ;;  %v818_v61 = vld [vmem:[%s9130_s4 + $0x2e8] sm:$0xff] }
  0x4c   :  { %4101 = vmatmul.mubr.msk.f32.gmra.mrb[34].mxu1 %vm97_vm0, %v6433_v25  ;;  %4107 = vmatmul.mubr.msk.f32.gmra.mrb[34].mxu0 %vm97_vm0, %v6501_v39  ;;  %v729_v39 = vld [vmem:[%s9130_s4 + $0x20] sm:$0xff] }
  0x4d   :  { %4404 = vmatpush1.bf16.msra.mxu1 %v6946_v31  ;;  %4428 = vmatpush1.bf16.msra.mxu0 %v6948_v35  ;;  %v799_v31 = vld [vmem:[%s9130_s4 + $0x250] sm:$0xff]  ;;  %9361 = vst [vmem:[#allocation32_spill] sm:$0xff] %v7008_v36  ;;  %v7030_v24 = vpack.c.bf16 %v735_v45, %v729_v39  ;;  %v817_v45 = vld [vmem:[%s9130_s4 + $0x2e0] sm:$0xff]  ;;  %v7052_v39 = vpack.c.bf16 %v818_v61, %v812_v3 }
  0x4e   :  { %461 = vmatprep.mubr.f32.mxu1 %v9360_v62  ;;  %562 = vmatprep.mubr.f32.mxu0 %v9360_v62  ;;  %v7032_v11 = vpack.c.bf16 %v805_v32, %v799_v31  ;;  %v754_v32 = vld [vmem:[%s9130_s4 + $0xe8] sm:$0xff] }
  0x4f   :  { %4406 = vmatprep.subr.bf16.mxu1 %v6966_v49  ;;  %4430 = vmatprep.subr.bf16.mxu0 %v6968_v60  ;;  %v748_v49 = vld [vmem:[%s9130_s4 + $0xb8] sm:$0xff]  ;;  %9363 = vst [vmem:[#allocation34_spill] sm:$0xff] %v7030_v24  ;;  %9366 = vst [vmem:[#allocation37_spill] sm:$0xff] %v7052_v39 }
  0x50   :  { %4102 = vmatmul.mubr.msk.f32.gmra.mrb[36].mxu1 %vm97_vm0, %v6451_v27  ;;  %4108 = vmatmul.mubr.msk.f32.gmra.mrb[36].mxu0 %vm97_vm0, %v6530_v46  ;;  %9364 = vst [vmem:[#allocation35_spill] sm:$0xff] %v7032_v11  ;;  %v741_v46 = vld [vmem:[%s9130_s4 + $0x80] sm:$0xff]  ;;  %v7050_v31 = vpack.c.bf16 %v748_v49, %v742_v26  ;;  %v824_v49 = vld [vmem:[%s9130_s4 + $0x318] sm:$0xff]  ;;  %v830_v26 = vld [vmem:[%s9130_s4 + $0x348] sm:$0xff] }
  0x51   :  { %4408 = vmatpush1.bf16.msra.mxu1 %v6988_v14  ;;  %4432 = vmatpush1.bf16.msra.mxu0 %v6990_v15  ;;  %v811_v14 = vld [vmem:[%s9130_s4 + $0x2b0] sm:$0xff]  ;;  %v7071_v3 = vpack.c.bf16 %v747_v19, %v741_v46  ;;  %v7093_v46 = vpack.c.bf16 %v830_v26, %v824_v49  ;;  %v842_v49 = vld [vmem:[%s9130_s4 + $0x3a8] sm:$0xff] }
  0x52   :  { %568 = vmatprep.mubr.f32.mxu0 %v9360_v62  ;;  %995 = vmatprep.mubr.f32.mxu1 %v9360_v62  ;;  %9365 = vst [vmem:[#allocation36_spill] sm:$0xff] %v7050_v31  ;;  %v7073_v61 = vpack.c.bf16 %v817_v45, %v811_v14  ;;  %v823_v19 = vld [vmem:[%s9130_s4 + $0x310] sm:$0xff]  ;;  %v829_v14 = vld [vmem:[%s9130_s4 + $0x340] sm:$0xff]  ;;  %v772_v45 = vld [vmem:[%s9130_s4 + $0x178] sm:$0xff] }
  0x53   :  { %4474 = vmatprep.subr.bf16.mxu1 %v7008_v36  ;;  %4434 = vmatprep.subr.bf16.mxu0 %v7010_v12  ;;  %9367 = vst [vmem:[#allocation38_spill] sm:$0xff] %v7071_v3  ;;  %v7080_v36 = vpack.c.bf16 %v760_v4, %v754_v32  ;;  %9370 = vst [vmem:[#allocation41_spill] sm:$0xff] %v7093_v46  ;;  %v766_v4 = vld [vmem:[%s9130_s4 + $0x148] sm:$0xff]  ;;  %v836_v32 = vld [vmem:[%s9130_s4 + $0x378] sm:$0xff] }
  0x54   :  { %4109 = vmatmul.mubr.msk.f32.gmra.mrb[38].mxu0 %vm97_vm0, %v6567_v56  ;;  %996 = vmatmul.mubr.f32.vlgmr.msra.gmra.mrb[38].mxu1 %v9360_v62  ;;  %9368 = vst [vmem:[#allocation39_spill] sm:$0xff] %v7073_v61  ;;  %v753_v56 = vld [vmem:[%s9130_s4 + $0xe0] sm:$0xff] }
  0x55   :  { %4476 = vmatpush1.bf16.msra.mxu1 %v7030_v24  ;;  %4436 = vmatpush1.bf16.msra.mxu0 %v7032_v11  ;;  %9369 = vst [vmem:[#allocation40_spill] sm:$0xff] %v7080_v36  ;;  %v759_v24 = vld [vmem:[%s9130_s4 + $0x110] sm:$0xff] }
  0x56   :  { %574 = vmatprep.mubr.f32.mxu0 %v9360_v62  ;;  %1001 = vmatprep.mubr.f32.mxu1 %v9360_v62  ;;  %v7112_v26 = vpack.c.bf16 %v759_v24, %v753_v56  ;;  %v835_v24 = vld [vmem:[%s9130_s4 + $0x370] sm:$0xff]  ;;  %v841_v56 = vld [vmem:[%s9130_s4 + $0x3a0] sm:$0xff] }
  0x57   :  { %4478 = vmatprep.subr.bf16.mxu1 %v7050_v31  ;;  %4438 = vmatprep.subr.bf16.mxu0 %v7052_v39  ;;  %v7114_v31 = vpack.c.bf16 %v829_v14, %v823_v19  ;;  %v7121_v39 = vpack.c.bf16 %v772_v45, %v766_v4  ;;  %v7133_v19 = vpack.c.bf16 %v842_v49, %v836_v32  ;;  %v778_v14 = vld [vmem:[%s9130_s4 + $0x1a8] sm:$0xff]  ;;  %v784_v4 = vld [vmem:[%s9130_s4 + $0x1d8] sm:$0xff] }
  0x58   :  { %4110 = vmatmul.mubr.msk.f32.gmra.mrb[40].mxu0 %vm97_vm0, %v6597_v63  ;;  %1002 = vmatmul.mubr.f32.gmra.mrb[40].mxu1 %v9360_v62  ;;  %9371 = vst [vmem:[#allocation42_spill] sm:$0xff] %v7112_v26  ;;  %v765_v63 = vld [vmem:[%s9130_s4 + $0x140] sm:$0xff]  ;;  %v848_v45 = vld [vmem:[%s9130_s4 + $0x3d8] sm:$0xff]  ;;  %v854_v32 = vld [vmem:[%s9130_s4 + $0x408] sm:$0xff] }
  0x59   :  { %4480 = vmatpush1.bf16.msra.mxu1 %v7071_v3  ;;  %4440 = vmatpush1.bf16.msra.mxu0 %v7073_v61  ;;  %9372 = vst [vmem:[#allocation43_spill] sm:$0xff] %v7114_v31  ;;  %9373 = vst [vmem:[#allocation44_spill] sm:$0xff] %v7121_v39  ;;  %v771_v3 = vld [vmem:[%s9130_s4 + $0x170] sm:$0xff] }
  0x5a   :  { %580 = vmatprep.mubr.f32.mxu0 %v9360_v62  ;;  %4482 = vmatprep.subr.bf16.mxu1 %v7080_v36  ;;  %9374 = vst [vmem:[#allocation45_spill] sm:$0xff] %v7133_v19  ;;  %v7152_v49 = vpack.c.bf16 %v771_v3, %v765_v63  ;;  %v7154_v36 = vpack.c.bf16 %v841_v56, %v835_v24  ;;  %v847_v3 = vld [vmem:[%s9130_s4 + $0x3d0] sm:$0xff]  ;;  %v853_v63 = vld [vmem:[%s9130_s4 + $0x400] sm:$0xff]  ;;  %v790_v56 = vld [vmem:[%s9130_s4 + $0x208] sm:$0xff] }
  0x5b   :  { %4442 = vmatprep.subr.bf16.mxu0 %v7093_v46  ;;  %1149 = vmatprep.mubr.f32.mxu1 %v9360_v62  ;;  %v7161_v46 = vpack.c.bf16 %v784_v4, %v778_v14  ;;  %v7173_v24 = vpack.c.bf16 %v854_v32, %v848_v45  ;;  %v796_v14 = vld [vmem:[%s9130_s4 + $0x238] sm:$0xff]  ;;  %v866_v45 = vld [vmem:[%s9130_s4 + $0x468] sm:$0xff] }
  0x5c   :  { %4111 = vmatmul.mubr.msk.f32.gmra.mrb[42].mxu0 %vm97_vm0, %v6626_v7  ;;  %9375 = vst [vmem:[#allocation46_spill] sm:$0xff] %v7152_v49  ;;  %9376 = vst [vmem:[#allocation47_spill] sm:$0xff] %v7154_v36  ;;  %v777_v7 = vld [vmem:[%s9130_s4 + $0x1a0] sm:$0xff]  ;;  %v860_v4 = vld [vmem:[%s9130_s4 + $0x438] sm:$0xff] }
  0x5d   :  { %4484 = vmatpush1.bf16.msra.mxu1 %v7112_v26  ;;  %4444 = vmatpush1.bf16.msra.mxu0 %v7114_v31  ;;  %9377 = vst [vmem:[#allocation48_spill] sm:$0xff] %v7161_v46  ;;  %v783_v26 = vld [vmem:[%s9130_s4 + $0x1d0] sm:$0xff]  ;;  %9378 = vst [vmem:[#allocation49_spill] sm:$0xff] %v7173_v24 }
  0x5e   :  { %586 = vmatprep.mubr.f32.mxu0 %v9360_v62  ;;  %4486 = vmatprep.subr.bf16.mxu1 %v7121_v39  ;;  %v7191_v32 = vpack.c.bf16 %v783_v26, %v777_v7  ;;  %v7193_v39 = vpack.c.bf16 %v853_v63, %v847_v3  ;;  %v859_v26 = vld [vmem:[%s9130_s4 + $0x430] sm:$0xff]  ;;  %v865_v7 = vld [vmem:[%s9130_s4 + $0x460] sm:$0xff]  ;;  %v7212_v3 = vpack.c.bf16 %v866_v45, %v860_v4  ;;  %v802_v63 = vld [vmem:[%s9130_s4 + $0x268] sm:$0xff] }
  0x5f   :  { %4446 = vmatprep.subr.bf16.mxu0 %v7133_v19  ;;  %v7200_v19 = vpack.c.bf16 %v796_v14, %v790_v56  ;;  %v808_v56 = vld [vmem:[%s9130_s4 + $0x298] sm:$0xff]  ;;  %v878_v4 = vld [vmem:[%s9130_s4 + $0x4c8] sm:$0xff] }
  0x60   :  { %4112 = vmatmul.mubr.msk.f32.gmra.mrb[44].mxu0 %vm97_vm0, %v6655_v16  ;;  %9379 = vst [vmem:[#allocation50_spill] sm:$0xff] %v7191_v32  ;;  %9380 = vst [vmem:[#allocation51_spill] sm:$0xff] %v7193_v39  ;;  %v789_v16 = vld [vmem:[%s9130_s4 + $0x200] sm:$0xff]  ;;  %v872_v14 = vld [vmem:[%s9130_s4 + $0x498] sm:$0xff] }
  0x61   :  { %4488 = vmatpush1.bf16.msra.mxu1 %v7152_v49  ;;  %4448 = vmatpush1.bf16.msra.mxu0 %v7154_v36  ;;  %9381 = vst [vmem:[#allocation52_spill] sm:$0xff] %v7200_v19  ;;  %v795_v49 = vld [vmem:[%s9130_s4 + $0x230] sm:$0xff]  ;;  %9382 = vst [vmem:[#allocation53_spill] sm:$0xff] %v7212_v3 }
  0x62   :  { %592 = vmatprep.mubr.f32.mxu0 %v9360_v62  ;;  %4490 = vmatprep.subr.bf16.mxu1 %v7161_v46  ;;  %v7230_v45 = vpack.c.bf16 %v795_v49, %v789_v16  ;;  %v7232_v46 = vpack.c.bf16 %v865_v7, %v859_v26  ;;  %v871_v49 = vld [vmem:[%s9130_s4 + $0x490] sm:$0xff]  ;;  %v877_v16 = vld [vmem:[%s9130_s4 + $0x4c0] sm:$0xff]  ;;  %v7251_v26 = vpack.c.bf16 %v878_v4, %v872_v14  ;;  %v814_v7 = vld [vmem:[%s9130_s4 + $0x2c8] sm:$0xff] }
  0x63   :  { %4450 = vmatprep.subr.bf16.mxu0 %v7173_v24  ;;  %v7239_v24 = vpack.c.bf16 %v808_v56, %v802_v63  ;;  %v820_v63 = vld [vmem:[%s9130_s4 + $0x2f8] sm:$0xff]  ;;  %v890_v14 = vld [vmem:[%s9130_s4 + $0x528] sm:$0xff] }
  0x64   :  { %4113 = vmatmul.mubr.msk.f32.gmra.mrb[46].mxu0 %vm97_vm0, %v6684_v28  ;;  %9383 = vst [vmem:[#allocation54_spill] sm:$0xff] %v7230_v45  ;;  %9384 = vst [vmem:[#allocation55_spill] sm:$0xff] %v7232_v46  ;;  %v801_v28 = vld [vmem:[%s9130_s4 + $0x260] sm:$0xff]  ;;  %v884_v56 = vld [vmem:[%s9130_s4 + $0x4f8] sm:$0xff] }
  0x65   :  { %4492 = vmatpush1.bf16.msra.mxu1 %v7191_v32  ;;  %4452 = vmatpush1.bf16.msra.mxu0 %v7193_v39  ;;  %9385 = vst [vmem:[#allocation56_spill] sm:$0xff] %v7239_v24  ;;  %v807_v32 = vld [vmem:[%s9130_s4 + $0x290] sm:$0xff]  ;;  %9386 = vst [vmem:[#allocation57_spill] sm:$0xff] %v7251_v26 }
  0x66   :  { %598 = vmatprep.mubr.f32.mxu0 %v9360_v62  ;;  %4494 = vmatprep.subr.bf16.mxu1 %v7200_v19  ;;  %v7269_v4 = vpack.c.bf16 %v807_v32, %v801_v28  ;;  %v7271_v19 = vpack.c.bf16 %v877_v16, %v871_v49  ;;  %v883_v32 = vld [vmem:[%s9130_s4 + $0x4f0] sm:$0xff]  ;;  %v889_v28 = vld [vmem:[%s9130_s4 + $0x520] sm:$0xff]  ;;  %v7290_v49 = vpack.c.bf16 %v890_v14, %v884_v56  ;;  %v826_v16 = vld [vmem:[%s9130_s4 + $0x328] sm:$0xff] }
  0x67   :  { %4454 = vmatprep.subr.bf16.mxu0 %v7212_v3  ;;  %v7278_v3 = vpack.c.bf16 %v820_v63, %v814_v7  ;;  %v832_v7 = vld [vmem:[%s9130_s4 + $0x358] sm:$0xff]  ;;  %v902_v56 = vld [vmem:[%s9130_s4 + $0x588] sm:$0xff] }
  0x68   :  { %4114 = vmatmul.mubr.msk.f32.gmra.mrb[48].mxu0 %vm97_vm0, %v6713_v38  ;;  %9387 = vst [vmem:[#allocation58_spill] sm:$0xff] %v7269_v4  ;;  %9388 = vst [vmem:[#allocation59_spill] sm:$0xff] %v7271_v19  ;;  %v813_v38 = vld [vmem:[%s9130_s4 + $0x2c0] sm:$0xff]  ;;  %v896_v63 = vld [vmem:[%s9130_s4 + $0x558] sm:$0xff] }
  0x69   :  { %4496 = vmatpush1.bf16.msra.mxu1 %v7230_v45  ;;  %4456 = vmatpush1.bf16.msra.mxu0 %v7232_v46  ;;  %9389 = vst [vmem:[#allocation60_spill] sm:$0xff] %v7278_v3  ;;  %v819_v45 = vld [vmem:[%s9130_s4 + $0x2f0] sm:$0xff]  ;;  %9390 = vst [vmem:[#allocation61_spill] sm:$0xff] %v7290_v49 }
  0x6a   :  { %604 = vmatprep.mubr.f32.mxu0 %v9360_v62  ;;  %4498 = vmatprep.subr.bf16.mxu1 %v7239_v24  ;;  %v7308_v14 = vpack.c.bf16 %v819_v45, %v813_v38  ;;  %v7310_v24 = vpack.c.bf16 %v889_v28, %v883_v32  ;;  %v895_v45 = vld [vmem:[%s9130_s4 + $0x550] sm:$0xff]  ;;  %v901_v38 = vld [vmem:[%s9130_s4 + $0x580] sm:$0xff]  ;;  %v7329_v32 = vpack.c.bf16 %v902_v56, %v896_v63  ;;  %v838_v28 = vld [vmem:[%s9130_s4 + $0x388] sm:$0xff] }
  0x6b   :  { %4458 = vmatprep.subr.bf16.mxu0 %v7251_v26  ;;  %v7317_v26 = vpack.c.bf16 %v832_v7, %v826_v16  ;;  %v844_v16 = vld [vmem:[%s9130_s4 + $0x3b8] sm:$0xff]  ;;  %v914_v63 = vld [vmem:[%s9130_s4 + $0x5e8] sm:$0xff] }
  0x6c   :  { %4115 = vmatmul.mubr.msk.f32.gmra.mrb[50].mxu0 %vm97_vm0, %v6742_v51  ;;  %9391 = vst [vmem:[#allocation62_spill] sm:$0xff] %v7308_v14  ;;  %9392 = vst [vmem:[#allocation63_spill] sm:$0xff] %v7310_v24  ;;  %v825_v51 = vld [vmem:[%s9130_s4 + $0x320] sm:$0xff]  ;;  %v908_v7 = vld [vmem:[%s9130_s4 + $0x5b8] sm:$0xff] }
  0x6d   :  { %4500 = vmatpush1.bf16.msra.mxu1 %v7269_v4  ;;  %4460 = vmatpush1.bf16.msra.mxu0 %v7271_v19  ;;  %9393 = vst [vmem:[#allocation64_spill] sm:$0xff] %v7317_v26  ;;  %v831_v4 = vld [vmem:[%s9130_s4 + $0x350] sm:$0xff]  ;;  %9394 = vst [vmem:[#allocation65_spill] sm:$0xff] %v7329_v32 }
  0x6e   :  { %610 = vmatprep.mubr.f32.mxu0 %v9360_v62  ;;  %4502 = vmatprep.subr.bf16.mxu1 %v7278_v3  ;;  %v7347_v56 = vpack.c.bf16 %v831_v4, %v825_v51  ;;  %v7349_v3 = vpack.c.bf16 %v901_v38, %v895_v45  ;;  %v907_v4 = vld [vmem:[%s9130_s4 + $0x5b0] sm:$0xff]  ;;  %v913_v51 = vld [vmem:[%s9130_s4 + $0x5e0] sm:$0xff]  ;;  %v7368_v45 = vpack.c.bf16 %v914_v63, %v908_v7  ;;  %v850_v38 = vld [vmem:[%s9130_s4 + $0x3e8] sm:$0xff] }
  0x6f   :  { %4462 = vmatprep.subr.bf16.mxu0 %v7290_v49  ;;  %v7356_v49 = vpack.c.bf16 %v844_v16, %v838_v28  ;;  %v856_v28 = vld [vmem:[%s9130_s4 + $0x418] sm:$0xff]  ;;  %v849_v63 = vld [vmem:[%s9130_s4 + $0x3e0] sm:$0xff] }
  0x70   :  { %4116 = vmatmul.mubr.msk.f32.gmra.mrb[52].mxu0 %vm97_vm0, %v6398_v13  ;;  %9395 = vst [vmem:[#allocation66_spill] sm:$0xff] %v7349_v3  ;;  %v837_v13 = vld [vmem:[%s9130_s4 + $0x380] sm:$0xff]  ;;  %9396 = vst [vmem:[#allocation67_spill] sm:$0xff] %v7368_v45  ;;  %v7386_v7 = vpack.c.bf16 %v856_v28, %v850_v38  ;;  %v874_v28 = vld [vmem:[%s9130_s4 + $0x4a8] sm:$0xff] }
  0x71   :  { %4504 = vmatpush1.bf16.msra.mxu1 %v7308_v14  ;;  %4464 = vmatpush1.bf16.msra.mxu0 %v7310_v24  ;;  %v843_v14 = vld [vmem:[%s9130_s4 + $0x3b0] sm:$0xff]  ;;  %v861_v38 = vld [vmem:[%s9130_s4 + $0x440] sm:$0xff] }
  0x72   :  { %616 = vmatprep.mubr.f32.mxu0 %v9360_v62  ;;  %4506 = vmatprep.subr.bf16.mxu1 %v7317_v26  ;;  %v7380_v16 = vpack.c.bf16 %v843_v14, %v837_v13  ;;  %v7382_v26 = vpack.c.bf16 %v913_v51, %v907_v4  ;;  %9399 = vst [vmem:[#allocation70_spill] sm:$0xff] %v7386_v7  ;;  %v862_v14 = vld [vmem:[%s9130_s4 + $0x448] sm:$0xff]  ;;  %v868_v13 = vld [vmem:[%s9130_s4 + $0x478] sm:$0xff] }
  0x73   :  { %4466 = vmatprep.subr.bf16.mxu0 %v7329_v32  ;;  %v7409_v51 = vpack.c.bf16 %v868_v13, %v862_v14  ;;  %v873_v13 = vld [vmem:[%s9130_s4 + $0x4a0] sm:$0xff] }
  0x74   :  { %4117 = vmatmul.mubr.msk.f32.gmra.mrb[54].mxu0 %vm97_vm0, %v6433_v25  ;;  %9397 = vst [vmem:[#allocation68_spill] sm:$0xff] %v7380_v16  ;;  %9398 = vst [vmem:[#allocation69_spill] sm:$0xff] %v7382_v26  ;;  %v855_v25 = vld [vmem:[%s9130_s4 + $0x410] sm:$0xff] }
  0x75   :  { %4508 = vmatpush1.bf16.msra.mxu1 %v7347_v56  ;;  %4468 = vmatpush1.bf16.msra.mxu0 %v7349_v3  ;;  %v7405_v4 = vpack.c.bf16 %v855_v25, %v849_v63  ;;  %9401 = vst [vmem:[#allocation72_spill] sm:$0xff] %v7409_v51  ;;  %v880_v63 = vld [vmem:[%s9130_s4 + $0x4d8] sm:$0xff] }
  0x76   :  { %622 = vmatprep.mubr.f32.mxu0 %v9360_v62  ;;  %4510 = vmatprep.subr.bf16.mxu1 %v7356_v49  ;;  %v7430_v14 = vpack.c.bf16 %v880_v63, %v874_v28  ;;  %v885_v63 = vld [vmem:[%s9130_s4 + $0x500] sm:$0xff] }
  0x77   :  { %4470 = vmatprep.subr.bf16.mxu0 %v7368_v45  ;;  %9400 = vst [vmem:[#allocation71_spill] sm:$0xff] %v7405_v4 }
  0x78   :  { %4118 = vmatmul.mubr.msk.f32.gmra.mrb[56].mxu0 %vm97_vm0, %v6451_v27  ;;  %v867_v27 = vld [vmem:[%s9130_s4 + $0x470] sm:$0xff]  ;;  %9403 = vst [vmem:[#allocation74_spill] sm:$0xff] %v7430_v14 }
  0x79   :  { %4512 = vmatpush1.bf16.msra.mxu1 %v7380_v16  ;;  %4472 = vmatpush1.bf16.msra.mxu0 %v7382_v26  ;;  %v7427_v25 = vpack.c.bf16 %v867_v27, %v861_v38  ;;  %v892_v38 = vld [vmem:[%s9130_s4 + $0x538] sm:$0xff] }
  0x7a   :  { %1072 = vmatprep.mubr.f32.mxu0 %v9360_v62  ;;  %4514 = vmatprep.subr.bf16.mxu1 %v7386_v7  ;;  %v879_v7 = vld [vmem:[%s9130_s4 + $0x4d0] sm:$0xff] }
  0x7b   :  { %4538 = vmatprep.subr.bf16.mxu0 %v6422_v23  ;;  %9402 = vst [vmem:[#allocation73_spill] sm:$0xff] %v7427_v25  ;;  %v7448_v27 = vpack.c.bf16 %v879_v7, %v873_v13  ;;  %v904_v7 = vld [vmem:[%s9130_s4 + $0x598] sm:$0xff] }
  0x7c   :  { %1073 = vmatmul.mubr.f32.vlgmr.msra.gmra.mrb[58].mxu0 %v9360_v62 }
  0x7d   :  { %4516 = vmatpush1.bf16.msra.mxu1 %v7405_v4  ;;  %1078 = vmatprep.mubr.f32.mxu0 %v9360_v62  ;;  %v886_v4 = vld [vmem:[%s9130_s4 + $0x508] sm:$0xff]  ;;  %9404 = vst [vmem:[#allocation75_spill] sm:$0xff] %v7448_v27 }
  0x7e   :  { %4518 = vmatprep.subr.bf16.mxu1 %v7409_v51  ;;  %4540 = vmatpush1.bf16.msra.mxu0 %v6476_v33  ;;  %v7451_v28 = vpack.c.bf16 %v892_v38, %v886_v4  ;;  %v891_v51 = vld [vmem:[%s9130_s4 + $0x530] sm:$0xff]  ;;  %v897_v38 = vld [vmem:[%s9130_s4 + $0x560] sm:$0xff] }
  0x7f   :  { %4542 = vmatprep.subr.bf16.mxu0 %v6478_v34  ;;  %v7468_v4 = vpack.c.bf16 %v891_v51, %v885_v63  ;;  %v916_v51 = vld [vmem:[%s9130_s4 + $0x5f8] sm:$0xff] }
  0x80   :  { %1079 = vmatmul.mubr.f32.gmra.mrb[60].mxu0 %v9360_v62  ;;  %9405 = vst [vmem:[#allocation76_spill] sm:$0xff] %v7451_v28 }
  0x81   :  { %4520 = vmatpush1.bf16.msra.mxu1 %v7427_v25  ;;  %v898_v25 = vld [vmem:[%s9130_s4 + $0x568] sm:$0xff]  ;;  %9406 = vst [vmem:[#allocation77_spill] sm:$0xff] %v7468_v4 }
  0x82   :  { %4522 = vmatprep.subr.bf16.mxu1 %v7430_v14  ;;  %4544 = vmatpush1.bf16.msra.mxu0 %v6503_v40  ;;  %v7471_v13 = vpack.c.bf16 %v904_v7, %v898_v25  ;;  %v903_v14 = vld [vmem:[%s9130_s4 + $0x590] sm:$0xff]  ;;  %v909_v7 = vld [vmem:[%s9130_s4 + $0x5c0] sm:$0xff] }
  0x83   :  { %4546 = vmatprep.subr.bf16.mxu0 %v6507_v41  ;;  %v7488_v25 = vpack.c.bf16 %v903_v14, %v897_v38  ;;  %v9414_v38 = vld [vmem:[#allocation41_spill] sm:$0xff] }
  0x84   :  { %9407 = vst [vmem:[#allocation78_spill] sm:$0xff] %v7471_v13 }
  0x85   :  { %4524 = vmatpush1.bf16.msra.mxu1 %v7448_v27  ;;  %v910_v27 = vld [vmem:[%s9130_s4 + $0x5c8] sm:$0xff]  ;;  %9408 = vst [vmem:[#allocation79_spill] sm:$0xff] %v7488_v25 }
  0x86   :  { %4526 = vmatprep.subr.bf16.mxu1 %v7451_v28  ;;  %4548 = vmatpush1.bf16.msra.mxu0 %v6532_v47  ;;  %v7491_v63 = vpack.c.bf16 %v916_v51, %v910_v27  ;;  %v915_v28 = vld [vmem:[%s9130_s4 + $0x5f0] sm:$0xff] }
  0x87   :  { %4550 = vmatprep.subr.bf16.mxu0 %v6542_v50  ;;  %v7502_v14 = vpack.c.bf16 %v915_v28, %v909_v7  ;;  %v9412_v27 = vld [vmem:[#allocation18_spill] sm:$0xff]  ;;  %v9413_v28 = vld [vmem:[#allocation20_spill] sm:$0xff] }
  0x88   :  { %9409 = vst [vmem:[#allocation80_spill] sm:$0xff] %v7491_v63  ;;  %v9415_v51 = vld [vmem:[#allocation22_spill] sm:$0xff]  ;;  %v9416_v7 = vld [vmem:[#allocation24_spill] sm:$0xff] }
  0x89   :  { %4528 = vmatpush1.bf16.msra.mxu1 %v7468_v4  ;;  %9410 = vst [vmem:[#allocation81_spill] sm:$0xff] %v7502_v14 }
  0x8a   :  { %4530 = vmatprep.subr.bf16.mxu1 %v7471_v13  ;;  %4552 = vmatpush1.bf16.msra.mxu0 %v6569_v57 }
  0x8b   :  { %4554 = vmatprep.subr.bf16.mxu0 %v6573_v58 }
  0x8d   :  { %4532 = vmatpush1.bf16.msra.mxu1 %v7488_v25 }
  0x8e   :  { %4534 = vmatprep.subr.bf16.mxu1 %v7491_v63  ;;  %4556 = vmatpush1.bf16.msra.mxu0 %v6599_v0 }
  0x8f   :  { %4558 = vmatprep.subr.bf16.mxu0 %v6603_v1 }
  0x91   :  { %4536 = vmatpush1.bf16.msra.mxu1 %v7502_v14 }
  0x92   :  { %4602 = vmatprep.subr.bf16.mxu1 %v6556_v55  ;;  %4560 = vmatpush1.bf16.msra.mxu0 %v6628_v8 }
  0x93   :  { %4562 = vmatprep.subr.bf16.mxu0 %v6632_v9 }
  0x94   :  { %1150 = vmatmul.mubr.f32.vlgmr.msra.gmra.mrb[42].mxu1 %v9360_v62 }
  0x95   :  { %1155 = vmatprep.mubr.f32.mxu1 %v9360_v62  ;;  %4604 = vmatpush1.bf16.msra.mxu1 %v6782_v10 }
  0x96   :  { %4606 = vmatprep.subr.bf16.mxu1 %v6800_v21  ;;  %4564 = vmatpush1.bf16.msra.mxu0 %v6657_v17 }
  0x97   :  { %4566 = vmatprep.subr.bf16.mxu0 %v6661_v18 }
  0x98   :  { %1156 = vmatmul.mubr.f32.gmra.mrb[44].mxu1 %v9360_v62  ;;  %v9411_v62 = vld [vmem:[#allocation37_spill] sm:$0xff] }
  0x99   :  { %4608 = vmatpush1.bf16.msra.mxu1 %v6822_v44 }
  0x9a   :  { %4610 = vmatprep.subr.bf16.mxu1 %v6842_v59  ;;  %4568 = vmatpush1.bf16.msra.mxu0 %v6686_v29 }
  0x9b   :  { %4570 = vmatprep.subr.bf16.mxu0 %v6690_v30 }
  0x9d   :  { %4612 = vmatpush1.bf16.msra.mxu1 %v6864_v5 }
  0x9e   :  { %4614 = vmatprep.subr.bf16.mxu1 %v6884_v22  ;;  %4572 = vmatpush1.bf16.msra.mxu0 %v6715_v42 }
  0x9f   :  { %4574 = vmatprep.subr.bf16.mxu0 %v6719_v43 }
  0xa1   :  { %4616 = vmatpush1.bf16.msra.mxu1 %v6906_v48 }
  0xa2   :  { %4618 = vmatprep.subr.bf16.mxu1 %v6926_v2  ;;  %4576 = vmatpush1.bf16.msra.mxu0 %v6744_v52 }
  0xa3   :  { %4578 = vmatprep.subr.bf16.mxu0 %v6751_v54 }
  0xa5   :  { %4620 = vmatpush1.bf16.msra.mxu1 %v6948_v35 }
  0xa6   :  { %4622 = vmatprep.subr.bf16.mxu1 %v6968_v60  ;;  %4580 = vmatpush1.bf16.msra.mxu0 %v6780_v6  ;;  %v9421_v60 = vld [vmem:[#allocation30_spill] sm:$0xff] }
  0xa7   :  { %4582 = vmatprep.subr.bf16.mxu0 %v6798_v20 }
  0xa9   :  { %4624 = vmatpush1.bf16.msra.mxu1 %v6990_v15  ;;  %v9418_v15 = vld [vmem:[#allocation26_spill] sm:$0xff] }
  0xaa   :  { %4626 = vmatprep.subr.bf16.mxu1 %v7010_v12  ;;  %4584 = vmatpush1.bf16.msra.mxu0 %v6820_v37  ;;  %v9417_v12 = vld [vmem:[#allocation45_spill] sm:$0xff] }
  0xab   :  { %4586 = vmatprep.subr.bf16.mxu0 %v6840_v53 }
  0xad   :  { %4628 = vmatpush1.bf16.msra.mxu1 %v7032_v11  ;;  %v9419_v11 = vld [vmem:[#allocation28_spill] sm:$0xff] }
  0xae   :  { %4630 = vmatprep.subr.bf16.mxu1 %v9411_v62  ;;  %4588 = vmatpush1.bf16.msra.mxu0 %v9412_v27  ;;  %v9420_v62 = vld [vmem:[#allocation49_spill] sm:$0xff] }
  0xaf   :  { %4590 = vmatprep.subr.bf16.mxu0 %v9413_v28 }
  0xb1   :  { %4632 = vmatpush1.bf16.msra.mxu1 %v7073_v61  ;;  %v9422_v61 = vld [vmem:[#allocation32_spill] sm:$0xff] }
  0xb2   :  { %4634 = vmatprep.subr.bf16.mxu1 %v9414_v38  ;;  %4592 = vmatpush1.bf16.msra.mxu0 %v9415_v51  ;;  %v9423_v38 = vld [vmem:[#allocation53_spill] sm:$0xff] }
  0xb3   :  { %4594 = vmatprep.subr.bf16.mxu0 %v9416_v7 }
  0xb5   :  { %4636 = vmatpush1.bf16.msra.mxu1 %v7114_v31  ;;  %v9424_v31 = vld [vmem:[#allocation57_spill] sm:$0xff] }
  0xb6   :  { %4638 = vmatprep.subr.bf16.mxu1 %v9417_v12  ;;  %4596 = vmatpush1.bf16.msra.mxu0 %v9418_v15  ;;  %v9425_v12 = vld [vmem:[#allocation61_spill] sm:$0xff] }
  0xb7   :  { %4598 = vmatprep.subr.bf16.mxu0 %v9419_v11 }
  0xb9   :  { %4640 = vmatpush1.bf16.msra.mxu1 %v7154_v36 }
  0xba   :  { %4642 = vmatprep.subr.bf16.mxu1 %v9420_v62  ;;  %4600 = vmatpush1.bf16.msra.mxu0 %v9421_v60  ;;  %v67_v62 = vlaneseq }
  0xbb   :  { %4666 = vmatprep.subr.bf16.mxu0 %v9422_v61 }
  0xbd   :  { %4644 = vmatpush1.bf16.msra.mxu1 %v7193_v39  ;;  %v7564_v39 = vshrl.u32 %v67_v62, 7 }
  0xbe   :  { %4646 = vmatprep.subr.bf16.mxu1 %v9423_v38 }
  0xc1   :  { %4648 = vmatpush1.bf16.msra.mxu1 %v7232_v46 }
  0xc2   :  { %4650 = vmatprep.subr.bf16.mxu1 %v9424_v31  ;;  %v9247_v31 = vsub.s32 0, %v7564_v39 }
  0xc5   :  { %4652 = vmatpush1.bf16.msra.mxu1 %v7271_v19 }
  0xc6   :  { %4654 = vmatprep.subr.bf16.mxu1 %v9425_v12  ;;  %v7572_v12 = vld [vmem:[%s9131_s3] sm:$0x3f] }
  0xc9   :  { %4656 = vmatpush1.bf16.msra.mxu1 %v7310_v24 }
  0xca   :  { %4658 = vmatprep.subr.bf16.mxu1 %v7329_v32  ;;  %v9250_v32 = vsub.s32 1, %v7564_v39 }
  0xcc   :  { %v7583_v62 = vrot.slane %v7572_v12, %v9250_v32 }
  0xcd   :  { %4660 = vmatpush1.bf16.msra.mxu1 %v7349_v3  ;;  %v7578_v3 = vrot.slane %v7572_v12, %v9247_v31 }
  0xce   :  { %4662 = vmatprep.subr.bf16.mxu1 %v7368_v45 }
  0xd1   :  { %4664 = vmatpush1.bf16.msra.mxu1 %v7382_v26 }
  0xd2   :  { %4730 = vmatprep.subr.bf16.mxu1 %v6422_v23 }
  0xdb   :  { %v290_v23 = vpop.f32.mrb[0].mxu1  ;;  %v7585_v26 = vpop.f32.mrb[0].mxu0 }
  0xdc   :  { %v7588_v45 = vadd.f32 %v290_v23, %v7578_v3  ;;  %v292_v24 = vpop.f32.mrb[1].mxu1  ;;  %v7590_v19 = vpop.f32.mrb[1].mxu0  ;;  %v81_v23 = vsub.s32 3, %v7564_v39 }
  0xdd   :  { %v7593_v46 = vadd.f32 %v292_v24, %v7583_v62 }
  0xde   :  { %9426 = vst [vmem:[#allocation82_spill] sm:$0xff] %v7588_v45 }
  0xdf   :  { %9427 = vst [vmem:[#allocation83_spill] sm:$0xff] %v7593_v46  ;;  %v296_v38 = vpop.f32.mrb[2].mxu1  ;;  %v7595_v31 = vpop.f32.mrb[2].mxu0 }
  0xe0   :  { %v7598_v36 = vadd.f32 %v296_v38, %v7578_v3  ;;  %v298_v32 = vpop.f32.mrb[3].mxu1  ;;  %v7600_v35 = vpop.f32.mrb[3].mxu0 }
  0xe1   :  { %v7603_v2 = vadd.f32 %v298_v32, %v7583_v62 }
  0xe2   :  { %9428 = vst [vmem:[#allocation84_spill] sm:$0xff] %v7598_v36  ;;  %v7616_v36 = vrot.slane %v7572_v12, %v81_v23  ;;  %v77_v23 = vsub.s32 2, %v7564_v39 }
  0xe3   :  { %9429 = vst [vmem:[#allocation85_spill] sm:$0xff] %v7603_v2  ;;  %v302_v45 = vpop.f32.mrb[4].mxu1  ;;  %v224_v48 = vpop.f32.mrb[4].mxu0 }
  0xe4   :  { %v7607_v22 = vadd.f32 %v302_v45, %v7578_v3  ;;  %v304_v24 = vpop.f32.mrb[5].mxu1  ;;  %v7610_v46 = vadd.f32 %v224_v48, %v7578_v3  ;;  %v226_v5 = vpop.f32.mrb[5].mxu0 }
  0xe5   :  { %v7613_v38 = vadd.f32 %v304_v24, %v7583_v62  ;;  %v7619_v32 = vadd.f32 %v226_v5, %v7583_v62 }
  0xe6   :  { %9430 = vst [vmem:[#allocation86_spill] sm:$0xff] %v7607_v22  ;;  %9431 = vst [vmem:[#allocation87_spill] sm:$0xff] %v7610_v46 }
  0xe7   :  { %9432 = vst [vmem:[#allocation88_spill] sm:$0xff] %v7613_v38  ;;  %9433 = vst [vmem:[#allocation89_spill] sm:$0xff] %v7619_v32  ;;  %v7621_v2 = vpop.f32.mrb[6].mxu1  ;;  %v230_v59 = vpop.f32.mrb[6].mxu0 }
  0xe8   :  { %v375_v44 = vpop.f32.mrb[7].mxu1  ;;  %v7624_v45 = vadd.f32 %v230_v59, %v7578_v3  ;;  %v232_v22 = vpop.f32.mrb[7].mxu0 }
  0xe9   :  { %v7627_v48 = vadd.f32 %v375_v44, %v7616_v36  ;;  %v7630_v24 = vadd.f32 %v232_v22, %v7583_v62  ;;  %v7645_v44 = vrot.slane %v7572_v12, %v77_v23 }
  0xea   :  { %9434 = vst [vmem:[#allocation90_spill] sm:$0xff] %v7624_v45 }
  0xeb   :  { %9435 = vst [vmem:[#allocation91_spill] sm:$0xff] %v7627_v48  ;;  %9436 = vst [vmem:[#allocation92_spill] sm:$0xff] %v7630_v24  ;;  %v7633_v38 = vpop.f32.mrb[8].mxu1  ;;  %v236_v5 = vpop.f32.mrb[8].mxu0 }
  0xec   :  { %v381_v32 = vpop.f32.mrb[9].mxu1  ;;  %v7636_v46 = vadd.f32 %v236_v5, %v7578_v3  ;;  %v238_v21 = vpop.f32.mrb[9].mxu0 }
  0xed   :  { %v7639_v59 = vadd.f32 %v381_v32, %v7616_v36  ;;  %v7642_v45 = vadd.f32 %v238_v21, %v7583_v62 }
  0xee   :  { %9437 = vst [vmem:[#allocation93_spill] sm:$0xff] %v7636_v46 }
  0xef   :  { %9438 = vst [vmem:[#allocation94_spill] sm:$0xff] %v7639_v59  ;;  %9439 = vst [vmem:[#allocation95_spill] sm:$0xff] %v7642_v45  ;;  %v385_v22 = vpop.f32.mrb[10].mxu1  ;;  %v242_v48 = vpop.f32.mrb[10].mxu0 }
  0xf0   :  { %v7648_v24 = vadd.f32 %v385_v22, %v7645_v44  ;;  %v387_v10 = vpop.f32.mrb[11].mxu1  ;;  %v7651_v61 = vadd.f32 %v242_v48, %v7578_v3  ;;  %v244_v5 = vpop.f32.mrb[11].mxu0 }
  0xf1   :  { %v7654_v46 = vadd.f32 %v387_v10, %v7616_v36  ;;  %v7657_v32 = vadd.f32 %v244_v5, %v7583_v62 }
  0xf2   :  { %9440 = vst [vmem:[#allocation96_spill] sm:$0xff] %v7648_v24  ;;  %9441 = vst [vmem:[#allocation97_spill] sm:$0xff] %v7651_v61 }
  0xf3   :  { %9442 = vst [vmem:[#allocation98_spill] sm:$0xff] %v7654_v46  ;;  %9443 = vst [vmem:[#allocation99_spill] sm:$0xff] %v7657_v32  ;;  %v391_v21 = vpop.f32.mrb[12].mxu1  ;;  %v248_v59 = vpop.f32.mrb[12].mxu0 }
  0xf4   :  { %v7660_v23 = vadd.f32 %v391_v21, %v7645_v44  ;;  %v393_v45 = vpop.f32.mrb[13].mxu1  ;;  %v7663_v22 = vadd.f32 %v248_v59, %v7578_v3  ;;  %v250_v24 = vpop.f32.mrb[13].mxu0 }
  0xf5   :  { %v7666_v48 = vadd.f32 %v393_v45, %v7616_v36  ;;  %v7669_v61 = vadd.f32 %v250_v24, %v7583_v62 }
  0xf6   :  { %9444 = vst [vmem:[#allocation100_spill] sm:$0xff] %v7660_v23  ;;  %9445 = vst [vmem:[#allocation101_spill] sm:$0xff] %v7663_v22 }
  0xf7   :  { %9446 = vst [vmem:[#allocation102_spill] sm:$0xff] %v7666_v48  ;;  %9447 = vst [vmem:[#allocation103_spill] sm:$0xff] %v7669_v61  ;;  %v397_v10 = vpop.f32.mrb[14].mxu1  ;;  %v254_v46 = vpop.f32.mrb[14].mxu0 }
  0xf8   :  { %v7672_v5 = vadd.f32 %v397_v10, %v7645_v44  ;;  %v399_v32 = vpop.f32.mrb[15].mxu1  ;;  %v7675_v21 = vadd.f32 %v254_v46, %v7578_v3  ;;  %v256_v23 = vpop.f32.mrb[15].mxu0 }
  0xf9   :  { %v7678_v59 = vadd.f32 %v399_v32, %v7616_v36  ;;  %v7681_v22 = vadd.f32 %v256_v23, %v7583_v62 }
  0xfa   :  { %9448 = vst [vmem:[#allocation104_spill] sm:$0xff] %v7672_v5  ;;  %9449 = vst [vmem:[#allocation105_spill] sm:$0xff] %v7675_v21 }
  0xfb   :  { %9450 = vst [vmem:[#allocation106_spill] sm:$0xff] %v7678_v59  ;;  %9451 = vst [vmem:[#allocation107_spill] sm:$0xff] %v7681_v22  ;;  %v403_v45 = vpop.f32.mrb[16].mxu1  ;;  %v260_v48 = vpop.f32.mrb[16].mxu0 }
  0xfc   :  { %v7684_v24 = vadd.f32 %v403_v45, %v7645_v44  ;;  %v405_v61 = vpop.f32.mrb[17].mxu1  ;;  %v7687_v10 = vadd.f32 %v260_v48, %v7578_v3  ;;  %v262_v5 = vpop.f32.mrb[17].mxu0 }
  0xfd   :  { %v7690_v46 = vadd.f32 %v405_v61, %v7616_v36  ;;  %v7693_v21 = vadd.f32 %v262_v5, %v7583_v62 }
  0xfe   :  { %9452 = vst [vmem:[#allocation108_spill] sm:$0xff] %v7684_v24  ;;  %9453 = vst [vmem:[#allocation109_spill] sm:$0xff] %v7687_v10 }
  0xff   :  { %9454 = vst [vmem:[#allocation110_spill] sm:$0xff] %v7690_v46  ;;  %9455 = vst [vmem:[#allocation111_spill] sm:$0xff] %v7693_v21  ;;  %v409_v32 = vpop.f32.mrb[18].mxu1  ;;  %v266_v59 = vpop.f32.mrb[18].mxu0 }
 0x100   :  { %v7696_v23 = vadd.f32 %v409_v32, %v7645_v44  ;;  %v411_v22 = vpop.f32.mrb[19].mxu1  ;;  %v7699_v45 = vadd.f32 %v266_v59, %v7578_v3  ;;  %v268_v24 = vpop.f32.mrb[19].mxu0 }
 0x101   :  { %v7702_v48 = vadd.f32 %v411_v22, %v7616_v36  ;;  %v7705_v10 = vadd.f32 %v268_v24, %v7583_v62 }
 0x102   :  { %9456 = vst [vmem:[#allocation112_spill] sm:$0xff] %v7696_v23  ;;  %9457 = vst [vmem:[#allocation113_spill] sm:$0xff] %v7699_v45 }
 0x103   :  { %9458 = vst [vmem:[#allocation114_spill] sm:$0xff] %v7702_v48  ;;  %9459 = vst [vmem:[#allocation115_spill] sm:$0xff] %v7705_v10  ;;  %v415_v61 = vpop.f32.mrb[20].mxu1  ;;  %v272_v46 = vpop.f32.mrb[20].mxu0 }
 0x104   :  { %v7708_v5 = vadd.f32 %v415_v61, %v7645_v44  ;;  %v417_v21 = vpop.f32.mrb[21].mxu1  ;;  %v7711_v32 = vadd.f32 %v272_v46, %v7578_v3  ;;  %v274_v23 = vpop.f32.mrb[21].mxu0  ;;  %v85_v46 = vsub.s32 4, %v7564_v39 }
 0x105   :  { %v7714_v59 = vadd.f32 %v417_v21, %v7616_v36  ;;  %v7717_v45 = vadd.f32 %v274_v23, %v7583_v62  ;;  %v89_v23 = vsub.s32 5, %v7564_v39 }
 0x106   :  { %9460 = vst [vmem:[#allocation116_spill] sm:$0xff] %v7708_v5  ;;  %9461 = vst [vmem:[#allocation117_spill] sm:$0xff] %v7711_v32  ;;  %v7740_v60 = vrot.slane %v7572_v12, %v85_v46 }
 0x107   :  { %9462 = vst [vmem:[#allocation118_spill] sm:$0xff] %v7714_v59  ;;  %9463 = vst [vmem:[#allocation119_spill] sm:$0xff] %v7717_v45  ;;  %v421_v22 = vpop.f32.mrb[22].mxu1  ;;  %v278_v48 = vpop.f32.mrb[22].mxu0 }
 0x108   :  { %v7720_v24 = vadd.f32 %v421_v22, %v7645_v44  ;;  %v423_v10 = vpop.f32.mrb[23].mxu1  ;;  %v7723_v61 = vadd.f32 %v278_v48, %v7578_v3  ;;  %v280_v5 = vpop.f32.mrb[23].mxu0 }
 0x109   :  { %v7727_v32 = vadd.f32 %v423_v10, %v7616_v36  ;;  %v7730_v21 = vadd.f32 %v280_v5, %v7583_v62 }
 0x10a   :  { %9464 = vst [vmem:[#allocation120_spill] sm:$0xff] %v7720_v24  ;;  %9465 = vst [vmem:[#allocation121_spill] sm:$0xff] %v7723_v61 }
 0x10b   :  { %9466 = vst [vmem:[#allocation122_spill] sm:$0xff] %v7727_v32  ;;  %9467 = vst [vmem:[#allocation123_spill] sm:$0xff] %v7730_v21  ;;  %v427_v45 = vpop.f32.mrb[24].mxu1  ;;  %v284_v59 = vpop.f32.mrb[24].mxu0  ;;  %v7749_v21 = vrot.slane %v7572_v12, %v89_v23 }
 0x10c   :  { %v7734_v22 = vadd.f32 %v427_v45, %v7645_v44  ;;  %v429_v24 = vpop.f32.mrb[25].mxu1  ;;  %v7737_v48 = vadd.f32 %v284_v59, %v7578_v3  ;;  %v286_v61 = vpop.f32.mrb[25].mxu0 }
 0x10d   :  { %v7743_v10 = vadd.f32 %v429_v24, %v7616_v36  ;;  %v7746_v5 = vadd.f32 %v286_v61, %v7583_v62 }
 0x10e   :  { %9468 = vst [vmem:[#allocation124_spill] sm:$0xff] %v7734_v22  ;;  %9469 = vst [vmem:[#allocation125_spill] sm:$0xff] %v7737_v48 }
 0x10f   :  { %9470 = vst [vmem:[#allocation126_spill] sm:$0xff] %v7743_v10  ;;  %9471 = vst [vmem:[#allocation127_spill] sm:$0xff] %v7746_v5  ;;  %v433_v32 = vpop.f32.mrb[26].mxu1  ;;  %v534_v45 = vpop.f32.mrb[26].mxu0 }
 0x110   :  { %v7752_v22 = vadd.f32 %v433_v32, %v7645_v44  ;;  %v435_v59 = vpop.f32.mrb[27].mxu1  ;;  %v7755_v48 = vadd.f32 %v534_v45, %v7740_v60  ;;  %v536_v46 = vpop.f32.mrb[27].mxu0 }
 0x111   :  { %v7758_v55 = vadd.f32 %v435_v59, %v7616_v36  ;;  %v7761_v24 = vadd.f32 %v536_v46, %v7749_v21 }
 0x112   :  { %9472 = vst [vmem:[#allocation128_spill] sm:$0xff] %v7752_v22  ;;  %9473 = vst [vmem:[#allocation129_spill] sm:$0xff] %v7755_v48 }
 0x113   :  { %9474 = vst [vmem:[#allocation130_spill] sm:$0xff] %v7758_v55  ;;  %9475 = vst [vmem:[#allocation131_spill] sm:$0xff] %v7761_v24  ;;  %v439_v61 = vpop.f32.mrb[28].mxu1  ;;  %v540_v5 = vpop.f32.mrb[28].mxu0 }
 0x114   :  { %v7764_v12 = vadd.f32 %v439_v61, %v7645_v44  ;;  %v441_v23 = vpop.f32.mrb[29].mxu1  ;;  %v7767_v32 = vadd.f32 %v540_v5, %v7740_v60  ;;  %v542_v22 = vpop.f32.mrb[29].mxu0 }
 0x115   :  { %v7770_v45 = vadd.f32 %v441_v23, %v7616_v36  ;;  %v7773_v48 = vadd.f32 %v542_v22, %v7749_v21 }
 0x116   :  { %9476 = vst [vmem:[#allocation132_spill] sm:$0xff] %v7764_v12  ;;  %9477 = vst [vmem:[#allocation133_spill] sm:$0xff] %v7767_v32 }
 0x117   :  { %9478 = vst [vmem:[#allocation134_spill] sm:$0xff] %v7770_v45  ;;  %9479 = vst [vmem:[#allocation135_spill] sm:$0xff] %v7773_v48  ;;  %v445_v59 = vpop.f32.mrb[30].mxu1  ;;  %v546_v10 = vpop.f32.mrb[30].mxu0 }
 0x118   :  { %v7776_v46 = vadd.f32 %v445_v59, %v7645_v44  ;;  %v447_v24 = vpop.f32.mrb[31].mxu1  ;;  %v7779_v61 = vadd.f32 %v546_v10, %v7740_v60  ;;  %v548_v12 = vpop.f32.mrb[31].mxu0 }
 0x119   :  { %v7782_v5 = vadd.f32 %v447_v24, %v7616_v36  ;;  %v7785_v32 = vadd.f32 %v548_v12, %v7749_v21 }
 0x11a   :  { %9480 = vst [vmem:[#allocation136_spill] sm:$0xff] %v7776_v46  ;;  %9481 = vst [vmem:[#allocation137_spill] sm:$0xff] %v7779_v61 }
 0x11b   :  { %9482 = vst [vmem:[#allocation138_spill] sm:$0xff] %v7782_v5  ;;  %9483 = vst [vmem:[#allocation139_spill] sm:$0xff] %v7785_v32  ;;  %v451_v23 = vpop.f32.mrb[32].mxu1  ;;  %v552_v45 = vpop.f32.mrb[32].mxu0 }
 0x11c   :  { %v7788_v22 = vadd.f32 %v451_v23, %v7645_v44  ;;  %v453_v48 = vpop.f32.mrb[33].mxu1  ;;  %v7791_v59 = vadd.f32 %v552_v45, %v7740_v60  ;;  %v554_v46 = vpop.f32.mrb[33].mxu0 }
 0x11d   :  { %v7794_v10 = vadd.f32 %v453_v48, %v7616_v36  ;;  %v7797_v61 = vadd.f32 %v554_v46, %v7749_v21 }
 0x11e   :  { %9484 = vst [vmem:[#allocation140_spill] sm:$0xff] %v7788_v22  ;;  %9485 = vst [vmem:[#allocation141_spill] sm:$0xff] %v7791_v59 }
 0x11f   :  { %9486 = vst [vmem:[#allocation142_spill] sm:$0xff] %v7794_v10  ;;  %9487 = vst [vmem:[#allocation143_spill] sm:$0xff] %v7797_v61  ;;  %v457_v24 = vpop.f32.mrb[34].mxu1  ;;  %v558_v55 = vpop.f32.mrb[34].mxu0 }
 0x120   :  { %v7800_v12 = vadd.f32 %v457_v24, %v7645_v44  ;;  %v459_v32 = vpop.f32.mrb[35].mxu1  ;;  %v7803_v23 = vadd.f32 %v558_v55, %v7740_v60  ;;  %v560_v22 = vpop.f32.mrb[35].mxu0  ;;  %v213_v55 = vadd.f32 %v7585_v26, %v7578_v3 }
 0x121   :  { %v7806_v45 = vadd.f32 %v560_v22, %v7749_v21 }
 0x122   :  { %9488 = vst [vmem:[#allocation144_spill] sm:$0xff] %v7800_v12  ;;  %9489 = vst [vmem:[#allocation145_spill] sm:$0xff] %v7803_v23  ;;  %v460_v12 = vadd.f32 %v459_v32, %v7616_v36 }
 0x123   :  { %9490 = vst [vmem:[#allocation146_spill] sm:$0xff] %v7806_v45  ;;  %v463_v59 = vpop.f32.mrb[36].mxu1  ;;  %v564_v5 = vpop.f32.mrb[36].mxu0 }
 0x124   :  { %v7809_v48 = vadd.f32 %v463_v59, %v7645_v44  ;;  %v465_v46 = vpop.f32.mrb[37].mxu1  ;;  %v7812_v61 = vadd.f32 %v564_v5, %v7740_v60  ;;  %v566_v10 = vpop.f32.mrb[37].mxu0 }
 0x125   :  { %v7815_v24 = vadd.f32 %v566_v10, %v7749_v21  ;;  %v219_v10 = vadd.f32 %v7595_v31, %v7578_v3 }
 0x126   :  { %9491 = vst [vmem:[#allocation147_spill] sm:$0xff] %v7809_v48  ;;  %9492 = vst [vmem:[#allocation148_spill] sm:$0xff] %v7812_v61 }
 0x127   :  { %9493 = vst [vmem:[#allocation149_spill] sm:$0xff] %v7815_v24  ;;  %v997_v22 = vpop.f32.mrb[38].mxu1  ;;  %v570_v45 = vpop.f32.mrb[38].mxu0  ;;  %v466_v24 = vadd.f32 %v465_v46, %v7616_v36 }
 0x128   :  { %v1162_v23 = vadd.f32 %v997_v22, %v213_v55  ;;  %v999_v14 = vpop.f32.mrb[39].mxu1  ;;  %v7821_v59 = vadd.f32 %v570_v45, %v7740_v60  ;;  %v572_v48 = vpop.f32.mrb[39].mxu0 }
 0x129   :  { %v1163_v11 = vadd.f32 %v999_v14, %v460_v12  ;;  %v7824_v5 = vadd.f32 %v572_v48, %v7749_v21 }
 0x12a   :  { %9494 = vst [vmem:[#allocation150_spill] sm:$0xff] %v7821_v59 }
 0x12b   :  { %9495 = vst [vmem:[#allocation151_spill] sm:$0xff] %v7824_v5  ;;  %v1003_v26 = vpop.f32.mrb[40].mxu1  ;;  %v576_v61 = vpop.f32.mrb[40].mxu0 }
 0x12c   :  { %v1164_v32 = vadd.f32 %v1003_v26, %v219_v10  ;;  %v1005_v15 = vpop.f32.mrb[41].mxu1  ;;  %v7830_v55 = vadd.f32 %v576_v61, %v7740_v60  ;;  %v578_v22 = vpop.f32.mrb[41].mxu0 }
 0x12d   :  { %v1165_v45 = vadd.f32 %v1005_v15, %v466_v24  ;;  %v7833_v59 = vadd.f32 %v578_v22, %v7749_v21 }
 0x12e   :  { %9496 = vst [vmem:[#allocation152_spill] sm:$0xff] %v7830_v55 }
 0x12f   :  { %9497 = vst [vmem:[#allocation153_spill] sm:$0xff] %v7833_v59  ;;  %v582_v14 = vpop.f32.mrb[42].mxu0 }
 0x130   :  { %v7836_v12 = vadd.f32 %v582_v14, %v7740_v60  ;;  %v584_v48 = vpop.f32.mrb[43].mxu0 }
 0x131   :  { %v7839_v31 = vadd.f32 %v584_v48, %v7749_v21 }
 0x132   :  { %9498 = vst [vmem:[#allocation154_spill] sm:$0xff] %v7836_v12  ;;  %v4120_v12 = vmul.f32 -1.442695, %v1163_v11  ;;  %v221_v11 = vadd.f32 %v7600_v35, %v7583_v62 }
 0x133   :  { %9499 = vst [vmem:[#allocation155_spill] sm:$0xff] %v7839_v31  ;;  %v588_v36 = vpop.f32.mrb[44].mxu0 }
 0x134   :  { %v7842_v3 = vadd.f32 %v588_v36, %v7740_v60  ;;  %v590_v46 = vpop.f32.mrb[45].mxu0 }
 0x135   :  { %v7845_v61 = vadd.f32 %v590_v46, %v7749_v21 }
 0x136   :  { %9500 = vst [vmem:[#allocation156_spill] sm:$0xff] %v7842_v3 }
 0x137   :  { %9501 = vst [vmem:[#allocation157_spill] sm:$0xff] %v7845_v61  ;;  %v594_v15 = vpop.f32.mrb[46].mxu0 }
 0x138   :  { %v7848_v24 = vadd.f32 %v594_v15, %v7740_v60  ;;  %v596_v10 = vpop.f32.mrb[47].mxu0 }
 0x139   :  { %v7851_v26 = vadd.f32 %v596_v10, %v7749_v21 }
 0x13a   :  { %9502 = vst [vmem:[#allocation158_spill] sm:$0xff] %v7848_v24 }
 0x13b   :  { %9503 = vst [vmem:[#allocation159_spill] sm:$0xff] %v7851_v26  ;;  %v600_v22 = vpop.f32.mrb[48].mxu0 }
 0x13c   :  { %v7854_v14 = vadd.f32 %v600_v22, %v7740_v60  ;;  %v602_v48 = vpop.f32.mrb[49].mxu0 }
 0x13d   :  { %v7857_v36 = vadd.f32 %v602_v48, %v7749_v21  ;;  %v4119_v48 = vmul.f32 -1.442695, %v1162_v23 }
 0x13e   :  { %9504 = vst [vmem:[#allocation160_spill] sm:$0xff] %v7854_v14  ;;  %v4122_v14 = vmul.f32 -1.442695, %v1165_v45 }
 0x13f   :  { %9505 = vst [vmem:[#allocation161_spill] sm:$0xff] %v7857_v36  ;;  %v606_v59 = vpop.f32.mrb[50].mxu0  ;;  %5988 = vpow2.f32 %v4119_v48 }
 0x140   :  { %v7860_v46 = vadd.f32 %v606_v59, %v7740_v60  ;;  %v608_v5 = vpop.f32.mrb[51].mxu0  ;;  %5990 = vpow2.f32 %v4120_v12 }
 0x141   :  { %v7863_v15 = vadd.f32 %v608_v5, %v7749_v21  ;;  %v215_v5 = vadd.f32 %v7590_v19, %v7583_v62 }
 0x142   :  { %9506 = vst [vmem:[#allocation162_spill] sm:$0xff] %v7860_v46 }
 0x143   :  { %9507 = vst [vmem:[#allocation163_spill] sm:$0xff] %v7863_v15  ;;  %v612_v55 = vpop.f32.mrb[52].mxu0 }
 0x144   :  { %v7866_v10 = vadd.f32 %v612_v55, %v7740_v60  ;;  %v614_v61 = vpop.f32.mrb[53].mxu0  ;;  %v4121_v55 = vmul.f32 -1.442695, %v1164_v32 }
 0x145   :  { %v7869_v22 = vadd.f32 %v614_v61, %v7749_v21 }
 0x146   :  { %9508 = vst [vmem:[#allocation164_spill] sm:$0xff] %v7866_v10  ;;  %5992 = vpow2.f32 %v4121_v55 }
 0x147   :  { %9509 = vst [vmem:[#allocation165_spill] sm:$0xff] %v7869_v22  ;;  %v618_v31 = vpop.f32.mrb[54].mxu0  ;;  %5994 = vpow2.f32 %v4122_v14 }
 0x148   :  { %v7871_v3 = vpop.f32.mrb[55].mxu0  ;;  %v619_v26 = vadd.f32 %v618_v31, %v7740_v60 }
 0x149   :  { %v5989_v12 = vpop.eup %5988 }
 0x14a   :  { %v5991_v25 = vpop.eup %5990 }
 0x14b   :  { %v624_v36 = vpop.f32.mrb[56].mxu0 }
 0x14c   :  { %v7873_v59 = vpop.f32.mrb[57].mxu0  ;;  %v625_v15 = vadd.f32 %v624_v36, %v7740_v60  ;;  %v917_v36 = vld [vmem:[%s9132_s5] sm:$0x3] }
 0x14f   :  { %v1074_v24 = vpop.f32.mrb[58].mxu0 }
 0x150   :  { %v1190_v61 = vadd.f32 %v1074_v24, %v215_v5  ;;  %v1076_v22 = vpop.f32.mrb[59].mxu0  ;;  %v1178_v24 = vadd.f32 1.0, %v5989_v12  ;;  %v5993_v60 = vpop.eup %5992 }
 0x151   :  { %v1191_v10 = vadd.f32 %v1076_v22, %v619_v26  ;;  %v1179_v26 = vadd.f32 1.0, %v5991_v25  ;;  %v5995_v35 = vpop.eup %5994  ;;  %v1180_v62 = vadd.f32 1.0, %v5993_v60  ;;  %v9511_v25 = vsub.s32 1, %v7564_v39 }
 0x152   :  { %v4123_v63 = vmul.f32 -1.442695, %v1190_v61  ;;  %v1181_v14 = vadd.f32 1.0, %v5995_v35  ;;  %v374_v60 = vadd.f32 %v7621_v2, %v7645_v44  ;;  %v380_v2 = vadd.f32 %v7633_v38, %v7645_v44 }
 0x153   :  { %v1080_v23 = vpop.f32.mrb[60].mxu0  ;;  %v4124_v48 = vmul.f32 -1.442695, %v1191_v10  ;;  %v7890_v5 = vrot.slane %v917_v36, %v9511_v25 }
 0x154   :  { %v1192_v31 = vadd.f32 %v1080_v23, %v221_v11  ;;  %v1082_v46 = vpop.f32.mrb[61].mxu0  ;;  %5996 = vpow2.f32 %v4123_v63  ;;  %v9510_v63 = vsub.s32 0, %v7564_v39 }
 0x155   :  { %v1193_v19 = vadd.f32 %v1082_v46, %v625_v15  ;;  %5998 = vpow2.f32 %v4124_v48 }
 0x156   :  { %v4125_v32 = vmul.f32 -1.442695, %v1192_v31  ;;  %v7886_v10 = vrot.slane %v917_v36, %v9510_v63 }
 0x157   :  { %v4126_v45 = vmul.f32 -1.442695, %v1193_v19 }
 0x158   :  { %6000 = vpow2.f32 %v4125_v32 }
 0x159   :  { %6002 = vpow2.f32 %v4126_v45 }
 0x15a   :  { %6004 = vrcp.f32 %v1178_v24 }
 0x15b   :  { %6006 = vrcp.f32 %v1179_v26  ;;  %v621_v26 = vadd.f32 %v7871_v3, %v7749_v21  ;;  %v627_v3 = vadd.f32 %v7873_v59, %v7749_v21 }
 0x15c   :  { %6008 = vrcp.f32 %v1180_v62 }
 0x15d   :  { %6010 = vrcp.f32 %v1181_v14 }
 0x15e   :  { %v5997_v46 = vpop.eup %5996 }
 0x15f   :  { %v5999_v15 = vpop.eup %5998  ;;  %v1206_v61 = vadd.f32 1.0, %v5997_v46 }
 0x160   :  { %v1207_v11 = vadd.f32 1.0, %v5999_v15 }
 0x161   :  { %6012 = vrcp.f32 %v1206_v61 }
 0x162   :  { %v6001_v22 = vpop.eup %6000  ;;  %6014 = vrcp.f32 %v1207_v11 }
 0x163   :  { %v6003_v55 = vpop.eup %6002  ;;  %v1208_v31 = vadd.f32 1.0, %v6001_v22 }
 0x164   :  { %v6005_v32 = vpop.eup %6004  ;;  %v1209_v12 = vadd.f32 1.0, %v6003_v55 }
 0x165   :  { %v6007_v24 = vpop.eup %6006  ;;  %6016 = vrcp.f32 %v1208_v31 }
 0x166   :  { %v6009_v15 = vpop.eup %6008  ;;  %6018 = vrcp.f32 %v1209_v12 }
 0x167   :  { %v1151_v23 = vpop.f32.mrb[42].mxu1  ;;  %v6011_v25 = vpop.eup %6010 }
 0x168   :  { %v1229_v19 = vadd.f32 %v7886_v10, %v1151_v23  ;;  %v1153_v48 = vpop.f32.mrb[43].mxu1 }
 0x169   :  { %v1230_v45 = vadd.f32 %v7890_v5, %v1153_v48 }
 0x16a   :  { %v1233_v39 = vmul.f32 %v6005_v32, %v1229_v19 }
 0x16b   :  { %v1234_v35 = vmul.f32 %v6007_v24, %v1230_v45  ;;  %v1157_v62 = vpop.f32.mrb[44].mxu1  ;;  %v6013_v31 = vpop.eup %6012 }
 0x16c   :  { %v1237_v14 = vadd.f32 %v1233_v39, %v374_v60  ;;  %v1231_v36 = vadd.f32 %v7886_v10, %v1157_v62  ;;  %v1159_v46 = vpop.f32.mrb[45].mxu1  ;;  %v6015_v19 = vpop.eup %6014  ;;  %v1245_v12 = vsub.f32 1.0, %v6013_v31  ;;  %v1253_v38 = vmul.f32 0.0, %v6013_v31  ;;  %v9521_v31 = vld [vmem:[#allocation44_spill] sm:$0xff] }
 0x16d   :  { %v1238_v63 = vadd.f32 %v1234_v35, %v621_v26  ;;  %v1232_v22 = vadd.f32 %v7890_v5, %v1159_v46  ;;  %v1246_v24 = vsub.f32 1.0, %v6015_v19  ;;  %v1254_v39 = vmul.f32 0.0, %v6015_v19  ;;  %v9522_v19 = vld [vmem:[#allocation46_spill] sm:$0xff] }
 0x16e   :  { %6020 = vtanh.f32 %v1237_v14  ;;  %v1235_v55 = vmul.f32 %v6009_v15, %v1231_v36 }
 0x16f   :  { %6022 = vtanh.f32 %v1238_v63  ;;  %v1236_v61 = vmul.f32 %v6011_v25, %v1232_v22  ;;  %v6017_v48 = vpop.eup %6016 }
 0x170   :  { %v1239_v11 = vadd.f32 %v1235_v55, %v380_v2  ;;  %v6019_v32 = vpop.eup %6018  ;;  %v1247_v35 = vsub.f32 1.0, %v6017_v48  ;;  %v1255_v46 = vmul.f32 0.0, %v6017_v48  ;;  %v9515_v2 = vld [vmem:[#allocation34_spill] sm:$0xff]  ;;  %v9523_v48 = vld [vmem:[#allocation48_spill] sm:$0xff] }
 0x171   :  { %v1240_v23 = vadd.f32 %v1236_v61, %v627_v3  ;;  %v1248_v62 = vsub.f32 1.0, %v6019_v32  ;;  %v1256_v63 = vmul.f32 0.0, %v6019_v32  ;;  %v9517_v3 = vld [vmem:[#allocation36_spill] sm:$0xff]  ;;  %v9518_v61 = vld [vmem:[#allocation38_spill] sm:$0xff] }
 0x172   :  { %6024 = vtanh.f32 %v1239_v11  ;;  %v9519_v11 = vld [vmem:[#allocation40_spill] sm:$0xff]  ;;  %v9524_v32 = vld [vmem:[#allocation50_spill] sm:$0xff] }
 0x173   :  { %6026 = vtanh.f32 %v1240_v23  ;;  %v9520_v23 = vld [vmem:[#allocation42_spill] sm:$0xff] }
 0x178   :  { %v6021_v45 = vpop.eup %6020 }
 0x179   :  { %v6023_v60 = vpop.eup %6022  ;;  %v1249_v44 = vmul.f32 %v6021_v45, %v1245_v12  ;;  %v9525_v12 = vld [vmem:[#allocation52_spill] sm:$0xff]  ;;  %v9526_v45 = vld [vmem:[#allocation54_spill] sm:$0xff] }
 0x17a   :  { %v1250_v26 = vmul.f32 %v6023_v60, %v1246_v24  ;;  %v9527_v24 = vld [vmem:[#allocation56_spill] sm:$0xff]  ;;  %v9528_v60 = vld [vmem:[#allocation58_spill] sm:$0xff] }
 0x17b   :  { %v7904_v21 = vadd.f32 %v1253_v38, %v1249_v44  ;;  %v9529_v38 = vld [vmem:[#allocation60_spill] sm:$0xff]  ;;  %v9530_v44 = vld [vmem:[#allocation62_spill] sm:$0xff] }
 0x17c   :  { %v6025_v59 = vpop.eup %6024  ;;  %v7906_v14 = vadd.f32 %v1254_v39, %v1250_v26  ;;  %v9531_v39 = vld [vmem:[#allocation64_spill] sm:$0xff]  ;;  %v9532_v26 = vld [vmem:[#allocation70_spill] sm:$0xff] }
 0x17d   :  { %9512 = vst [vmem:[#allocation166_spill] sm:$0xff] %v7904_v21  ;;  %v6027_v36 = vpop.eup %6026  ;;  %v1251_v15 = vmul.f32 %v6025_v59, %v1247_v35  ;;  %v9533_v35 = vld [vmem:[#allocation71_spill] sm:$0xff]  ;;  %v9534_v59 = vld [vmem:[#allocation72_spill] sm:$0xff] }
 0x17e   :  { %9513 = vst [vmem:[#allocation167_spill] sm:$0xff] %v7906_v14  ;;  %v1252_v22 = vmul.f32 %v6027_v36, %v1248_v62  ;;  %1343 = vmatprep.mubr.f32.mxu0 %v7906_v14  ;;  %1420 = vmatprep.mubr.f32.mxu1 %v7906_v14  ;;  %v9535_v62 = vld [vmem:[#allocation73_spill] sm:$0xff]  ;;  %v9536_v36 = vld [vmem:[#allocation74_spill] sm:$0xff] }
 0x17f   :  { %1344 = vmatmul.mubr.f32.vlgmr.msra.gmra.mrb[62].mxu0 %v7904_v21  ;;  %1421 = vmatmul.mubr.f32.vlgmr.msra.gmra.mrb[46].mxu1 %v7904_v21  ;;  %v7912_v25 = vadd.f32 %v1255_v46, %v1251_v15  ;;  %v9537_v46 = vld [vmem:[#allocation75_spill] sm:$0xff]  ;;  %v9538_v15 = vld [vmem:[#allocation76_spill] sm:$0xff] }
 0x180   :  { %4668 = vmatpush1.bf16.msra.mxu0 %v9515_v2  ;;  %v7915_v55 = vadd.f32 %v1256_v63, %v1252_v22  ;;  %4732 = vmatpush1.bf16.msra.mxu1 %v6476_v33  ;;  %v9539_v63 = vld [vmem:[#allocation79_spill] sm:$0xff]  ;;  %v9540_v22 = vld [vmem:[#allocation80_spill] sm:$0xff] }
 0x181   :  { %9514 = vst [vmem:[#allocation168_spill] sm:$0xff] %v7912_v25  ;;  %4670 = vmatprep.subr.bf16.mxu0 %v9517_v3  ;;  %4734 = vmatprep.subr.bf16.mxu1 %v6478_v34 }
 0x182   :  { %9516 = vst [vmem:[#allocation34_spill] sm:$0xff] %v7915_v55  ;;  %1349 = vmatprep.mubr.f32.mxu0 %v7915_v55  ;;  %1426 = vmatprep.mubr.f32.mxu1 %v7915_v55 }
 0x183   :  { %1350 = vmatmul.mubr.f32.gmra.mrb[64].mxu0 %v7912_v25  ;;  %1427 = vmatmul.mubr.f32.gmra.mrb[48].mxu1 %v7912_v25 }
 0x184   :  { %4672 = vmatpush1.bf16.msra.mxu0 %v9518_v61  ;;  %1497 = vmatprep.mubr.f32.mxu0 %v7906_v14 }
 0x185   :  { %4674 = vmatprep.subr.bf16.mxu0 %v9519_v11  ;;  %4736 = vmatpush1.bf16.msra.mxu1 %v6503_v40 }
 0x186   :  { %4738 = vmatprep.subr.bf16.mxu1 %v6507_v41 }
 0x188   :  { %4676 = vmatpush1.bf16.msra.mxu0 %v9520_v23 }
 0x189   :  { %4678 = vmatprep.subr.bf16.mxu0 %v9521_v31  ;;  %4740 = vmatpush1.bf16.msra.mxu1 %v6532_v47 }
 0x18a   :  { %4742 = vmatprep.subr.bf16.mxu1 %v6542_v50 }
 0x18c   :  { %4680 = vmatpush1.bf16.msra.mxu0 %v9522_v19 }
 0x18d   :  { %4682 = vmatprep.subr.bf16.mxu0 %v9523_v48  ;;  %4744 = vmatpush1.bf16.msra.mxu1 %v6569_v57 }
 0x18e   :  { %4746 = vmatprep.subr.bf16.mxu1 %v6573_v58 }
 0x190   :  { %4684 = vmatpush1.bf16.msra.mxu0 %v9524_v32 }
 0x191   :  { %4686 = vmatprep.subr.bf16.mxu0 %v9525_v12  ;;  %4748 = vmatpush1.bf16.msra.mxu1 %v6599_v0 }
 0x192   :  { %4750 = vmatprep.subr.bf16.mxu1 %v6603_v1 }
 0x194   :  { %4688 = vmatpush1.bf16.msra.mxu0 %v9526_v45 }
 0x195   :  { %4690 = vmatprep.subr.bf16.mxu0 %v9527_v24  ;;  %4752 = vmatpush1.bf16.msra.mxu1 %v6628_v8 }
 0x196   :  { %4754 = vmatprep.subr.bf16.mxu1 %v6632_v9 }
 0x198   :  { %4692 = vmatpush1.bf16.msra.mxu0 %v9528_v60 }
 0x199   :  { %4694 = vmatprep.subr.bf16.mxu0 %v9529_v38  ;;  %4756 = vmatpush1.bf16.msra.mxu1 %v6657_v17 }
 0x19a   :  { %4758 = vmatprep.subr.bf16.mxu1 %v6661_v18 }
 0x19c   :  { %4696 = vmatpush1.bf16.msra.mxu0 %v9530_v44 }
 0x19d   :  { %4698 = vmatprep.subr.bf16.mxu0 %v9531_v39  ;;  %4760 = vmatpush1.bf16.msra.mxu1 %v6686_v29 }
 0x19e   :  { %4762 = vmatprep.subr.bf16.mxu1 %v6690_v30 }
 0x1a0   :  { %4700 = vmatpush1.bf16.msra.mxu0 %v7347_v56 }
 0x1a1   :  { %4702 = vmatprep.subr.bf16.mxu0 %v7356_v49  ;;  %4764 = vmatpush1.bf16.msra.mxu1 %v6715_v42 }
 0x1a2   :  { %4766 = vmatprep.subr.bf16.mxu1 %v6719_v43  ;;  %v9586_v43 = vld [vmem:[#allocation164_spill] sm:$0xff] }
 0x1a4   :  { %4704 = vmatpush1.bf16.msra.mxu0 %v7380_v16 }
 0x1a5   :  { %4706 = vmatprep.subr.bf16.mxu0 %v9532_v26  ;;  %4768 = vmatpush1.bf16.msra.mxu1 %v6744_v52  ;;  %v9585_v26 = vld [vmem:[#allocation142_spill] sm:$0xff] }
 0x1a6   :  { %4770 = vmatprep.subr.bf16.mxu1 %v6751_v54  ;;  %v9584_v54 = vld [vmem:[#allocation92_spill] sm:$0xff] }
 0x1a8   :  { %4708 = vmatpush1.bf16.msra.mxu0 %v9533_v35  ;;  %v9583_v35 = vld [vmem:[#allocation90_spill] sm:$0xff] }
 0x1a9   :  { %4710 = vmatprep.subr.bf16.mxu0 %v9534_v59  ;;  %4772 = vmatpush1.bf16.msra.mxu1 %v6780_v6  ;;  %v9582_v6 = vld [vmem:[#allocation162_spill] sm:$0xff] }
 0x1aa   :  { %4774 = vmatprep.subr.bf16.mxu1 %v6798_v20  ;;  %v9581_v20 = vld [vmem:[#allocation138_spill] sm:$0xff] }
 0x1ac   :  { %4712 = vmatpush1.bf16.msra.mxu0 %v9535_v62 }
 0x1ad   :  { %4714 = vmatprep.subr.bf16.mxu0 %v9536_v36  ;;  %4776 = vmatpush1.bf16.msra.mxu1 %v6820_v37  ;;  %v9579_v37 = vld [vmem:[#allocation87_spill] sm:$0xff]  ;;  %v9580_v36 = vld [vmem:[#allocation89_spill] sm:$0xff] }
 0x1ae   :  { %4778 = vmatprep.subr.bf16.mxu1 %v6840_v53  ;;  %v9541_v53 = vld [vmem:[#allocation26_spill] sm:$0xff] }
 0x1b0   :  { %4716 = vmatpush1.bf16.msra.mxu0 %v9537_v46  ;;  %v9542_v46 = vld [vmem:[#allocation28_spill] sm:$0xff] }
 0x1b1   :  { %4718 = vmatprep.subr.bf16.mxu0 %v9538_v15  ;;  %4780 = vmatpush1.bf16.msra.mxu1 %v9412_v27  ;;  %v9543_v15 = vld [vmem:[#allocation81_spill] sm:$0xff]  ;;  %v9544_v27 = vld [vmem:[#allocation6_spill] sm:$0xff] }
 0x1b2   :  { %4782 = vmatprep.subr.bf16.mxu1 %v9413_v28  ;;  %v9545_v28 = vld [vmem:[#allocation30_spill] sm:$0xff] }
 0x1b4   :  { %4720 = vmatpush1.bf16.msra.mxu0 %v7468_v4  ;;  %v9546_v4 = vld [vmem:[#allocation32_spill] sm:$0xff] }
 0x1b5   :  { %4722 = vmatprep.subr.bf16.mxu0 %v7471_v13  ;;  %4784 = vmatpush1.bf16.msra.mxu1 %v9415_v51  ;;  %v9556_v51 = vld [vmem:[#allocation29_spill] sm:$0xff]  ;;  %v9559_v13 = vld [vmem:[#allocation35_spill] sm:$0xff] }
 0x1b6   :  { %4786 = vmatprep.subr.bf16.mxu1 %v9416_v7  ;;  %v9547_v7 = vld [vmem:[#allocation11_spill] sm:$0xff] }
 0x1b8   :  { %4724 = vmatpush1.bf16.msra.mxu0 %v9539_v63  ;;  %v9548_v63 = vld [vmem:[#allocation13_spill] sm:$0xff] }
 0x1b9   :  { %4726 = vmatprep.subr.bf16.mxu0 %v9540_v22  ;;  %4788 = vmatpush1.bf16.msra.mxu1 %v9541_v53  ;;  %v9549_v53 = vld [vmem:[#allocation15_spill] sm:$0xff] }
 0x1ba   :  { %4790 = vmatprep.subr.bf16.mxu1 %v9542_v46  ;;  %v9550_v46 = vld [vmem:[#allocation17_spill] sm:$0xff]  ;;  %v9555_v22 = vld [vmem:[#allocation27_spill] sm:$0xff] }
 0x1bc   :  { %4728 = vmatpush1.bf16.msra.mxu0 %v9543_v15  ;;  %v9551_v15 = vld [vmem:[#allocation19_spill] sm:$0xff] }
 0x1bd   :  { %4794 = vmatprep.subr.bf16.mxu0 %v9544_v27  ;;  %4792 = vmatpush1.bf16.msra.mxu1 %v9545_v28  ;;  %v9552_v27 = vld [vmem:[#allocation21_spill] sm:$0xff]  ;;  %v9553_v28 = vld [vmem:[#allocation23_spill] sm:$0xff] }
 0x1be   :  { %4858 = vmatprep.subr.bf16.mxu1 %v9546_v4  ;;  %v9554_v4 = vld [vmem:[#allocation25_spill] sm:$0xff] }
 0x1bf   :  { %1498 = vmatmul.mubr.f32.vlgmr.msra.gmra.mrb[66].mxu0 %v7904_v21 }
 0x1c0   :  { %1503 = vmatprep.mubr.f32.mxu0 %v7915_v55  ;;  %4796 = vmatpush1.bf16.msra.mxu0 %v9547_v7  ;;  %v9557_v7 = vld [vmem:[#allocation31_spill] sm:$0xff] }
 0x1c1   :  { %4798 = vmatprep.subr.bf16.mxu0 %v9548_v63  ;;  %v9558_v63 = vld [vmem:[#allocation33_spill] sm:$0xff] }
 0x1c3   :  { %1504 = vmatmul.mubr.f32.gmra.mrb[68].mxu0 %v7912_v25 }
 0x1c4   :  { %4800 = vmatpush1.bf16.msra.mxu0 %v9549_v53  ;;  %v9560_v53 = vld [vmem:[#allocation37_spill] sm:$0xff] }
 0x1c5   :  { %4802 = vmatprep.subr.bf16.mxu0 %v9550_v46  ;;  %v9561_v46 = vld [vmem:[#allocation39_spill] sm:$0xff] }
 0x1c8   :  { %4804 = vmatpush1.bf16.msra.mxu0 %v9551_v15  ;;  %v9562_v15 = vld [vmem:[#allocation41_spill] sm:$0xff] }
 0x1c9   :  { %4806 = vmatprep.subr.bf16.mxu0 %v9552_v27  ;;  %v9563_v27 = vld [vmem:[#allocation43_spill] sm:$0xff] }
 0x1cc   :  { %4808 = vmatpush1.bf16.msra.mxu0 %v9553_v28  ;;  %v9564_v28 = vld [vmem:[#allocation45_spill] sm:$0xff] }
 0x1cd   :  { %4810 = vmatprep.subr.bf16.mxu0 %v9554_v4  ;;  %v9565_v4 = vld [vmem:[#allocation47_spill] sm:$0xff] }
 0x1d0   :  { %4812 = vmatpush1.bf16.msra.mxu0 %v9555_v22  ;;  %v9566_v22 = vld [vmem:[#allocation49_spill] sm:$0xff] }
 0x1d1   :  { %4814 = vmatprep.subr.bf16.mxu0 %v9556_v51  ;;  %v9567_v51 = vld [vmem:[#allocation51_spill] sm:$0xff] }
 0x1d4   :  { %4816 = vmatpush1.bf16.msra.mxu0 %v9557_v7  ;;  %v9568_v7 = vld [vmem:[#allocation53_spill] sm:$0xff] }
 0x1d5   :  { %4818 = vmatprep.subr.bf16.mxu0 %v9558_v63  ;;  %v9569_v63 = vld [vmem:[#allocation55_spill] sm:$0xff] }
 0x1d8   :  { %4820 = vmatpush1.bf16.msra.mxu0 %v9559_v13  ;;  %v9570_v13 = vld [vmem:[#allocation57_spill] sm:$0xff] }
 0x1d9   :  { %4822 = vmatprep.subr.bf16.mxu0 %v9560_v53  ;;  %v9571_v53 = vld [vmem:[#allocation59_spill] sm:$0xff] }
 0x1dc   :  { %4824 = vmatpush1.bf16.msra.mxu0 %v9561_v46  ;;  %v9572_v46 = vld [vmem:[#allocation61_spill] sm:$0xff] }
 0x1dd   :  { %4826 = vmatprep.subr.bf16.mxu0 %v9562_v15  ;;  %v9573_v15 = vld [vmem:[#allocation63_spill] sm:$0xff] }
 0x1e0   :  { %4828 = vmatpush1.bf16.msra.mxu0 %v9563_v27  ;;  %v9574_v27 = vld [vmem:[#allocation65_spill] sm:$0xff] }
 0x1e1   :  { %4830 = vmatprep.subr.bf16.mxu0 %v9564_v28  ;;  %v9575_v28 = vld [vmem:[#allocation66_spill] sm:$0xff] }
 0x1e4   :  { %4832 = vmatpush1.bf16.msra.mxu0 %v9565_v4  ;;  %v9576_v4 = vld [vmem:[#allocation67_spill] sm:$0xff] }
 0x1e5   :  { %4834 = vmatprep.subr.bf16.mxu0 %v9566_v22  ;;  %v9577_v22 = vld [vmem:[#allocation69_spill] sm:$0xff] }
 0x1e8   :  { %4836 = vmatpush1.bf16.msra.mxu0 %v9567_v51  ;;  %v9578_v51 = vld [vmem:[#allocation5_spill] sm:$0xff] }
 0x1e9   :  { %4838 = vmatprep.subr.bf16.mxu0 %v9568_v7 }
 0x1ec   :  { %4840 = vmatpush1.bf16.msra.mxu0 %v9569_v63 }
 0x1ed   :  { %4842 = vmatprep.subr.bf16.mxu0 %v9570_v13 }
 0x1f0   :  { %4844 = vmatpush1.bf16.msra.mxu0 %v9571_v53 }
 0x1f1   :  { %4846 = vmatprep.subr.bf16.mxu0 %v9572_v46 }
 0x1f4   :  { %4848 = vmatpush1.bf16.msra.mxu0 %v9573_v15 }
 0x1f5   :  { %4850 = vmatprep.subr.bf16.mxu0 %v9574_v27 }
 0x1f8   :  { %4852 = vmatpush1.bf16.msra.mxu0 %v9575_v28 }
 0x1f9   :  { %4854 = vmatprep.subr.bf16.mxu0 %v9576_v4 }
 0x1fc   :  { %4856 = vmatpush1.bf16.msra.mxu0 %v9577_v22 }
 0x1fd   :  { %4922 = vmatprep.subr.bf16.mxu0 %v9578_v51 }
 0x252   :  { %v1345_v7 = vpop.f32.mrb[62].mxu0  ;;  %v1422_v63 = vpop.f32.mrb[46].mxu1 }
 0x253   :  { %v1510_v13 = vadd.f32 %v1345_v7, %v9579_v37  ;;  %v1538_v53 = vadd.f32 %v1422_v63, %v9580_v36  ;;  %v1347_v62 = vpop.f32.mrb[63].mxu0  ;;  %v1424_v46 = vpop.f32.mrb[47].mxu1 }
 0x254   :  { %v1511_v15 = vadd.f32 %v1347_v62, %v9581_v20  ;;  %v1539_v27 = vadd.f32 %v1424_v46, %v9582_v6 }
 0x255   :  { %v4127_v7 = vmul.f32 -1.442695, %v1510_v13  ;;  %v4131_v6 = vmul.f32 -1.442695, %v1538_v53 }
 0x256   :  { %v1351_v59 = vpop.f32.mrb[64].mxu0  ;;  %v1428_v28 = vpop.f32.mrb[48].mxu1  ;;  %v4128_v36 = vmul.f32 -1.442695, %v1511_v15  ;;  %v4132_v62 = vmul.f32 -1.442695, %v1539_v27 }
 0x257   :  { %v1512_v4 = vadd.f32 %v1351_v59, %v9583_v35  ;;  %v1540_v22 = vadd.f32 %v1428_v28, %v9584_v54  ;;  %v1353_v52 = vpop.f32.mrb[65].mxu0  ;;  %v1430_v51 = vpop.f32.mrb[49].mxu1  ;;  %6028 = vpow2.f32 %v4127_v7 }
 0x258   :  { %v1513_v16 = vadd.f32 %v1353_v52, %v9585_v26  ;;  %v1541_v37 = vadd.f32 %v1430_v51, %v9586_v43  ;;  %6030 = vpow2.f32 %v4128_v36 }
 0x259   :  { %v4129_v63 = vmul.f32 -1.442695, %v1512_v4  ;;  %v4133_v46 = vmul.f32 -1.442695, %v1540_v22 }
 0x25a   :  { %v4130_v20 = vmul.f32 -1.442695, %v1513_v16  ;;  %v4134_v59 = vmul.f32 -1.442695, %v1541_v37 }
 0x25b   :  { %6032 = vpow2.f32 %v4129_v63 }
 0x25c   :  { %6034 = vpow2.f32 %v4130_v20 }
 0x25d   :  { %6036 = vpow2.f32 %v4131_v6 }
 0x25e   :  { %6038 = vpow2.f32 %v4132_v62 }
 0x25f   :  { %6040 = vpow2.f32 %v4133_v46 }
 0x260   :  { %6042 = vpow2.f32 %v4134_v59 }
 0x261   :  { %v6029_v35 = vpop.eup %6028 }
 0x262   :  { %v6031_v54 = vpop.eup %6030  ;;  %v1526_v28 = vadd.f32 1.0, %v6029_v35 }
 0x263   :  { %v1527_v43 = vadd.f32 1.0, %v6031_v54 }
 0x264   :  { %6044 = vrcp.f32 %v1526_v28  ;;  %v9587_v28 = vld [vmem:[#allocation96_spill] sm:$0xff] }
 0x265   :  { %v6033_v52 = vpop.eup %6032  ;;  %6046 = vrcp.f32 %v1527_v43 }
 0x266   :  { %v6035_v13 = vpop.eup %6034  ;;  %v1528_v4 = vadd.f32 1.0, %v6033_v52 }
 0x267   :  { %v1529_v16 = vadd.f32 1.0, %v6035_v13  ;;  %v6037_v51 = vpop.eup %6036 }
 0x268   :  { %6048 = vrcp.f32 %v1528_v4  ;;  %v6039_v53 = vpop.eup %6038  ;;  %v1554_v15 = vadd.f32 1.0, %v6037_v51 }
 0x269   :  { %6050 = vrcp.f32 %v1529_v16  ;;  %v6041_v27 = vpop.eup %6040  ;;  %v1555_v22 = vadd.f32 1.0, %v6039_v53  ;;  %v9588_v16 = vld [vmem:[#allocation163_spill] sm:$0xff] }
 0x26a   :  { %v6043_v26 = vpop.eup %6042  ;;  %v1556_v7 = vadd.f32 1.0, %v6041_v27  ;;  %6052 = vrcp.f32 %v1554_v15 }
 0x26b   :  { %v1557_v6 = vadd.f32 1.0, %v6043_v26  ;;  %6054 = vrcp.f32 %v1555_v22  ;;  %v9589_v22 = vld [vmem:[#allocation100_spill] sm:$0xff] }
 0x26c   :  { %6056 = vrcp.f32 %v1556_v7 }
 0x26d   :  { %6058 = vrcp.f32 %v1557_v6 }
 0x26e   :  { %v6045_v20 = vpop.eup %6044 }
 0x26f   :  { %v6047_v46 = vpop.eup %6046 }
 0x272   :  { %v6049_v4 = vpop.eup %6048 }
 0x273   :  { %v6051_v27 = vpop.eup %6050 }
 0x292   :  { %v1499_v37 = vpop.f32.mrb[66].mxu0 }
 0x293   :  { %v1566_v36 = vadd.f32 %v1499_v37, %v7886_v10  ;;  %v1501_v63 = vpop.f32.mrb[67].mxu0 }
 0x294   :  { %v1567_v62 = vadd.f32 %v1501_v63, %v7890_v5  ;;  %v6053_v63 = vpop.eup %6052 }
 0x295   :  { %v1570_v35 = vmul.f32 %v6045_v20, %v1566_v36  ;;  %v9590_v36 = vld [vmem:[#allocation165_spill] sm:$0xff]  ;;  %v6055_v20 = vpop.eup %6054  ;;  %v1582_v6 = vsub.f32 1.0, %v6053_v63 }
 0x296   :  { %v1571_v59 = vmul.f32 %v6047_v46, %v1567_v62  ;;  %v1505_v54 = vpop.f32.mrb[68].mxu0  ;;  %v6057_v62 = vpop.eup %6056 }
 0x297   :  { %v1574_v52 = vadd.f32 %v1570_v35, %v9587_v28  ;;  %v1568_v43 = vadd.f32 %v1505_v54, %v7886_v10  ;;  %v1507_v13 = vpop.f32.mrb[69].mxu0  ;;  %v6059_v46 = vpop.eup %6058  ;;  %v1590_v28 = vmul.f32 %v6053_v63, %v7904_v21  ;;  %v9616_v21 = vld [vmem:[#allocation79_spill] sm:$0xff] }
 0x298   :  { %v1575_v51 = vadd.f32 %v1571_v59, %v9588_v16  ;;  %v1569_v53 = vadd.f32 %v1507_v13, %v7890_v5  ;;  %v1583_v59 = vsub.f32 1.0, %v6055_v20 }
 0x299   :  { %6060 = vtanh.f32 %v1574_v52  ;;  %v1572_v26 = vmul.f32 %v6049_v4, %v1568_v43  ;;  %v1591_v43 = vmul.f32 %v6055_v20, %v7906_v14  ;;  %v1584_v4 = vsub.f32 1.0, %v6057_v62  ;;  %v9595_v20 = vld [vmem:[#allocation7_spill] sm:$0xff]  ;;  %v9617_v14 = vld [vmem:[#allocation80_spill] sm:$0xff] }
 0x29a   :  { %6062 = vtanh.f32 %v1575_v51  ;;  %v1573_v15 = vmul.f32 %v6051_v27, %v1569_v53  ;;  %v1585_v53 = vsub.f32 1.0, %v6059_v46 }
 0x29b   :  { %v1576_v37 = vadd.f32 %v1572_v26, %v9589_v22 }
 0x29c   :  { %v1577_v7 = vadd.f32 %v1573_v15, %v9590_v36  ;;  %v1592_v15 = vmul.f32 %v6057_v62, %v7912_v25  ;;  %v9596_v62 = vld [vmem:[#allocation68_spill] sm:$0xff] }
 0x29d   :  { %6064 = vtanh.f32 %v1576_v37  ;;  %v1593_v37 = vmul.f32 %v6059_v46, %v7915_v55  ;;  %v9597_v46 = vld [vmem:[#allocation70_spill] sm:$0xff]  ;;  %v9615_v25 = vld [vmem:[#allocation24_spill] sm:$0xff] }
 0x29e   :  { %6066 = vtanh.f32 %v1577_v7  ;;  %v9614_v55 = vld [vmem:[#allocation22_spill] sm:$0xff] }
 0x2a3   :  { %v6061_v35 = vpop.eup %6060 }
 0x2a4   :  { %v6063_v54 = vpop.eup %6062  ;;  %v1586_v52 = vmul.f32 %v6061_v35, %v1582_v6  ;;  %v9598_v6 = vld [vmem:[#allocation8_spill] sm:$0xff]  ;;  %v9599_v35 = vld [vmem:[#allocation9_spill] sm:$0xff] }
 0x2a5   :  { %v1587_v13 = vmul.f32 %v6063_v54, %v1583_v59  ;;  %v9600_v59 = vld [vmem:[#allocation71_spill] sm:$0xff]  ;;  %v9601_v54 = vld [vmem:[#allocation72_spill] sm:$0xff] }
 0x2a6   :  { %v8038_v16 = vadd.f32 %v1590_v28, %v1586_v52  ;;  %v9602_v28 = vld [vmem:[#allocation10_spill] sm:$0xff]  ;;  %v9603_v52 = vld [vmem:[#allocation12_spill] sm:$0xff] }
 0x2a7   :  { %v6065_v51 = vpop.eup %6064  ;;  %v8040_v27 = vadd.f32 %v1591_v43, %v1587_v13  ;;  %v9604_v43 = vld [vmem:[#allocation73_spill] sm:$0xff]  ;;  %v9605_v13 = vld [vmem:[#allocation74_spill] sm:$0xff] }
 0x2a8   :  { %9591 = vst [vmem:[#allocation36_spill] sm:$0xff] %v8038_v16  ;;  %v6067_v26 = vpop.eup %6066  ;;  %v1588_v22 = vmul.f32 %v6065_v51, %v1584_v4  ;;  %v9606_v4 = vld [vmem:[#allocation14_spill] sm:$0xff]  ;;  %v9607_v51 = vld [vmem:[#allocation16_spill] sm:$0xff] }
 0x2a9   :  { %9592 = vst [vmem:[#allocation38_spill] sm:$0xff] %v8040_v27  ;;  %v1589_v36 = vmul.f32 %v6067_v26, %v1585_v53  ;;  %1684 = vmatprep.mubr.f32.mxu1 %v8040_v27  ;;  %1761 = vmatprep.mubr.f32.mxu0 %v8040_v27  ;;  %v9608_v53 = vld [vmem:[#allocation75_spill] sm:$0xff]  ;;  %v9609_v26 = vld [vmem:[#allocation76_spill] sm:$0xff] }
 0x2aa   :  { %1685 = vmatmul.mubr.f32.vlgmr.msra.gmra.mrb[50].mxu1 %v8038_v16  ;;  %1762 = vmatmul.mubr.f32.vlgmr.msra.gmra.mrb[70].mxu0 %v8038_v16  ;;  %v8048_v7 = vadd.f32 %v1592_v15, %v1588_v22  ;;  %v9610_v15 = vld [vmem:[#allocation18_spill] sm:$0xff]  ;;  %v9611_v22 = vld [vmem:[#allocation20_spill] sm:$0xff] }
 0x2ab   :  { %4860 = vmatpush1.bf16.msra.mxu1 %v9515_v2  ;;  %v8051_v63 = vadd.f32 %v1593_v37, %v1589_v36  ;;  %4924 = vmatpush1.bf16.msra.mxu0 %v6476_v33  ;;  %v9612_v37 = vld [vmem:[#allocation77_spill] sm:$0xff]  ;;  %v9613_v36 = vld [vmem:[#allocation78_spill] sm:$0xff] }
 0x2ac   :  { %9593 = vst [vmem:[#allocation40_spill] sm:$0xff] %v8048_v7  ;;  %4862 = vmatprep.subr.bf16.mxu1 %v9517_v3  ;;  %4926 = vmatprep.subr.bf16.mxu0 %v6478_v34 }
 0x2ad   :  { %9594 = vst [vmem:[#allocation42_spill] sm:$0xff] %v8051_v63  ;;  %1690 = vmatprep.mubr.f32.mxu1 %v8051_v63  ;;  %1767 = vmatprep.mubr.f32.mxu0 %v8051_v63 }
 0x2ae   :  { %1691 = vmatmul.mubr.f32.gmra.mrb[52].mxu1 %v8048_v7  ;;  %1768 = vmatmul.mubr.f32.gmra.mrb[72].mxu0 %v8048_v7 }
 0x2af   :  { %4864 = vmatpush1.bf16.msra.mxu1 %v9518_v61  ;;  %1838 = vmatprep.mubr.f32.mxu1 %v8040_v27 }
 0x2b0   :  { %4866 = vmatprep.subr.bf16.mxu1 %v9519_v11  ;;  %4928 = vmatpush1.bf16.msra.mxu0 %v6503_v40 }
 0x2b1   :  { %4930 = vmatprep.subr.bf16.mxu0 %v6507_v41 }
 0x2b3   :  { %4868 = vmatpush1.bf16.msra.mxu1 %v9520_v23 }
 0x2b4   :  { %4870 = vmatprep.subr.bf16.mxu1 %v9521_v31  ;;  %4932 = vmatpush1.bf16.msra.mxu0 %v6532_v47 }
 0x2b5   :  { %4934 = vmatprep.subr.bf16.mxu0 %v6542_v50 }
 0x2b7   :  { %4872 = vmatpush1.bf16.msra.mxu1 %v9522_v19 }
 0x2b8   :  { %4874 = vmatprep.subr.bf16.mxu1 %v9523_v48  ;;  %4936 = vmatpush1.bf16.msra.mxu0 %v6569_v57 }
 0x2b9   :  { %4938 = vmatprep.subr.bf16.mxu0 %v6573_v58 }
 0x2bb   :  { %4876 = vmatpush1.bf16.msra.mxu1 %v9524_v32 }
 0x2bc   :  { %4878 = vmatprep.subr.bf16.mxu1 %v9525_v12  ;;  %4940 = vmatpush1.bf16.msra.mxu0 %v6599_v0 }
 0x2bd   :  { %4942 = vmatprep.subr.bf16.mxu0 %v6603_v1 }
 0x2bf   :  { %4880 = vmatpush1.bf16.msra.mxu1 %v9526_v45 }
 0x2c0   :  { %4882 = vmatprep.subr.bf16.mxu1 %v9527_v24  ;;  %4944 = vmatpush1.bf16.msra.mxu0 %v6628_v8 }
 0x2c1   :  { %4946 = vmatprep.subr.bf16.mxu0 %v6632_v9 }
 0x2c3   :  { %4884 = vmatpush1.bf16.msra.mxu1 %v9528_v60 }
 0x2c4   :  { %4886 = vmatprep.subr.bf16.mxu1 %v9529_v38  ;;  %4948 = vmatpush1.bf16.msra.mxu0 %v6657_v17 }
 0x2c5   :  { %4950 = vmatprep.subr.bf16.mxu0 %v6661_v18 }
 0x2c7   :  { %4888 = vmatpush1.bf16.msra.mxu1 %v9530_v44 }
 0x2c8   :  { %4890 = vmatprep.subr.bf16.mxu1 %v9531_v39  ;;  %4952 = vmatpush1.bf16.msra.mxu0 %v6686_v29 }
 0x2c9   :  { %4954 = vmatprep.subr.bf16.mxu0 %v6690_v30 }
 0x2cb   :  { %4892 = vmatpush1.bf16.msra.mxu1 %v7347_v56 }
 0x2cc   :  { %4894 = vmatprep.subr.bf16.mxu1 %v7356_v49  ;;  %4956 = vmatpush1.bf16.msra.mxu0 %v6715_v42 }
 0x2cd   :  { %4958 = vmatprep.subr.bf16.mxu0 %v9595_v20  ;;  %v9663_v20 = vld [vmem:[#allocation160_spill] sm:$0xff] }
 0x2cf   :  { %4896 = vmatpush1.bf16.msra.mxu1 %v9596_v62 }
 0x2d0   :  { %4898 = vmatprep.subr.bf16.mxu1 %v9597_v46  ;;  %4960 = vmatpush1.bf16.msra.mxu0 %v9598_v6  ;;  %v9662_v46 = vld [vmem:[#allocation134_spill] sm:$0xff] }
 0x2d1   :  { %4962 = vmatprep.subr.bf16.mxu0 %v9599_v35  ;;  %v9661_v35 = vld [vmem:[#allocation99_spill] sm:$0xff] }
 0x2d3   :  { %4900 = vmatpush1.bf16.msra.mxu1 %v9600_v59  ;;  %v9660_v59 = vld [vmem:[#allocation97_spill] sm:$0xff] }
 0x2d4   :  { %4902 = vmatprep.subr.bf16.mxu1 %v9601_v54  ;;  %4964 = vmatpush1.bf16.msra.mxu0 %v9602_v28  ;;  %v9659_v28 = vld [vmem:[#allocation158_spill] sm:$0xff] }
 0x2d5   :  { %4966 = vmatprep.subr.bf16.mxu0 %v9603_v52  ;;  %v9658_v52 = vld [vmem:[#allocation130_spill] sm:$0xff] }
 0x2d7   :  { %4904 = vmatpush1.bf16.msra.mxu1 %v9604_v43 }
 0x2d8   :  { %4906 = vmatprep.subr.bf16.mxu1 %v9605_v13  ;;  %4968 = vmatpush1.bf16.msra.mxu0 %v9606_v4  ;;  %v9656_v4 = vld [vmem:[#allocation93_spill] sm:$0xff]  ;;  %v9657_v13 = vld [vmem:[#allocation95_spill] sm:$0xff] }
 0x2d9   :  { %4970 = vmatprep.subr.bf16.mxu0 %v9607_v51  ;;  %v9618_v51 = vld [vmem:[#allocation26_spill] sm:$0xff] }
 0x2db   :  { %4908 = vmatpush1.bf16.msra.mxu1 %v9608_v53  ;;  %v9619_v53 = vld [vmem:[#allocation28_spill] sm:$0xff] }
 0x2dc   :  { %4910 = vmatprep.subr.bf16.mxu1 %v9609_v26  ;;  %4972 = vmatpush1.bf16.msra.mxu0 %v9610_v15  ;;  %v9620_v26 = vld [vmem:[#allocation81_spill] sm:$0xff]  ;;  %v9621_v15 = vld [vmem:[#allocation6_spill] sm:$0xff] }
 0x2dd   :  { %4974 = vmatprep.subr.bf16.mxu0 %v9611_v22  ;;  %v9622_v22 = vld [vmem:[#allocation30_spill] sm:$0xff] }
 0x2df   :  { %4912 = vmatpush1.bf16.msra.mxu1 %v9612_v37  ;;  %v9623_v37 = vld [vmem:[#allocation32_spill] sm:$0xff] }
 0x2e0   :  { %4914 = vmatprep.subr.bf16.mxu1 %v9613_v36  ;;  %4976 = vmatpush1.bf16.msra.mxu0 %v9614_v55  ;;  %v9633_v55 = vld [vmem:[#allocation29_spill] sm:$0xff]  ;;  %v9636_v36 = vld [vmem:[#allocation35_spill] sm:$0xff] }
 0x2e1   :  { %4978 = vmatprep.subr.bf16.mxu0 %v9615_v25  ;;  %v9624_v25 = vld [vmem:[#allocation11_spill] sm:$0xff] }
 0x2e3   :  { %4916 = vmatpush1.bf16.msra.mxu1 %v9616_v21  ;;  %v9625_v21 = vld [vmem:[#allocation13_spill] sm:$0xff] }
 0x2e4   :  { %4918 = vmatprep.subr.bf16.mxu1 %v9617_v14  ;;  %4980 = vmatpush1.bf16.msra.mxu0 %v9618_v51  ;;  %v9626_v51 = vld [vmem:[#allocation15_spill] sm:$0xff] }
 0x2e5   :  { %4982 = vmatprep.subr.bf16.mxu0 %v9619_v53  ;;  %v9627_v53 = vld [vmem:[#allocation17_spill] sm:$0xff]  ;;  %v9632_v14 = vld [vmem:[#allocation27_spill] sm:$0xff] }
 0x2e7   :  { %4920 = vmatpush1.bf16.msra.mxu1 %v9620_v26  ;;  %v9628_v26 = vld [vmem:[#allocation19_spill] sm:$0xff] }
 0x2e8   :  { %4986 = vmatprep.subr.bf16.mxu1 %v9621_v15  ;;  %4984 = vmatpush1.bf16.msra.mxu0 %v9622_v22  ;;  %v9629_v15 = vld [vmem:[#allocation21_spill] sm:$0xff]  ;;  %v9630_v22 = vld [vmem:[#allocation23_spill] sm:$0xff] }
 0x2e9   :  { %5050 = vmatprep.subr.bf16.mxu0 %v9623_v37  ;;  %v9631_v37 = vld [vmem:[#allocation25_spill] sm:$0xff] }
 0x2ea   :  { %1839 = vmatmul.mubr.f32.vlgmr.msra.gmra.mrb[54].mxu1 %v8038_v16 }
 0x2eb   :  { %1844 = vmatprep.mubr.f32.mxu1 %v8051_v63  ;;  %4988 = vmatpush1.bf16.msra.mxu1 %v9624_v25  ;;  %v9634_v25 = vld [vmem:[#allocation31_spill] sm:$0xff] }
 0x2ec   :  { %4990 = vmatprep.subr.bf16.mxu1 %v9625_v21  ;;  %v9635_v21 = vld [vmem:[#allocation33_spill] sm:$0xff] }
 0x2ee   :  { %1845 = vmatmul.mubr.f32.gmra.mrb[56].mxu1 %v8048_v7 }
 0x2ef   :  { %4992 = vmatpush1.bf16.msra.mxu1 %v9626_v51  ;;  %v9637_v51 = vld [vmem:[#allocation37_spill] sm:$0xff] }
 0x2f0   :  { %4994 = vmatprep.subr.bf16.mxu1 %v9627_v53  ;;  %v9638_v53 = vld [vmem:[#allocation39_spill] sm:$0xff] }
 0x2f3   :  { %4996 = vmatpush1.bf16.msra.mxu1 %v9628_v26  ;;  %v9639_v26 = vld [vmem:[#allocation41_spill] sm:$0xff] }
 0x2f4   :  { %4998 = vmatprep.subr.bf16.mxu1 %v9629_v15  ;;  %v9640_v15 = vld [vmem:[#allocation43_spill] sm:$0xff] }
 0x2f7   :  { %5000 = vmatpush1.bf16.msra.mxu1 %v9630_v22  ;;  %v9641_v22 = vld [vmem:[#allocation45_spill] sm:$0xff] }
 0x2f8   :  { %5002 = vmatprep.subr.bf16.mxu1 %v9631_v37  ;;  %v9642_v37 = vld [vmem:[#allocation47_spill] sm:$0xff] }
 0x2fb   :  { %5004 = vmatpush1.bf16.msra.mxu1 %v9632_v14  ;;  %v9643_v14 = vld [vmem:[#allocation49_spill] sm:$0xff] }
 0x2fc   :  { %5006 = vmatprep.subr.bf16.mxu1 %v9633_v55  ;;  %v9644_v55 = vld [vmem:[#allocation51_spill] sm:$0xff] }
 0x2ff   :  { %5008 = vmatpush1.bf16.msra.mxu1 %v9634_v25  ;;  %v9645_v25 = vld [vmem:[#allocation53_spill] sm:$0xff] }
 0x300   :  { %5010 = vmatprep.subr.bf16.mxu1 %v9635_v21  ;;  %v9646_v21 = vld [vmem:[#allocation55_spill] sm:$0xff] }
 0x303   :  { %5012 = vmatpush1.bf16.msra.mxu1 %v9636_v36  ;;  %v9647_v36 = vld [vmem:[#allocation57_spill] sm:$0xff] }
 0x304   :  { %5014 = vmatprep.subr.bf16.mxu1 %v9637_v51  ;;  %v9648_v51 = vld [vmem:[#allocation59_spill] sm:$0xff] }
 0x307   :  { %5016 = vmatpush1.bf16.msra.mxu1 %v9638_v53  ;;  %v9649_v53 = vld [vmem:[#allocation61_spill] sm:$0xff] }
 0x308   :  { %5018 = vmatprep.subr.bf16.mxu1 %v9639_v26  ;;  %v9650_v26 = vld [vmem:[#allocation63_spill] sm:$0xff] }
 0x30b   :  { %5020 = vmatpush1.bf16.msra.mxu1 %v9640_v15  ;;  %v9651_v15 = vld [vmem:[#allocation65_spill] sm:$0xff] }
 0x30c   :  { %5022 = vmatprep.subr.bf16.mxu1 %v9641_v22  ;;  %v9652_v22 = vld [vmem:[#allocation66_spill] sm:$0xff] }
 0x30f   :  { %5024 = vmatpush1.bf16.msra.mxu1 %v9642_v37  ;;  %v9653_v37 = vld [vmem:[#allocation67_spill] sm:$0xff] }
 0x310   :  { %5026 = vmatprep.subr.bf16.mxu1 %v9643_v14  ;;  %v9654_v14 = vld [vmem:[#allocation69_spill] sm:$0xff] }
 0x313   :  { %5028 = vmatpush1.bf16.msra.mxu1 %v9644_v55  ;;  %v9655_v55 = vld [vmem:[#allocation5_spill] sm:$0xff] }
 0x314   :  { %5030 = vmatprep.subr.bf16.mxu1 %v9645_v25 }
 0x317   :  { %5032 = vmatpush1.bf16.msra.mxu1 %v9646_v21 }
 0x318   :  { %5034 = vmatprep.subr.bf16.mxu1 %v9647_v36 }
 0x31b   :  { %5036 = vmatpush1.bf16.msra.mxu1 %v9648_v51 }
 0x31c   :  { %5038 = vmatprep.subr.bf16.mxu1 %v9649_v53 }
 0x31f   :  { %5040 = vmatpush1.bf16.msra.mxu1 %v9650_v26 }
 0x320   :  { %5042 = vmatprep.subr.bf16.mxu1 %v9651_v15 }
 0x323   :  { %5044 = vmatpush1.bf16.msra.mxu1 %v9652_v22 }
 0x324   :  { %5046 = vmatprep.subr.bf16.mxu1 %v9653_v37 }
 0x327   :  { %5048 = vmatpush1.bf16.msra.mxu1 %v9654_v14 }
 0x328   :  { %5114 = vmatprep.subr.bf16.mxu1 %v9655_v55 }
 0x37d   :  { %v1686_v25 = vpop.f32.mrb[50].mxu1  ;;  %v1763_v21 = vpop.f32.mrb[70].mxu0 }
 0x37e   :  { %v1851_v36 = vadd.f32 %v1686_v25, %v9656_v4  ;;  %v1879_v51 = vadd.f32 %v1763_v21, %v9657_v13  ;;  %v1688_v43 = vpop.f32.mrb[51].mxu1  ;;  %v1765_v53 = vpop.f32.mrb[71].mxu0 }
 0x37f   :  { %v1852_v26 = vadd.f32 %v1688_v43, %v9658_v52  ;;  %v1880_v15 = vadd.f32 %v1765_v53, %v9659_v28 }
 0x380   :  { %v4135_v4 = vmul.f32 -1.442695, %v1851_v36  ;;  %v4139_v28 = vmul.f32 -1.442695, %v1879_v51 }
 0x381   :  { %v1692_v54 = vpop.f32.mrb[52].mxu1  ;;  %v1769_v22 = vpop.f32.mrb[72].mxu0  ;;  %v4136_v21 = vmul.f32 -1.442695, %v1852_v26  ;;  %v4140_v43 = vmul.f32 -1.442695, %v1880_v15 }
 0x382   :  { %v1853_v37 = vadd.f32 %v1692_v54, %v9660_v59  ;;  %v1881_v14 = vadd.f32 %v1769_v22, %v9661_v35  ;;  %v1694_v6 = vpop.f32.mrb[53].mxu1  ;;  %v1771_v55 = vpop.f32.mrb[73].mxu0  ;;  %6068 = vpow2.f32 %v4135_v4 }
 0x383   :  { %v1854_v62 = vadd.f32 %v1694_v6, %v9662_v46  ;;  %v1882_v25 = vadd.f32 %v1771_v55, %v9663_v20  ;;  %6070 = vpow2.f32 %v4136_v21 }
 0x384   :  { %v4137_v13 = vmul.f32 -1.442695, %v1853_v37  ;;  %v4141_v53 = vmul.f32 -1.442695, %v1881_v14 }
 0x385   :  { %v4138_v52 = vmul.f32 -1.442695, %v1854_v62  ;;  %v4142_v54 = vmul.f32 -1.442695, %v1882_v25 }
 0x386   :  { %6072 = vpow2.f32 %v4137_v13 }
 0x387   :  { %6074 = vpow2.f32 %v4138_v52 }
 0x388   :  { %6076 = vpow2.f32 %v4139_v28 }
 0x389   :  { %6078 = vpow2.f32 %v4140_v43 }
 0x38a   :  { %6080 = vpow2.f32 %v4141_v53 }
 0x38b   :  { %6082 = vpow2.f32 %v4142_v54 }
 0x38c   :  { %v6069_v59 = vpop.eup %6068 }
 0x38d   :  { %v6071_v35 = vpop.eup %6070  ;;  %v1867_v22 = vadd.f32 1.0, %v6069_v59 }
 0x38e   :  { %v1868_v55 = vadd.f32 1.0, %v6071_v35 }
 0x38f   :  { %6084 = vrcp.f32 %v1867_v22  ;;  %v9664_v22 = vld [vmem:[#allocation104_spill] sm:$0xff] }
 0x390   :  { %v6073_v46 = vpop.eup %6072  ;;  %6086 = vrcp.f32 %v1868_v55 }
 0x391   :  { %v6075_v20 = vpop.eup %6074  ;;  %v1869_v6 = vadd.f32 1.0, %v6073_v46 }
 0x392   :  { %v1870_v62 = vadd.f32 1.0, %v6075_v20  ;;  %v6077_v26 = vpop.eup %6076 }
 0x393   :  { %6088 = vrcp.f32 %v1869_v6  ;;  %v6079_v51 = vpop.eup %6078  ;;  %v1895_v37 = vadd.f32 1.0, %v6077_v26 }
 0x394   :  { %6090 = vrcp.f32 %v1870_v62  ;;  %v6081_v14 = vpop.eup %6080  ;;  %v1896_v36 = vadd.f32 1.0, %v6079_v51  ;;  %v9665_v62 = vld [vmem:[#allocation159_spill] sm:$0xff] }
 0x395   :  { %v6083_v15 = vpop.eup %6082  ;;  %v1897_v4 = vadd.f32 1.0, %v6081_v14  ;;  %6092 = vrcp.f32 %v1895_v37 }
 0x396   :  { %v1898_v28 = vadd.f32 1.0, %v6083_v15  ;;  %6094 = vrcp.f32 %v1896_v36  ;;  %v9666_v36 = vld [vmem:[#allocation108_spill] sm:$0xff] }
 0x397   :  { %6096 = vrcp.f32 %v1897_v4 }
 0x398   :  { %6098 = vrcp.f32 %v1898_v28 }
 0x399   :  { %v6085_v52 = vpop.eup %6084 }
 0x39a   :  { %v6087_v53 = vpop.eup %6086 }
 0x39d   :  { %v6089_v6 = vpop.eup %6088 }
 0x39e   :  { %v6091_v14 = vpop.eup %6090 }
 0x3bd   :  { %v1840_v25 = vpop.f32.mrb[54].mxu1 }
 0x3be   :  { %v1907_v21 = vadd.f32 %v1840_v25, %v7886_v10  ;;  %v1842_v13 = vpop.f32.mrb[55].mxu1 }
 0x3bf   :  { %v1908_v43 = vadd.f32 %v1842_v13, %v7890_v5  ;;  %v6093_v13 = vpop.eup %6092 }
 0x3c0   :  { %v1911_v59 = vmul.f32 %v6085_v52, %v1907_v21  ;;  %v9667_v21 = vld [vmem:[#allocation161_spill] sm:$0xff]  ;;  %v6095_v52 = vpop.eup %6094  ;;  %v1923_v28 = vsub.f32 1.0, %v6093_v13 }
 0x3c1   :  { %v1912_v54 = vmul.f32 %v6087_v53, %v1908_v43  ;;  %v1846_v35 = vpop.f32.mrb[56].mxu1  ;;  %v6097_v43 = vpop.eup %6096 }
 0x3c2   :  { %v1915_v46 = vadd.f32 %v1911_v59, %v9664_v22  ;;  %v1909_v55 = vadd.f32 %v1846_v35, %v7886_v10  ;;  %v1848_v20 = vpop.f32.mrb[57].mxu1  ;;  %v6099_v53 = vpop.eup %6098  ;;  %v1931_v22 = vmul.f32 %v6093_v13, %v8038_v16  ;;  %v9693_v16 = vld [vmem:[#allocation79_spill] sm:$0xff] }
 0x3c3   :  { %v1916_v26 = vadd.f32 %v1912_v54, %v9665_v62  ;;  %v1910_v51 = vadd.f32 %v1848_v20, %v7890_v5  ;;  %v1924_v54 = vsub.f32 1.0, %v6095_v52 }
 0x3c4   :  { %6100 = vtanh.f32 %v1915_v46  ;;  %v1913_v15 = vmul.f32 %v6089_v6, %v1909_v55  ;;  %v1932_v55 = vmul.f32 %v6095_v52, %v8040_v27  ;;  %v1925_v6 = vsub.f32 1.0, %v6097_v43  ;;  %v9672_v52 = vld [vmem:[#allocation7_spill] sm:$0xff]  ;;  %v9694_v27 = vld [vmem:[#allocation80_spill] sm:$0xff] }
 0x3c5   :  { %6102 = vtanh.f32 %v1916_v26  ;;  %v1914_v37 = vmul.f32 %v6091_v14, %v1910_v51  ;;  %v1926_v51 = vsub.f32 1.0, %v6099_v53 }
 0x3c6   :  { %v1917_v25 = vadd.f32 %v1913_v15, %v9666_v36 }
 0x3c7   :  { %v1918_v4 = vadd.f32 %v1914_v37, %v9667_v21  ;;  %v1933_v37 = vmul.f32 %v6097_v43, %v8048_v7  ;;  %v9673_v43 = vld [vmem:[#allocation68_spill] sm:$0xff] }
 0x3c8   :  { %6104 = vtanh.f32 %v1917_v25  ;;  %v1934_v25 = vmul.f32 %v6099_v53, %v8051_v63  ;;  %v9674_v53 = vld [vmem:[#allocation70_spill] sm:$0xff]  ;;  %v9692_v7 = vld [vmem:[#allocation24_spill] sm:$0xff] }
 0x3c9   :  { %6106 = vtanh.f32 %v1918_v4  ;;  %v9691_v63 = vld [vmem:[#allocation22_spill] sm:$0xff] }
 0x3ce   :  { %v6101_v59 = vpop.eup %6100 }
 0x3cf   :  { %v6103_v35 = vpop.eup %6102  ;;  %v1927_v46 = vmul.f32 %v6101_v59, %v1923_v28  ;;  %v9675_v28 = vld [vmem:[#allocation8_spill] sm:$0xff]  ;;  %v9676_v59 = vld [vmem:[#allocation9_spill] sm:$0xff] }
 0x3d0   :  { %v1928_v20 = vmul.f32 %v6103_v35, %v1924_v54  ;;  %v9677_v54 = vld [vmem:[#allocation71_spill] sm:$0xff]  ;;  %v9678_v35 = vld [vmem:[#allocation72_spill] sm:$0xff] }
 0x3d1   :  { %v8174_v62 = vadd.f32 %v1931_v22, %v1927_v46  ;;  %v9679_v22 = vld [vmem:[#allocation10_spill] sm:$0xff]  ;;  %v9680_v46 = vld [vmem:[#allocation12_spill] sm:$0xff] }
 0x3d2   :  { %v6105_v26 = vpop.eup %6104  ;;  %v8176_v14 = vadd.f32 %v1932_v55, %v1928_v20  ;;  %v9681_v55 = vld [vmem:[#allocation73_spill] sm:$0xff]  ;;  %v9682_v20 = vld [vmem:[#allocation74_spill] sm:$0xff] }
 0x3d3   :  { %9668 = vst [vmem:[#allocation44_spill] sm:$0xff] %v8174_v62  ;;  %v6107_v15 = vpop.eup %6106  ;;  %v1929_v36 = vmul.f32 %v6105_v26, %v1925_v6  ;;  %v9683_v6 = vld [vmem:[#allocation14_spill] sm:$0xff]  ;;  %v9684_v26 = vld [vmem:[#allocation16_spill] sm:$0xff] }
 0x3d4   :  { %9669 = vst [vmem:[#allocation46_spill] sm:$0xff] %v8176_v14  ;;  %v1930_v21 = vmul.f32 %v6107_v15, %v1926_v51  ;;  %2025 = vmatprep.mubr.f32.mxu0 %v8176_v14  ;;  %2102 = vmatprep.mubr.f32.mxu1 %v8176_v14  ;;  %v9685_v51 = vld [vmem:[#allocation75_spill] sm:$0xff]  ;;  %v9686_v15 = vld [vmem:[#allocation76_spill] sm:$0xff] }
 0x3d5   :  { %2026 = vmatmul.mubr.f32.vlgmr.msra.gmra.mrb[74].mxu0 %v8174_v62  ;;  %2103 = vmatmul.mubr.f32.vlgmr.msra.gmra.mrb[58].mxu1 %v8174_v62  ;;  %v8184_v4 = vadd.f32 %v1933_v37, %v1929_v36  ;;  %v9687_v37 = vld [vmem:[#allocation18_spill] sm:$0xff]  ;;  %v9688_v36 = vld [vmem:[#allocation20_spill] sm:$0xff] }
 0x3d6   :  { %5052 = vmatpush1.bf16.msra.mxu0 %v9515_v2  ;;  %v8187_v13 = vadd.f32 %v1934_v25, %v1930_v21  ;;  %5116 = vmatpush1.bf16.msra.mxu1 %v6476_v33  ;;  %v9689_v25 = vld [vmem:[#allocation77_spill] sm:$0xff]  ;;  %v9690_v21 = vld [vmem:[#allocation78_spill] sm:$0xff] }
 0x3d7   :  { %9670 = vst [vmem:[#allocation48_spill] sm:$0xff] %v8184_v4  ;;  %5054 = vmatprep.subr.bf16.mxu0 %v9517_v3  ;;  %5118 = vmatprep.subr.bf16.mxu1 %v6478_v34 }
 0x3d8   :  { %9671 = vst [vmem:[#allocation50_spill] sm:$0xff] %v8187_v13  ;;  %2031 = vmatprep.mubr.f32.mxu0 %v8187_v13  ;;  %2108 = vmatprep.mubr.f32.mxu1 %v8187_v13 }
 0x3d9   :  { %2032 = vmatmul.mubr.f32.gmra.mrb[76].mxu0 %v8184_v4  ;;  %2109 = vmatmul.mubr.f32.gmra.mrb[60].mxu1 %v8184_v4 }
 0x3da   :  { %5056 = vmatpush1.bf16.msra.mxu0 %v9518_v61  ;;  %2179 = vmatprep.mubr.f32.mxu0 %v8176_v14 }
 0x3db   :  { %5058 = vmatprep.subr.bf16.mxu0 %v9519_v11  ;;  %5120 = vmatpush1.bf16.msra.mxu1 %v6503_v40 }
 0x3dc   :  { %5122 = vmatprep.subr.bf16.mxu1 %v6507_v41 }
 0x3de   :  { %5060 = vmatpush1.bf16.msra.mxu0 %v9520_v23 }
 0x3df   :  { %5062 = vmatprep.subr.bf16.mxu0 %v9521_v31  ;;  %5124 = vmatpush1.bf16.msra.mxu1 %v6532_v47 }
 0x3e0   :  { %5126 = vmatprep.subr.bf16.mxu1 %v6542_v50 }
 0x3e2   :  { %5064 = vmatpush1.bf16.msra.mxu0 %v9522_v19 }
 0x3e3   :  { %5066 = vmatprep.subr.bf16.mxu0 %v9523_v48  ;;  %5128 = vmatpush1.bf16.msra.mxu1 %v6569_v57 }
 0x3e4   :  { %5130 = vmatprep.subr.bf16.mxu1 %v6573_v58 }
 0x3e6   :  { %5068 = vmatpush1.bf16.msra.mxu0 %v9524_v32 }
 0x3e7   :  { %5070 = vmatprep.subr.bf16.mxu0 %v9525_v12  ;;  %5132 = vmatpush1.bf16.msra.mxu1 %v6599_v0 }
 0x3e8   :  { %5134 = vmatprep.subr.bf16.mxu1 %v6603_v1 }
 0x3ea   :  { %5072 = vmatpush1.bf16.msra.mxu0 %v9526_v45 }
 0x3eb   :  { %5074 = vmatprep.subr.bf16.mxu0 %v9527_v24  ;;  %5136 = vmatpush1.bf16.msra.mxu1 %v6628_v8 }
 0x3ec   :  { %5138 = vmatprep.subr.bf16.mxu1 %v6632_v9 }
 0x3ee   :  { %5076 = vmatpush1.bf16.msra.mxu0 %v9528_v60 }
 0x3ef   :  { %5078 = vmatprep.subr.bf16.mxu0 %v9529_v38  ;;  %5140 = vmatpush1.bf16.msra.mxu1 %v6657_v17 }
 0x3f0   :  { %5142 = vmatprep.subr.bf16.mxu1 %v6661_v18 }
 0x3f2   :  { %5080 = vmatpush1.bf16.msra.mxu0 %v9530_v44 }
 0x3f3   :  { %5082 = vmatprep.subr.bf16.mxu0 %v9531_v39  ;;  %5144 = vmatpush1.bf16.msra.mxu1 %v6686_v29 }
 0x3f4   :  { %5146 = vmatprep.subr.bf16.mxu1 %v6690_v30 }
 0x3f6   :  { %5084 = vmatpush1.bf16.msra.mxu0 %v7347_v56 }
 0x3f7   :  { %5086 = vmatprep.subr.bf16.mxu0 %v7356_v49  ;;  %5148 = vmatpush1.bf16.msra.mxu1 %v6715_v42 }
 0x3f8   :  { %5150 = vmatprep.subr.bf16.mxu1 %v9672_v52  ;;  %v9740_v52 = vld [vmem:[#allocation156_spill] sm:$0xff] }
 0x3fa   :  { %5088 = vmatpush1.bf16.msra.mxu0 %v9673_v43 }
 0x3fb   :  { %5090 = vmatprep.subr.bf16.mxu0 %v9674_v53  ;;  %5152 = vmatpush1.bf16.msra.mxu1 %v9675_v28  ;;  %v9739_v53 = vld [vmem:[#allocation126_spill] sm:$0xff] }
 0x3fc   :  { %5154 = vmatprep.subr.bf16.mxu1 %v9676_v59  ;;  %v9738_v59 = vld [vmem:[#allocation107_spill] sm:$0xff] }
 0x3fe   :  { %5092 = vmatpush1.bf16.msra.mxu0 %v9677_v54  ;;  %v9737_v54 = vld [vmem:[#allocation105_spill] sm:$0xff] }
 0x3ff   :  { %5094 = vmatprep.subr.bf16.mxu0 %v9678_v35  ;;  %5156 = vmatpush1.bf16.msra.mxu1 %v9679_v22  ;;  %v9736_v22 = vld [vmem:[#allocation154_spill] sm:$0xff] }
 0x400   :  { %5158 = vmatprep.subr.bf16.mxu1 %v9680_v46  ;;  %v9735_v46 = vld [vmem:[#allocation122_spill] sm:$0xff] }
 0x402   :  { %5096 = vmatpush1.bf16.msra.mxu0 %v9681_v55 }
 0x403   :  { %5098 = vmatprep.subr.bf16.mxu0 %v9682_v20  ;;  %5160 = vmatpush1.bf16.msra.mxu1 %v9683_v6  ;;  %v9733_v6 = vld [vmem:[#allocation101_spill] sm:$0xff]  ;;  %v9734_v20 = vld [vmem:[#allocation103_spill] sm:$0xff] }
 0x404   :  { %5162 = vmatprep.subr.bf16.mxu1 %v9684_v26  ;;  %v9695_v26 = vld [vmem:[#allocation26_spill] sm:$0xff] }
 0x406   :  { %5100 = vmatpush1.bf16.msra.mxu0 %v9685_v51  ;;  %v9696_v51 = vld [vmem:[#allocation28_spill] sm:$0xff] }
 0x407   :  { %5102 = vmatprep.subr.bf16.mxu0 %v9686_v15  ;;  %5164 = vmatpush1.bf16.msra.mxu1 %v9687_v37  ;;  %v9697_v15 = vld [vmem:[#allocation81_spill] sm:$0xff]  ;;  %v9698_v37 = vld [vmem:[#allocation6_spill] sm:$0xff] }
 0x408   :  { %5166 = vmatprep.subr.bf16.mxu1 %v9688_v36  ;;  %v9699_v36 = vld [vmem:[#allocation30_spill] sm:$0xff] }
 0x40a   :  { %5104 = vmatpush1.bf16.msra.mxu0 %v9689_v25  ;;  %v9700_v25 = vld [vmem:[#allocation32_spill] sm:$0xff] }
 0x40b   :  { %5106 = vmatprep.subr.bf16.mxu0 %v9690_v21  ;;  %5168 = vmatpush1.bf16.msra.mxu1 %v9691_v63  ;;  %v9710_v63 = vld [vmem:[#allocation29_spill] sm:$0xff]  ;;  %v9713_v21 = vld [vmem:[#allocation35_spill] sm:$0xff] }
 0x40c   :  { %5170 = vmatprep.subr.bf16.mxu1 %v9692_v7  ;;  %v9701_v7 = vld [vmem:[#allocation11_spill] sm:$0xff] }
 0x40e   :  { %5108 = vmatpush1.bf16.msra.mxu0 %v9693_v16  ;;  %v9702_v16 = vld [vmem:[#allocation13_spill] sm:$0xff] }
 0x40f   :  { %5110 = vmatprep.subr.bf16.mxu0 %v9694_v27  ;;  %5172 = vmatpush1.bf16.msra.mxu1 %v9695_v26  ;;  %v9703_v26 = vld [vmem:[#allocation15_spill] sm:$0xff] }
 0x410   :  { %5174 = vmatprep.subr.bf16.mxu1 %v9696_v51  ;;  %v9704_v51 = vld [vmem:[#allocation17_spill] sm:$0xff]  ;;  %v9709_v27 = vld [vmem:[#allocation27_spill] sm:$0xff] }
 0x412   :  { %5112 = vmatpush1.bf16.msra.mxu0 %v9697_v15  ;;  %v9705_v15 = vld [vmem:[#allocation19_spill] sm:$0xff] }
 0x413   :  { %5178 = vmatprep.subr.bf16.mxu0 %v9698_v37  ;;  %5176 = vmatpush1.bf16.msra.mxu1 %v9699_v36  ;;  %v9706_v37 = vld [vmem:[#allocation21_spill] sm:$0xff]  ;;  %v9707_v36 = vld [vmem:[#allocation23_spill] sm:$0xff] }
 0x414   :  { %5242 = vmatprep.subr.bf16.mxu1 %v9700_v25  ;;  %v9708_v25 = vld [vmem:[#allocation25_spill] sm:$0xff] }
 0x415   :  { %2180 = vmatmul.mubr.f32.vlgmr.msra.gmra.mrb[78].mxu0 %v8174_v62 }
 0x416   :  { %2185 = vmatprep.mubr.f32.mxu0 %v8187_v13  ;;  %5180 = vmatpush1.bf16.msra.mxu0 %v9701_v7  ;;  %v9711_v7 = vld [vmem:[#allocation31_spill] sm:$0xff] }
 0x417   :  { %5182 = vmatprep.subr.bf16.mxu0 %v9702_v16  ;;  %v9712_v16 = vld [vmem:[#allocation33_spill] sm:$0xff] }
 0x419   :  { %2186 = vmatmul.mubr.f32.gmra.mrb[80].mxu0 %v8184_v4 }
 0x41a   :  { %5184 = vmatpush1.bf16.msra.mxu0 %v9703_v26  ;;  %v9714_v26 = vld [vmem:[#allocation37_spill] sm:$0xff] }
 0x41b   :  { %5186 = vmatprep.subr.bf16.mxu0 %v9704_v51  ;;  %v9715_v51 = vld [vmem:[#allocation39_spill] sm:$0xff] }
 0x41e   :  { %5188 = vmatpush1.bf16.msra.mxu0 %v9705_v15  ;;  %v9716_v15 = vld [vmem:[#allocation41_spill] sm:$0xff] }
 0x41f   :  { %5190 = vmatprep.subr.bf16.mxu0 %v9706_v37  ;;  %v9717_v37 = vld [vmem:[#allocation43_spill] sm:$0xff] }
 0x422   :  { %5192 = vmatpush1.bf16.msra.mxu0 %v9707_v36  ;;  %v9718_v36 = vld [vmem:[#allocation45_spill] sm:$0xff] }
 0x423   :  { %5194 = vmatprep.subr.bf16.mxu0 %v9708_v25  ;;  %v9719_v25 = vld [vmem:[#allocation47_spill] sm:$0xff] }
 0x426   :  { %5196 = vmatpush1.bf16.msra.mxu0 %v9709_v27  ;;  %v9720_v27 = vld [vmem:[#allocation49_spill] sm:$0xff] }
 0x427   :  { %5198 = vmatprep.subr.bf16.mxu0 %v9710_v63  ;;  %v9721_v63 = vld [vmem:[#allocation51_spill] sm:$0xff] }
 0x42a   :  { %5200 = vmatpush1.bf16.msra.mxu0 %v9711_v7  ;;  %v9722_v7 = vld [vmem:[#allocation53_spill] sm:$0xff] }
 0x42b   :  { %5202 = vmatprep.subr.bf16.mxu0 %v9712_v16  ;;  %v9723_v16 = vld [vmem:[#allocation55_spill] sm:$0xff] }
 0x42e   :  { %5204 = vmatpush1.bf16.msra.mxu0 %v9713_v21  ;;  %v9724_v21 = vld [vmem:[#allocation57_spill] sm:$0xff] }
 0x42f   :  { %5206 = vmatprep.subr.bf16.mxu0 %v9714_v26  ;;  %v9725_v26 = vld [vmem:[#allocation59_spill] sm:$0xff] }
 0x432   :  { %5208 = vmatpush1.bf16.msra.mxu0 %v9715_v51  ;;  %v9726_v51 = vld [vmem:[#allocation61_spill] sm:$0xff] }
 0x433   :  { %5210 = vmatprep.subr.bf16.mxu0 %v9716_v15  ;;  %v9727_v15 = vld [vmem:[#allocation63_spill] sm:$0xff] }
 0x436   :  { %5212 = vmatpush1.bf16.msra.mxu0 %v9717_v37  ;;  %v9728_v37 = vld [vmem:[#allocation65_spill] sm:$0xff] }
 0x437   :  { %5214 = vmatprep.subr.bf16.mxu0 %v9718_v36  ;;  %v9729_v36 = vld [vmem:[#allocation66_spill] sm:$0xff] }
 0x43a   :  { %5216 = vmatpush1.bf16.msra.mxu0 %v9719_v25  ;;  %v9730_v25 = vld [vmem:[#allocation67_spill] sm:$0xff] }
 0x43b   :  { %5218 = vmatprep.subr.bf16.mxu0 %v9720_v27  ;;  %v9731_v27 = vld [vmem:[#allocation69_spill] sm:$0xff] }
 0x43e   :  { %5220 = vmatpush1.bf16.msra.mxu0 %v9721_v63  ;;  %v9732_v63 = vld [vmem:[#allocation5_spill] sm:$0xff] }
 0x43f   :  { %5222 = vmatprep.subr.bf16.mxu0 %v9722_v7 }
 0x442   :  { %5224 = vmatpush1.bf16.msra.mxu0 %v9723_v16 }
 0x443   :  { %5226 = vmatprep.subr.bf16.mxu0 %v9724_v21 }
 0x446   :  { %5228 = vmatpush1.bf16.msra.mxu0 %v9725_v26 }
 0x447   :  { %5230 = vmatprep.subr.bf16.mxu0 %v9726_v51 }
 0x44a   :  { %5232 = vmatpush1.bf16.msra.mxu0 %v9727_v15 }
 0x44b   :  { %5234 = vmatprep.subr.bf16.mxu0 %v9728_v37 }
 0x44e   :  { %5236 = vmatpush1.bf16.msra.mxu0 %v9729_v36 }
 0x44f   :  { %5238 = vmatprep.subr.bf16.mxu0 %v9730_v25 }
 0x452   :  { %5240 = vmatpush1.bf16.msra.mxu0 %v9731_v27 }
 0x453   :  { %5306 = vmatprep.subr.bf16.mxu0 %v9732_v63 }
 0x4a8   :  { %v2027_v7 = vpop.f32.mrb[74].mxu0  ;;  %v2104_v16 = vpop.f32.mrb[58].mxu1 }
 0x4a9   :  { %v2192_v21 = vadd.f32 %v2027_v7, %v9733_v6  ;;  %v2220_v26 = vadd.f32 %v2104_v16, %v9734_v20  ;;  %v2029_v55 = vpop.f32.mrb[75].mxu0  ;;  %v2106_v51 = vpop.f32.mrb[59].mxu1 }
 0x4aa   :  { %v2193_v15 = vadd.f32 %v2029_v55, %v9735_v46  ;;  %v2221_v37 = vadd.f32 %v2106_v51, %v9736_v22 }
 0x4ab   :  { %v4143_v6 = vmul.f32 -1.442695, %v2192_v21  ;;  %v4147_v22 = vmul.f32 -1.442695, %v2220_v26 }
 0x4ac   :  { %v2033_v35 = vpop.f32.mrb[76].mxu0  ;;  %v2110_v36 = vpop.f32.mrb[60].mxu1  ;;  %v4144_v16 = vmul.f32 -1.442695, %v2193_v15  ;;  %v4148_v55 = vmul.f32 -1.442695, %v2221_v37 }
 0x4ad   :  { %v2194_v25 = vadd.f32 %v2033_v35, %v9737_v54  ;;  %v2222_v27 = vadd.f32 %v2110_v36, %v9738_v59  ;;  %v2035_v28 = vpop.f32.mrb[77].mxu0  ;;  %v2112_v63 = vpop.f32.mrb[61].mxu1  ;;  %6108 = vpow2.f32 %v4143_v6 }
 0x4ae   :  { %v2195_v43 = vadd.f32 %v2035_v28, %v9739_v53  ;;  %v2223_v7 = vadd.f32 %v2112_v63, %v9740_v52  ;;  %6110 = vpow2.f32 %v4144_v16 }
 0x4af   :  { %v4145_v20 = vmul.f32 -1.442695, %v2194_v25  ;;  %v4149_v51 = vmul.f32 -1.442695, %v2222_v27 }
 0x4b0   :  { %v4146_v46 = vmul.f32 -1.442695, %v2195_v43  ;;  %v4150_v35 = vmul.f32 -1.442695, %v2223_v7 }
 0x4b1   :  { %6112 = vpow2.f32 %v4145_v20 }
 0x4b2   :  { %6114 = vpow2.f32 %v4146_v46 }
 0x4b3   :  { %6116 = vpow2.f32 %v4147_v22 }
 0x4b4   :  { %6118 = vpow2.f32 %v4148_v55 }
 0x4b5   :  { %6120 = vpow2.f32 %v4149_v51 }
 0x4b6   :  { %6122 = vpow2.f32 %v4150_v35 }
 0x4b7   :  { %v6109_v54 = vpop.eup %6108 }
 0x4b8   :  { %v6111_v59 = vpop.eup %6110  ;;  %v2208_v36 = vadd.f32 1.0, %v6109_v54 }
 0x4b9   :  { %v2209_v63 = vadd.f32 1.0, %v6111_v59 }
 0x4ba   :  { %6124 = vrcp.f32 %v2208_v36  ;;  %v9741_v36 = vld [vmem:[#allocation112_spill] sm:$0xff] }
 0x4bb   :  { %v6113_v53 = vpop.eup %6112  ;;  %6126 = vrcp.f32 %v2209_v63 }
 0x4bc   :  { %v6115_v52 = vpop.eup %6114  ;;  %v2210_v28 = vadd.f32 1.0, %v6113_v53 }
 0x4bd   :  { %v2211_v43 = vadd.f32 1.0, %v6115_v52  ;;  %v6117_v15 = vpop.eup %6116 }
 0x4be   :  { %6128 = vrcp.f32 %v2210_v28  ;;  %v6119_v26 = vpop.eup %6118  ;;  %v2236_v25 = vadd.f32 1.0, %v6117_v15 }
 0x4bf   :  { %6130 = vrcp.f32 %v2211_v43  ;;  %v6121_v27 = vpop.eup %6120  ;;  %v2237_v21 = vadd.f32 1.0, %v6119_v26  ;;  %v9742_v43 = vld [vmem:[#allocation155_spill] sm:$0xff] }
 0x4c0   :  { %v6123_v37 = vpop.eup %6122  ;;  %v2238_v6 = vadd.f32 1.0, %v6121_v27  ;;  %6132 = vrcp.f32 %v2236_v25 }
 0x4c1   :  { %v2239_v22 = vadd.f32 1.0, %v6123_v37  ;;  %6134 = vrcp.f32 %v2237_v21  ;;  %v9743_v21 = vld [vmem:[#allocation116_spill] sm:$0xff] }
 0x4c2   :  { %6136 = vrcp.f32 %v2238_v6 }
 0x4c3   :  { %6138 = vrcp.f32 %v2239_v22 }
 0x4c4   :  { %v6125_v46 = vpop.eup %6124 }
 0x4c5   :  { %v6127_v51 = vpop.eup %6126 }
 0x4c8   :  { %v6129_v28 = vpop.eup %6128 }
 0x4c9   :  { %v6131_v27 = vpop.eup %6130 }
 0x4e8   :  { %v2181_v7 = vpop.f32.mrb[78].mxu0 }
 0x4e9   :  { %v2248_v16 = vadd.f32 %v2181_v7, %v7886_v10  ;;  %v2183_v20 = vpop.f32.mrb[79].mxu0 }
 0x4ea   :  { %v2249_v55 = vadd.f32 %v2183_v20, %v7890_v5  ;;  %v6133_v20 = vpop.eup %6132 }
 0x4eb   :  { %v2252_v54 = vmul.f32 %v6125_v46, %v2248_v16  ;;  %v9744_v16 = vld [vmem:[#allocation157_spill] sm:$0xff]  ;;  %v6135_v46 = vpop.eup %6134  ;;  %v2264_v22 = vsub.f32 1.0, %v6133_v20 }
 0x4ec   :  { %v2253_v35 = vmul.f32 %v6127_v51, %v2249_v55  ;;  %v2187_v59 = vpop.f32.mrb[80].mxu0  ;;  %v6137_v55 = vpop.eup %6136 }
 0x4ed   :  { %v2256_v53 = vadd.f32 %v2252_v54, %v9741_v36  ;;  %v2250_v63 = vadd.f32 %v2187_v59, %v7886_v10  ;;  %v2189_v52 = vpop.f32.mrb[81].mxu0  ;;  %v6139_v51 = vpop.eup %6138  ;;  %v2272_v36 = vmul.f32 %v6133_v20, %v8174_v62  ;;  %v9770_v62 = vld [vmem:[#allocation79_spill] sm:$0xff] }
 0x4ee   :  { %v2257_v15 = vadd.f32 %v2253_v35, %v9742_v43  ;;  %v2251_v26 = vadd.f32 %v2189_v52, %v7890_v5  ;;  %v2265_v35 = vsub.f32 1.0, %v6135_v46 }
 0x4ef   :  { %6140 = vtanh.f32 %v2256_v53  ;;  %v2254_v37 = vmul.f32 %v6129_v28, %v2250_v63  ;;  %v2273_v63 = vmul.f32 %v6135_v46, %v8176_v14  ;;  %v2266_v28 = vsub.f32 1.0, %v6137_v55  ;;  %v9749_v46 = vld [vmem:[#allocation7_spill] sm:$0xff]  ;;  %v9771_v14 = vld [vmem:[#allocation80_spill] sm:$0xff] }
 0x4f0   :  { %6142 = vtanh.f32 %v2257_v15  ;;  %v2255_v25 = vmul.f32 %v6131_v27, %v2251_v26  ;;  %v2267_v26 = vsub.f32 1.0, %v6139_v51 }
 0x4f1   :  { %v2258_v7 = vadd.f32 %v2254_v37, %v9743_v21 }
 0x4f2   :  { %v2259_v6 = vadd.f32 %v2255_v25, %v9744_v16  ;;  %v2274_v25 = vmul.f32 %v6137_v55, %v8184_v4  ;;  %v9750_v55 = vld [vmem:[#allocation68_spill] sm:$0xff] }
 0x4f3   :  { %6144 = vtanh.f32 %v2258_v7  ;;  %v2275_v7 = vmul.f32 %v6139_v51, %v8187_v13  ;;  %v9751_v51 = vld [vmem:[#allocation70_spill] sm:$0xff]  ;;  %v9769_v4 = vld [vmem:[#allocation24_spill] sm:$0xff] }
 0x4f4   :  { %6146 = vtanh.f32 %v2259_v6  ;;  %v9768_v13 = vld [vmem:[#allocation22_spill] sm:$0xff] }
 0x4f9   :  { %v6141_v54 = vpop.eup %6140 }
 0x4fa   :  { %v6143_v59 = vpop.eup %6142  ;;  %v2268_v53 = vmul.f32 %v6141_v54, %v2264_v22  ;;  %v9752_v22 = vld [vmem:[#allocation8_spill] sm:$0xff]  ;;  %v9753_v54 = vld [vmem:[#allocation9_spill] sm:$0xff] }
 0x4fb   :  { %v2269_v52 = vmul.f32 %v6143_v59, %v2265_v35  ;;  %v9754_v35 = vld [vmem:[#allocation71_spill] sm:$0xff]  ;;  %v9755_v59 = vld [vmem:[#allocation72_spill] sm:$0xff] }
 0x4fc   :  { %v8310_v43 = vadd.f32 %v2272_v36, %v2268_v53  ;;  %v9756_v36 = vld [vmem:[#allocation10_spill] sm:$0xff]  ;;  %v9757_v53 = vld [vmem:[#allocation12_spill] sm:$0xff] }
 0x4fd   :  { %v6145_v15 = vpop.eup %6144  ;;  %v8312_v27 = vadd.f32 %v2273_v63, %v2269_v52  ;;  %v9758_v63 = vld [vmem:[#allocation73_spill] sm:$0xff]  ;;  %v9759_v52 = vld [vmem:[#allocation74_spill] sm:$0xff] }
 0x4fe   :  { %9745 = vst [vmem:[#allocation52_spill] sm:$0xff] %v8310_v43  ;;  %v6147_v37 = vpop.eup %6146  ;;  %v2270_v21 = vmul.f32 %v6145_v15, %v2266_v28  ;;  %v9760_v28 = vld [vmem:[#allocation14_spill] sm:$0xff]  ;;  %v9761_v15 = vld [vmem:[#allocation16_spill] sm:$0xff] }
 0x4ff   :  { %9746 = vst [vmem:[#allocation54_spill] sm:$0xff] %v8312_v27  ;;  %v2271_v16 = vmul.f32 %v6147_v37, %v2267_v26  ;;  %2366 = vmatprep.mubr.f32.mxu1 %v8312_v27  ;;  %2443 = vmatprep.mubr.f32.mxu0 %v8312_v27  ;;  %v9762_v26 = vld [vmem:[#allocation75_spill] sm:$0xff]  ;;  %v9763_v37 = vld [vmem:[#allocation76_spill] sm:$0xff] }
 0x500   :  { %2367 = vmatmul.mubr.f32.vlgmr.msra.gmra.mrb[62].mxu1 %v8310_v43  ;;  %2444 = vmatmul.mubr.f32.vlgmr.msra.gmra.mrb[82].mxu0 %v8310_v43  ;;  %v8320_v6 = vadd.f32 %v2274_v25, %v2270_v21  ;;  %v9764_v25 = vld [vmem:[#allocation18_spill] sm:$0xff]  ;;  %v9765_v21 = vld [vmem:[#allocation20_spill] sm:$0xff] }
 0x501   :  { %5244 = vmatpush1.bf16.msra.mxu1 %v9515_v2  ;;  %v8323_v20 = vadd.f32 %v2275_v7, %v2271_v16  ;;  %5308 = vmatpush1.bf16.msra.mxu0 %v6476_v33  ;;  %v9766_v7 = vld [vmem:[#allocation77_spill] sm:$0xff]  ;;  %v9767_v16 = vld [vmem:[#allocation78_spill] sm:$0xff] }
 0x502   :  { %9747 = vst [vmem:[#allocation56_spill] sm:$0xff] %v8320_v6  ;;  %5246 = vmatprep.subr.bf16.mxu1 %v9517_v3  ;;  %5310 = vmatprep.subr.bf16.mxu0 %v6478_v34 }
 0x503   :  { %9748 = vst [vmem:[#allocation58_spill] sm:$0xff] %v8323_v20  ;;  %2372 = vmatprep.mubr.f32.mxu1 %v8323_v20  ;;  %2449 = vmatprep.mubr.f32.mxu0 %v8323_v20 }
 0x504   :  { %2373 = vmatmul.mubr.f32.gmra.mrb[64].mxu1 %v8320_v6  ;;  %2450 = vmatmul.mubr.f32.gmra.mrb[84].mxu0 %v8320_v6 }
 0x505   :  { %5248 = vmatpush1.bf16.msra.mxu1 %v9518_v61  ;;  %2520 = vmatprep.mubr.f32.mxu1 %v8312_v27 }
 0x506   :  { %5250 = vmatprep.subr.bf16.mxu1 %v9519_v11  ;;  %5312 = vmatpush1.bf16.msra.mxu0 %v6503_v40 }
 0x507   :  { %5314 = vmatprep.subr.bf16.mxu0 %v6507_v41 }
 0x509   :  { %5252 = vmatpush1.bf16.msra.mxu1 %v9520_v23 }
 0x50a   :  { %5254 = vmatprep.subr.bf16.mxu1 %v9521_v31  ;;  %5316 = vmatpush1.bf16.msra.mxu0 %v6532_v47 }
 0x50b   :  { %5318 = vmatprep.subr.bf16.mxu0 %v6542_v50 }
 0x50d   :  { %5256 = vmatpush1.bf16.msra.mxu1 %v9522_v19 }
 0x50e   :  { %5258 = vmatprep.subr.bf16.mxu1 %v9523_v48  ;;  %5320 = vmatpush1.bf16.msra.mxu0 %v6569_v57 }
 0x50f   :  { %5322 = vmatprep.subr.bf16.mxu0 %v6573_v58 }
 0x511   :  { %5260 = vmatpush1.bf16.msra.mxu1 %v9524_v32 }
 0x512   :  { %5262 = vmatprep.subr.bf16.mxu1 %v9525_v12  ;;  %5324 = vmatpush1.bf16.msra.mxu0 %v6599_v0 }
 0x513   :  { %5326 = vmatprep.subr.bf16.mxu0 %v6603_v1 }
 0x515   :  { %5264 = vmatpush1.bf16.msra.mxu1 %v9526_v45 }
 0x516   :  { %5266 = vmatprep.subr.bf16.mxu1 %v9527_v24  ;;  %5328 = vmatpush1.bf16.msra.mxu0 %v6628_v8 }
 0x517   :  { %5330 = vmatprep.subr.bf16.mxu0 %v6632_v9 }
 0x519   :  { %5268 = vmatpush1.bf16.msra.mxu1 %v9528_v60 }
 0x51a   :  { %5270 = vmatprep.subr.bf16.mxu1 %v9529_v38  ;;  %5332 = vmatpush1.bf16.msra.mxu0 %v6657_v17 }
 0x51b   :  { %5334 = vmatprep.subr.bf16.mxu0 %v6661_v18 }
 0x51d   :  { %5272 = vmatpush1.bf16.msra.mxu1 %v9530_v44 }
 0x51e   :  { %5274 = vmatprep.subr.bf16.mxu1 %v9531_v39  ;;  %5336 = vmatpush1.bf16.msra.mxu0 %v6686_v29 }
 0x51f   :  { %5338 = vmatprep.subr.bf16.mxu0 %v6690_v30 }
 0x521   :  { %5276 = vmatpush1.bf16.msra.mxu1 %v7347_v56 }
 0x522   :  { %5278 = vmatprep.subr.bf16.mxu1 %v7356_v49  ;;  %5340 = vmatpush1.bf16.msra.mxu0 %v6715_v42 }
 0x523   :  { %5342 = vmatprep.subr.bf16.mxu0 %v9749_v46  ;;  %v9817_v46 = vld [vmem:[#allocation152_spill] sm:$0xff] }
 0x525   :  { %5280 = vmatpush1.bf16.msra.mxu1 %v9750_v55 }
 0x526   :  { %5282 = vmatprep.subr.bf16.mxu1 %v9751_v51  ;;  %5344 = vmatpush1.bf16.msra.mxu0 %v9752_v22  ;;  %v9816_v51 = vld [vmem:[#allocation118_spill] sm:$0xff] }
 0x527   :  { %5346 = vmatprep.subr.bf16.mxu0 %v9753_v54  ;;  %v9815_v54 = vld [vmem:[#allocation115_spill] sm:$0xff] }
 0x529   :  { %5284 = vmatpush1.bf16.msra.mxu1 %v9754_v35  ;;  %v9814_v35 = vld [vmem:[#allocation113_spill] sm:$0xff] }
 0x52a   :  { %5286 = vmatprep.subr.bf16.mxu1 %v9755_v59  ;;  %5348 = vmatpush1.bf16.msra.mxu0 %v9756_v36  ;;  %v9813_v36 = vld [vmem:[#allocation150_spill] sm:$0xff] }
 0x52b   :  { %5350 = vmatprep.subr.bf16.mxu0 %v9757_v53  ;;  %v9812_v53 = vld [vmem:[#allocation114_spill] sm:$0xff] }
 0x52d   :  { %5288 = vmatpush1.bf16.msra.mxu1 %v9758_v63 }
 0x52e   :  { %5290 = vmatprep.subr.bf16.mxu1 %v9759_v52  ;;  %5352 = vmatpush1.bf16.msra.mxu0 %v9760_v28  ;;  %v9810_v28 = vld [vmem:[#allocation109_spill] sm:$0xff]  ;;  %v9811_v52 = vld [vmem:[#allocation111_spill] sm:$0xff] }
 0x52f   :  { %5354 = vmatprep.subr.bf16.mxu0 %v9761_v15  ;;  %v9772_v15 = vld [vmem:[#allocation26_spill] sm:$0xff] }
 0x531   :  { %5292 = vmatpush1.bf16.msra.mxu1 %v9762_v26  ;;  %v9773_v26 = vld [vmem:[#allocation28_spill] sm:$0xff] }
 0x532   :  { %5294 = vmatprep.subr.bf16.mxu1 %v9763_v37  ;;  %5356 = vmatpush1.bf16.msra.mxu0 %v9764_v25  ;;  %v9774_v37 = vld [vmem:[#allocation81_spill] sm:$0xff]  ;;  %v9775_v25 = vld [vmem:[#allocation6_spill] sm:$0xff] }
 0x533   :  { %5358 = vmatprep.subr.bf16.mxu0 %v9765_v21  ;;  %v9776_v21 = vld [vmem:[#allocation30_spill] sm:$0xff] }
 0x535   :  { %5296 = vmatpush1.bf16.msra.mxu1 %v9766_v7  ;;  %v9777_v7 = vld [vmem:[#allocation32_spill] sm:$0xff] }
 0x536   :  { %5298 = vmatprep.subr.bf16.mxu1 %v9767_v16  ;;  %5360 = vmatpush1.bf16.msra.mxu0 %v9768_v13  ;;  %v9787_v13 = vld [vmem:[#allocation29_spill] sm:$0xff]  ;;  %v9790_v16 = vld [vmem:[#allocation35_spill] sm:$0xff] }
 0x537   :  { %5362 = vmatprep.subr.bf16.mxu0 %v9769_v4  ;;  %v9778_v4 = vld [vmem:[#allocation11_spill] sm:$0xff] }
 0x539   :  { %5300 = vmatpush1.bf16.msra.mxu1 %v9770_v62  ;;  %v9779_v62 = vld [vmem:[#allocation13_spill] sm:$0xff] }
 0x53a   :  { %5302 = vmatprep.subr.bf16.mxu1 %v9771_v14  ;;  %5364 = vmatpush1.bf16.msra.mxu0 %v9772_v15  ;;  %v9780_v15 = vld [vmem:[#allocation15_spill] sm:$0xff] }
 0x53b   :  { %5366 = vmatprep.subr.bf16.mxu0 %v9773_v26  ;;  %v9781_v26 = vld [vmem:[#allocation17_spill] sm:$0xff]  ;;  %v9786_v14 = vld [vmem:[#allocation27_spill] sm:$0xff] }
 0x53d   :  { %5304 = vmatpush1.bf16.msra.mxu1 %v9774_v37  ;;  %v9782_v37 = vld [vmem:[#allocation19_spill] sm:$0xff] }
 0x53e   :  { %5370 = vmatprep.subr.bf16.mxu1 %v9775_v25  ;;  %5368 = vmatpush1.bf16.msra.mxu0 %v9776_v21  ;;  %v9783_v25 = vld [vmem:[#allocation21_spill] sm:$0xff]  ;;  %v9784_v21 = vld [vmem:[#allocation23_spill] sm:$0xff] }
 0x53f   :  { %5434 = vmatprep.subr.bf16.mxu0 %v9777_v7  ;;  %v9785_v7 = vld [vmem:[#allocation25_spill] sm:$0xff] }
 0x540   :  { %2521 = vmatmul.mubr.f32.vlgmr.msra.gmra.mrb[66].mxu1 %v8310_v43 }
 0x541   :  { %2526 = vmatprep.mubr.f32.mxu1 %v8323_v20  ;;  %5372 = vmatpush1.bf16.msra.mxu1 %v9778_v4  ;;  %v9788_v4 = vld [vmem:[#allocation31_spill] sm:$0xff] }
 0x542   :  { %5374 = vmatprep.subr.bf16.mxu1 %v9779_v62  ;;  %v9789_v62 = vld [vmem:[#allocation33_spill] sm:$0xff] }
 0x544   :  { %2527 = vmatmul.mubr.f32.gmra.mrb[68].mxu1 %v8320_v6 }
 0x545   :  { %5376 = vmatpush1.bf16.msra.mxu1 %v9780_v15  ;;  %v9791_v15 = vld [vmem:[#allocation37_spill] sm:$0xff] }
 0x546   :  { %5378 = vmatprep.subr.bf16.mxu1 %v9781_v26  ;;  %v9792_v26 = vld [vmem:[#allocation39_spill] sm:$0xff] }
 0x549   :  { %5380 = vmatpush1.bf16.msra.mxu1 %v9782_v37  ;;  %v9793_v37 = vld [vmem:[#allocation41_spill] sm:$0xff] }
 0x54a   :  { %5382 = vmatprep.subr.bf16.mxu1 %v9783_v25  ;;  %v9794_v25 = vld [vmem:[#allocation43_spill] sm:$0xff] }
 0x54d   :  { %5384 = vmatpush1.bf16.msra.mxu1 %v9784_v21  ;;  %v9795_v21 = vld [vmem:[#allocation45_spill] sm:$0xff] }
 0x54e   :  { %5386 = vmatprep.subr.bf16.mxu1 %v9785_v7  ;;  %v9796_v7 = vld [vmem:[#allocation47_spill] sm:$0xff] }
 0x551   :  { %5388 = vmatpush1.bf16.msra.mxu1 %v9786_v14  ;;  %v9797_v14 = vld [vmem:[#allocation49_spill] sm:$0xff] }
 0x552   :  { %5390 = vmatprep.subr.bf16.mxu1 %v9787_v13  ;;  %v9798_v13 = vld [vmem:[#allocation51_spill] sm:$0xff] }
 0x555   :  { %5392 = vmatpush1.bf16.msra.mxu1 %v9788_v4  ;;  %v9799_v4 = vld [vmem:[#allocation53_spill] sm:$0xff] }
 0x556   :  { %5394 = vmatprep.subr.bf16.mxu1 %v9789_v62  ;;  %v9800_v62 = vld [vmem:[#allocation55_spill] sm:$0xff] }
 0x559   :  { %5396 = vmatpush1.bf16.msra.mxu1 %v9790_v16  ;;  %v9801_v16 = vld [vmem:[#allocation57_spill] sm:$0xff] }
 0x55a   :  { %5398 = vmatprep.subr.bf16.mxu1 %v9791_v15  ;;  %v9802_v15 = vld [vmem:[#allocation59_spill] sm:$0xff] }
 0x55d   :  { %5400 = vmatpush1.bf16.msra.mxu1 %v9792_v26  ;;  %v9803_v26 = vld [vmem:[#allocation61_spill] sm:$0xff] }
 0x55e   :  { %5402 = vmatprep.subr.bf16.mxu1 %v9793_v37  ;;  %v9804_v37 = vld [vmem:[#allocation63_spill] sm:$0xff] }
 0x561   :  { %5404 = vmatpush1.bf16.msra.mxu1 %v9794_v25  ;;  %v9805_v25 = vld [vmem:[#allocation65_spill] sm:$0xff] }
 0x562   :  { %5406 = vmatprep.subr.bf16.mxu1 %v9795_v21  ;;  %v9806_v21 = vld [vmem:[#allocation66_spill] sm:$0xff] }
 0x565   :  { %5408 = vmatpush1.bf16.msra.mxu1 %v9796_v7  ;;  %v9807_v7 = vld [vmem:[#allocation67_spill] sm:$0xff] }
 0x566   :  { %5410 = vmatprep.subr.bf16.mxu1 %v9797_v14  ;;  %v9808_v14 = vld [vmem:[#allocation69_spill] sm:$0xff] }
 0x569   :  { %5412 = vmatpush1.bf16.msra.mxu1 %v9798_v13  ;;  %v9809_v13 = vld [vmem:[#allocation5_spill] sm:$0xff] }
 0x56a   :  { %5414 = vmatprep.subr.bf16.mxu1 %v9799_v4 }
 0x56d   :  { %5416 = vmatpush1.bf16.msra.mxu1 %v9800_v62 }
 0x56e   :  { %5418 = vmatprep.subr.bf16.mxu1 %v9801_v16 }
 0x571   :  { %5420 = vmatpush1.bf16.msra.mxu1 %v9802_v15 }
 0x572   :  { %5422 = vmatprep.subr.bf16.mxu1 %v9803_v26 }
 0x575   :  { %5424 = vmatpush1.bf16.msra.mxu1 %v9804_v37 }
 0x576   :  { %5426 = vmatprep.subr.bf16.mxu1 %v9805_v25 }
 0x579   :  { %5428 = vmatpush1.bf16.msra.mxu1 %v9806_v21 }
 0x57a   :  { %5430 = vmatprep.subr.bf16.mxu1 %v9807_v7 }
 0x57d   :  { %5432 = vmatpush1.bf16.msra.mxu1 %v9808_v14 }
 0x57e   :  { %5498 = vmatprep.subr.bf16.mxu1 %v9809_v13 }
 0x5d3   :  { %v2368_v4 = vpop.f32.mrb[62].mxu1  ;;  %v2445_v62 = vpop.f32.mrb[82].mxu0 }
 0x5d4   :  { %v2533_v16 = vadd.f32 %v2368_v4, %v9810_v28  ;;  %v2561_v15 = vadd.f32 %v2445_v62, %v9811_v52  ;;  %v2370_v63 = vpop.f32.mrb[63].mxu1  ;;  %v2447_v26 = vpop.f32.mrb[83].mxu0 }
 0x5d5   :  { %v2534_v37 = vadd.f32 %v2370_v63, %v9812_v53  ;;  %v2562_v25 = vadd.f32 %v2447_v26, %v9813_v36 }
 0x5d6   :  { %v4151_v28 = vmul.f32 -1.442695, %v2533_v16  ;;  %v4155_v36 = vmul.f32 -1.442695, %v2561_v15 }
 0x5d7   :  { %v2374_v59 = vpop.f32.mrb[64].mxu1  ;;  %v2451_v21 = vpop.f32.mrb[84].mxu0  ;;  %v4152_v62 = vmul.f32 -1.442695, %v2534_v37  ;;  %v4156_v63 = vmul.f32 -1.442695, %v2562_v25 }
 0x5d8   :  { %v2535_v7 = vadd.f32 %v2374_v59, %v9814_v35  ;;  %v2563_v14 = vadd.f32 %v2451_v21, %v9815_v54  ;;  %v2376_v22 = vpop.f32.mrb[65].mxu1  ;;  %v2453_v13 = vpop.f32.mrb[85].mxu0  ;;  %6148 = vpow2.f32 %v4151_v28 }
 0x5d9   :  { %v2536_v55 = vadd.f32 %v2376_v22, %v9816_v51  ;;  %v2564_v4 = vadd.f32 %v2453_v13, %v9817_v46  ;;  %6150 = vpow2.f32 %v4152_v62 }
 0x5da   :  { %v4153_v52 = vmul.f32 -1.442695, %v2535_v7  ;;  %v4157_v26 = vmul.f32 -1.442695, %v2563_v14 }
 0x5db   :  { %v4154_v53 = vmul.f32 -1.442695, %v2536_v55  ;;  %v4158_v59 = vmul.f32 -1.442695, %v2564_v4 }
 0x5dc   :  { %6152 = vpow2.f32 %v4153_v52 }
 0x5dd   :  { %6154 = vpow2.f32 %v4154_v53 }
 0x5de   :  { %6156 = vpow2.f32 %v4155_v36 }
 0x5df   :  { %6158 = vpow2.f32 %v4156_v63 }
 0x5e0   :  { %6160 = vpow2.f32 %v4157_v26 }
 0x5e1   :  { %6162 = vpow2.f32 %v4158_v59 }
 0x5e2   :  { %v6149_v35 = vpop.eup %6148 }
 0x5e3   :  { %v6151_v54 = vpop.eup %6150  ;;  %v2549_v21 = vadd.f32 1.0, %v6149_v35 }
 0x5e4   :  { %v2550_v13 = vadd.f32 1.0, %v6151_v54 }
 0x5e5   :  { %6164 = vrcp.f32 %v2549_v21  ;;  %v9818_v21 = vld [vmem:[#allocation120_spill] sm:$0xff] }
 0x5e6   :  { %v6153_v51 = vpop.eup %6152  ;;  %6166 = vrcp.f32 %v2550_v13 }
 0x5e7   :  { %v6155_v46 = vpop.eup %6154  ;;  %v2551_v22 = vadd.f32 1.0, %v6153_v51 }
 0x5e8   :  { %v2552_v55 = vadd.f32 1.0, %v6155_v46  ;;  %v6157_v37 = vpop.eup %6156 }
 0x5e9   :  { %6168 = vrcp.f32 %v2551_v22  ;;  %v6159_v15 = vpop.eup %6158  ;;  %v2577_v7 = vadd.f32 1.0, %v6157_v37 }
 0x5ea   :  { %6170 = vrcp.f32 %v2552_v55  ;;  %v6161_v14 = vpop.eup %6160  ;;  %v2578_v16 = vadd.f32 1.0, %v6159_v15  ;;  %v9819_v55 = vld [vmem:[#allocation151_spill] sm:$0xff] }
 0x5eb   :  { %v6163_v25 = vpop.eup %6162  ;;  %v2579_v28 = vadd.f32 1.0, %v6161_v14  ;;  %6172 = vrcp.f32 %v2577_v7 }
 0x5ec   :  { %v2580_v36 = vadd.f32 1.0, %v6163_v25  ;;  %6174 = vrcp.f32 %v2578_v16  ;;  %v9820_v16 = vld [vmem:[#allocation124_spill] sm:$0xff] }
 0x5ed   :  { %6176 = vrcp.f32 %v2579_v28 }
 0x5ee   :  { %6178 = vrcp.f32 %v2580_v36 }
 0x5ef   :  { %v6165_v53 = vpop.eup %6164 }
 0x5f0   :  { %v6167_v26 = vpop.eup %6166 }
 0x5f3   :  { %v6169_v22 = vpop.eup %6168 }
 0x5f4   :  { %v6171_v14 = vpop.eup %6170 }
 0x613   :  { %v2522_v4 = vpop.f32.mrb[66].mxu1 }
 0x614   :  { %v2589_v62 = vadd.f32 %v2522_v4, %v7886_v10  ;;  %v2524_v52 = vpop.f32.mrb[67].mxu1 }
 0x615   :  { %v2590_v63 = vadd.f32 %v2524_v52, %v7890_v5  ;;  %v6173_v52 = vpop.eup %6172 }
 0x616   :  { %v2593_v35 = vmul.f32 %v6165_v53, %v2589_v62  ;;  %v9821_v62 = vld [vmem:[#allocation153_spill] sm:$0xff]  ;;  %v6175_v53 = vpop.eup %6174  ;;  %v2605_v36 = vsub.f32 1.0, %v6173_v52 }
 0x617   :  { %v2594_v59 = vmul.f32 %v6167_v26, %v2590_v63  ;;  %v2528_v54 = vpop.f32.mrb[68].mxu1  ;;  %v6177_v63 = vpop.eup %6176 }
 0x618   :  { %v2597_v51 = vadd.f32 %v2593_v35, %v9818_v21  ;;  %v2591_v13 = vadd.f32 %v2528_v54, %v7886_v10  ;;  %v2530_v46 = vpop.f32.mrb[69].mxu1  ;;  %v6179_v26 = vpop.eup %6178  ;;  %v2613_v21 = vmul.f32 %v6173_v52, %v8310_v43  ;;  %v9843_v43 = vld [vmem:[#allocation79_spill] sm:$0xff] }
 0x619   :  { %v2598_v37 = vadd.f32 %v2594_v59, %v9819_v55  ;;  %v2592_v15 = vadd.f32 %v2530_v46, %v7890_v5  ;;  %v2606_v59 = vsub.f32 1.0, %v6175_v53 }
 0x61a   :  { %6180 = vtanh.f32 %v2597_v51  ;;  %v2595_v25 = vmul.f32 %v6169_v22, %v2591_v13  ;;  %v2614_v13 = vmul.f32 %v6175_v53, %v8312_v27  ;;  %v2607_v22 = vsub.f32 1.0, %v6177_v63  ;;  %v9822_v53 = vld [vmem:[#allocation7_spill] sm:$0xff]  ;;  %v9844_v27 = vld [vmem:[#allocation80_spill] sm:$0xff] }
 0x61b   :  { %6182 = vtanh.f32 %v2598_v37  ;;  %v2596_v7 = vmul.f32 %v6171_v14, %v2592_v15  ;;  %v2608_v15 = vsub.f32 1.0, %v6179_v26 }
 0x61c   :  { %v2599_v4 = vadd.f32 %v2595_v25, %v9820_v16 }
 0x61d   :  { %v2600_v28 = vadd.f32 %v2596_v7, %v9821_v62  ;;  %v2615_v7 = vmul.f32 %v6177_v63, %v8320_v6  ;;  %v9823_v63 = vld [vmem:[#allocation68_spill] sm:$0xff] }
 0x61e   :  { %6184 = vtanh.f32 %v2599_v4  ;;  %v2616_v4 = vmul.f32 %v6179_v26, %v8323_v20  ;;  %v9824_v26 = vld [vmem:[#allocation70_spill] sm:$0xff]  ;;  %v9842_v6 = vld [vmem:[#allocation24_spill] sm:$0xff] }
 0x61f   :  { %6186 = vtanh.f32 %v2600_v28  ;;  %v9841_v20 = vld [vmem:[#allocation22_spill] sm:$0xff] }
 0x624   :  { %v6181_v35 = vpop.eup %6180 }
 0x625   :  { %v6183_v54 = vpop.eup %6182  ;;  %v2609_v51 = vmul.f32 %v6181_v35, %v2605_v36  ;;  %v9825_v36 = vld [vmem:[#allocation8_spill] sm:$0xff]  ;;  %v9826_v35 = vld [vmem:[#allocation9_spill] sm:$0xff] }
 0x626   :  { %v2610_v46 = vmul.f32 %v6183_v54, %v2606_v59  ;;  %v9827_v59 = vld [vmem:[#allocation71_spill] sm:$0xff]  ;;  %v9828_v54 = vld [vmem:[#allocation72_spill] sm:$0xff] }
 0x627   :  { %v8446_v55 = vadd.f32 %v2613_v21, %v2609_v51  ;;  %v9829_v21 = vld [vmem:[#allocation10_spill] sm:$0xff]  ;;  %v9830_v51 = vld [vmem:[#allocation12_spill] sm:$0xff] }
 0x628   :  { %v6185_v37 = vpop.eup %6184  ;;  %v8448_v14 = vadd.f32 %v2614_v13, %v2610_v46  ;;  %v9831_v13 = vld [vmem:[#allocation73_spill] sm:$0xff]  ;;  %v9832_v46 = vld [vmem:[#allocation74_spill] sm:$0xff] }
 0x629   :  { %v6187_v25 = vpop.eup %6186  ;;  %v2611_v16 = vmul.f32 %v6185_v37, %v2607_v22  ;;  %v9833_v22 = vld [vmem:[#allocation14_spill] sm:$0xff]  ;;  %v9834_v37 = vld [vmem:[#allocation16_spill] sm:$0xff] }
 0x62a   :  { %v2612_v62 = vmul.f32 %v6187_v25, %v2608_v15  ;;  %2707 = vmatprep.mubr.f32.mxu0 %v8448_v14  ;;  %2784 = vmatprep.mubr.f32.mxu1 %v8448_v14  ;;  %v9835_v15 = vld [vmem:[#allocation75_spill] sm:$0xff]  ;;  %v9836_v25 = vld [vmem:[#allocation76_spill] sm:$0xff] }
 0x62b   :  { %2708 = vmatmul.mubr.f32.vlgmr.msra.gmra.mrb[86].mxu0 %v8446_v55  ;;  %2785 = vmatmul.mubr.f32.vlgmr.msra.gmra.mrb[70].mxu1 %v8446_v55  ;;  %v8456_v28 = vadd.f32 %v2615_v7, %v2611_v16  ;;  %v9837_v7 = vld [vmem:[#allocation18_spill] sm:$0xff]  ;;  %v9838_v16 = vld [vmem:[#allocation20_spill] sm:$0xff] }
 0x62c   :  { %5436 = vmatpush1.bf16.msra.mxu0 %v9515_v2  ;;  %v8459_v52 = vadd.f32 %v2616_v4, %v2612_v62  ;;  %5500 = vmatpush1.bf16.msra.mxu1 %v6476_v33  ;;  %v9839_v4 = vld [vmem:[#allocation77_spill] sm:$0xff]  ;;  %v9840_v62 = vld [vmem:[#allocation78_spill] sm:$0xff] }
 0x62d   :  { %5438 = vmatprep.subr.bf16.mxu0 %v9517_v3  ;;  %5502 = vmatprep.subr.bf16.mxu1 %v6478_v34 }
 0x62e   :  { %2713 = vmatprep.mubr.f32.mxu0 %v8459_v52  ;;  %2790 = vmatprep.mubr.f32.mxu1 %v8459_v52 }
 0x62f   :  { %2714 = vmatmul.mubr.f32.gmra.mrb[88].mxu0 %v8456_v28  ;;  %2791 = vmatmul.mubr.f32.gmra.mrb[72].mxu1 %v8456_v28 }
 0x630   :  { %5440 = vmatpush1.bf16.msra.mxu0 %v9518_v61  ;;  %2861 = vmatprep.mubr.f32.mxu0 %v8448_v14 }
 0x631   :  { %5442 = vmatprep.subr.bf16.mxu0 %v9519_v11  ;;  %5504 = vmatpush1.bf16.msra.mxu1 %v6503_v40 }
 0x632   :  { %5506 = vmatprep.subr.bf16.mxu1 %v6507_v41 }
 0x634   :  { %5444 = vmatpush1.bf16.msra.mxu0 %v9520_v23 }
 0x635   :  { %5446 = vmatprep.subr.bf16.mxu0 %v9521_v31  ;;  %5508 = vmatpush1.bf16.msra.mxu1 %v6532_v47 }
 0x636   :  { %5510 = vmatprep.subr.bf16.mxu1 %v6542_v50 }
 0x638   :  { %5448 = vmatpush1.bf16.msra.mxu0 %v9522_v19 }
 0x639   :  { %5450 = vmatprep.subr.bf16.mxu0 %v9523_v48  ;;  %5512 = vmatpush1.bf16.msra.mxu1 %v6569_v57 }
 0x63a   :  { %5514 = vmatprep.subr.bf16.mxu1 %v6573_v58 }
 0x63c   :  { %5452 = vmatpush1.bf16.msra.mxu0 %v9524_v32 }
 0x63d   :  { %5454 = vmatprep.subr.bf16.mxu0 %v9525_v12  ;;  %5516 = vmatpush1.bf16.msra.mxu1 %v6599_v0 }
 0x63e   :  { %5518 = vmatprep.subr.bf16.mxu1 %v6603_v1 }
 0x640   :  { %5456 = vmatpush1.bf16.msra.mxu0 %v9526_v45 }
 0x641   :  { %5458 = vmatprep.subr.bf16.mxu0 %v9527_v24  ;;  %5520 = vmatpush1.bf16.msra.mxu1 %v6628_v8 }
 0x642   :  { %5522 = vmatprep.subr.bf16.mxu1 %v6632_v9 }
 0x644   :  { %5460 = vmatpush1.bf16.msra.mxu0 %v9528_v60 }
 0x645   :  { %5462 = vmatprep.subr.bf16.mxu0 %v9529_v38  ;;  %5524 = vmatpush1.bf16.msra.mxu1 %v6657_v17 }
 0x646   :  { %5526 = vmatprep.subr.bf16.mxu1 %v6661_v18 }
 0x648   :  { %5464 = vmatpush1.bf16.msra.mxu0 %v9530_v44 }
 0x649   :  { %5466 = vmatprep.subr.bf16.mxu0 %v9531_v39  ;;  %5528 = vmatpush1.bf16.msra.mxu1 %v6686_v29 }
 0x64a   :  { %5530 = vmatprep.subr.bf16.mxu1 %v6690_v30 }
 0x64c   :  { %5468 = vmatpush1.bf16.msra.mxu0 %v7347_v56 }
 0x64d   :  { %5470 = vmatprep.subr.bf16.mxu0 %v7356_v49  ;;  %5532 = vmatpush1.bf16.msra.mxu1 %v6715_v42 }
 0x64e   :  { %5534 = vmatprep.subr.bf16.mxu1 %v9822_v53  ;;  %v9890_v53 = vld [vmem:[#allocation148_spill] sm:$0xff] }
 0x650   :  { %5472 = vmatpush1.bf16.msra.mxu0 %v9823_v63 }
 0x651   :  { %5474 = vmatprep.subr.bf16.mxu0 %v9824_v26  ;;  %5536 = vmatpush1.bf16.msra.mxu1 %v9825_v36  ;;  %v9889_v26 = vld [vmem:[#allocation110_spill] sm:$0xff] }
 0x652   :  { %5538 = vmatprep.subr.bf16.mxu1 %v9826_v35  ;;  %v9888_v35 = vld [vmem:[#allocation123_spill] sm:$0xff] }
 0x654   :  { %5476 = vmatpush1.bf16.msra.mxu0 %v9827_v59  ;;  %v9887_v59 = vld [vmem:[#allocation121_spill] sm:$0xff] }
 0x655   :  { %5478 = vmatprep.subr.bf16.mxu0 %v9828_v54  ;;  %5540 = vmatpush1.bf16.msra.mxu1 %v9829_v21  ;;  %v9886_v21 = vld [vmem:[#allocation145_spill] sm:$0xff] }
 0x656   :  { %5542 = vmatprep.subr.bf16.mxu1 %v9830_v51  ;;  %v9885_v51 = vld [vmem:[#allocation106_spill] sm:$0xff] }
 0x658   :  { %5480 = vmatpush1.bf16.msra.mxu0 %v9831_v13 }
 0x659   :  { %5482 = vmatprep.subr.bf16.mxu0 %v9832_v46  ;;  %5544 = vmatpush1.bf16.msra.mxu1 %v9833_v22  ;;  %v9883_v22 = vld [vmem:[#allocation117_spill] sm:$0xff]  ;;  %v9884_v46 = vld [vmem:[#allocation119_spill] sm:$0xff] }
 0x65a   :  { %5546 = vmatprep.subr.bf16.mxu1 %v9834_v37  ;;  %v9845_v37 = vld [vmem:[#allocation26_spill] sm:$0xff] }
 0x65c   :  { %5484 = vmatpush1.bf16.msra.mxu0 %v9835_v15  ;;  %v9846_v15 = vld [vmem:[#allocation28_spill] sm:$0xff] }
 0x65d   :  { %5486 = vmatprep.subr.bf16.mxu0 %v9836_v25  ;;  %5548 = vmatpush1.bf16.msra.mxu1 %v9837_v7  ;;  %v9847_v25 = vld [vmem:[#allocation81_spill] sm:$0xff]  ;;  %v9848_v7 = vld [vmem:[#allocation6_spill] sm:$0xff] }
 0x65e   :  { %5550 = vmatprep.subr.bf16.mxu1 %v9838_v16  ;;  %v9849_v16 = vld [vmem:[#allocation30_spill] sm:$0xff] }
 0x660   :  { %5488 = vmatpush1.bf16.msra.mxu0 %v9839_v4  ;;  %v9850_v4 = vld [vmem:[#allocation32_spill] sm:$0xff] }
 0x661   :  { %5490 = vmatprep.subr.bf16.mxu0 %v9840_v62  ;;  %5552 = vmatpush1.bf16.msra.mxu1 %v9841_v20  ;;  %v9860_v20 = vld [vmem:[#allocation29_spill] sm:$0xff]  ;;  %v9863_v62 = vld [vmem:[#allocation35_spill] sm:$0xff] }
 0x662   :  { %5554 = vmatprep.subr.bf16.mxu1 %v9842_v6  ;;  %v9851_v6 = vld [vmem:[#allocation11_spill] sm:$0xff] }
 0x664   :  { %5492 = vmatpush1.bf16.msra.mxu0 %v9843_v43  ;;  %v9852_v43 = vld [vmem:[#allocation13_spill] sm:$0xff] }
 0x665   :  { %5494 = vmatprep.subr.bf16.mxu0 %v9844_v27  ;;  %5556 = vmatpush1.bf16.msra.mxu1 %v9845_v37  ;;  %v9853_v37 = vld [vmem:[#allocation15_spill] sm:$0xff] }
 0x666   :  { %5558 = vmatprep.subr.bf16.mxu1 %v9846_v15  ;;  %v9854_v15 = vld [vmem:[#allocation17_spill] sm:$0xff]  ;;  %v9859_v27 = vld [vmem:[#allocation27_spill] sm:$0xff] }
 0x668   :  { %5496 = vmatpush1.bf16.msra.mxu0 %v9847_v25  ;;  %v9855_v25 = vld [vmem:[#allocation19_spill] sm:$0xff] }
 0x669   :  { %5562 = vmatprep.subr.bf16.mxu0 %v9848_v7  ;;  %5560 = vmatpush1.bf16.msra.mxu1 %v9849_v16  ;;  %v9856_v7 = vld [vmem:[#allocation21_spill] sm:$0xff]  ;;  %v9857_v16 = vld [vmem:[#allocation23_spill] sm:$0xff] }
 0x66a   :  { %5626 = vmatprep.subr.bf16.mxu1 %v9850_v4  ;;  %v9858_v4 = vld [vmem:[#allocation25_spill] sm:$0xff] }
 0x66b   :  { %2862 = vmatmul.mubr.f32.vlgmr.msra.gmra.mrb[90].mxu0 %v8446_v55 }
 0x66c   :  { %2867 = vmatprep.mubr.f32.mxu0 %v8459_v52  ;;  %5564 = vmatpush1.bf16.msra.mxu0 %v9851_v6  ;;  %v9861_v6 = vld [vmem:[#allocation31_spill] sm:$0xff] }
 0x66d   :  { %5566 = vmatprep.subr.bf16.mxu0 %v9852_v43  ;;  %v9862_v43 = vld [vmem:[#allocation33_spill] sm:$0xff] }
 0x66f   :  { %2868 = vmatmul.mubr.f32.gmra.mrb[92].mxu0 %v8456_v28 }
 0x670   :  { %5568 = vmatpush1.bf16.msra.mxu0 %v9853_v37  ;;  %v9864_v37 = vld [vmem:[#allocation37_spill] sm:$0xff] }
 0x671   :  { %5570 = vmatprep.subr.bf16.mxu0 %v9854_v15  ;;  %v9865_v15 = vld [vmem:[#allocation39_spill] sm:$0xff] }
 0x674   :  { %5572 = vmatpush1.bf16.msra.mxu0 %v9855_v25  ;;  %v9866_v25 = vld [vmem:[#allocation41_spill] sm:$0xff] }
 0x675   :  { %5574 = vmatprep.subr.bf16.mxu0 %v9856_v7  ;;  %v9867_v7 = vld [vmem:[#allocation43_spill] sm:$0xff] }
 0x678   :  { %5576 = vmatpush1.bf16.msra.mxu0 %v9857_v16  ;;  %v9868_v16 = vld [vmem:[#allocation45_spill] sm:$0xff] }
 0x679   :  { %5578 = vmatprep.subr.bf16.mxu0 %v9858_v4  ;;  %v9869_v4 = vld [vmem:[#allocation47_spill] sm:$0xff] }
 0x67c   :  { %5580 = vmatpush1.bf16.msra.mxu0 %v9859_v27  ;;  %v9870_v27 = vld [vmem:[#allocation49_spill] sm:$0xff] }
 0x67d   :  { %5582 = vmatprep.subr.bf16.mxu0 %v9860_v20  ;;  %v9871_v20 = vld [vmem:[#allocation51_spill] sm:$0xff] }
 0x680   :  { %5584 = vmatpush1.bf16.msra.mxu0 %v9861_v6  ;;  %v9872_v6 = vld [vmem:[#allocation53_spill] sm:$0xff] }
 0x681   :  { %5586 = vmatprep.subr.bf16.mxu0 %v9862_v43  ;;  %v9873_v43 = vld [vmem:[#allocation55_spill] sm:$0xff] }
 0x684   :  { %5588 = vmatpush1.bf16.msra.mxu0 %v9863_v62  ;;  %v9874_v62 = vld [vmem:[#allocation57_spill] sm:$0xff] }
 0x685   :  { %5590 = vmatprep.subr.bf16.mxu0 %v9864_v37  ;;  %v9875_v37 = vld [vmem:[#allocation59_spill] sm:$0xff] }
 0x688   :  { %5592 = vmatpush1.bf16.msra.mxu0 %v9865_v15  ;;  %v9876_v15 = vld [vmem:[#allocation61_spill] sm:$0xff] }
 0x689   :  { %5594 = vmatprep.subr.bf16.mxu0 %v9866_v25  ;;  %v9877_v25 = vld [vmem:[#allocation63_spill] sm:$0xff] }
 0x68c   :  { %5596 = vmatpush1.bf16.msra.mxu0 %v9867_v7  ;;  %v9878_v7 = vld [vmem:[#allocation65_spill] sm:$0xff] }
 0x68d   :  { %5598 = vmatprep.subr.bf16.mxu0 %v9868_v16  ;;  %v9879_v16 = vld [vmem:[#allocation66_spill] sm:$0xff] }
 0x690   :  { %5600 = vmatpush1.bf16.msra.mxu0 %v9869_v4  ;;  %v9880_v4 = vld [vmem:[#allocation67_spill] sm:$0xff] }
 0x691   :  { %5602 = vmatprep.subr.bf16.mxu0 %v9870_v27  ;;  %v9881_v27 = vld [vmem:[#allocation69_spill] sm:$0xff] }
 0x694   :  { %5604 = vmatpush1.bf16.msra.mxu0 %v9871_v20  ;;  %v9882_v20 = vld [vmem:[#allocation5_spill] sm:$0xff] }
 0x695   :  { %5606 = vmatprep.subr.bf16.mxu0 %v9872_v6 }
 0x698   :  { %5608 = vmatpush1.bf16.msra.mxu0 %v9873_v43 }
 0x699   :  { %5610 = vmatprep.subr.bf16.mxu0 %v9874_v62 }
 0x69c   :  { %5612 = vmatpush1.bf16.msra.mxu0 %v9875_v37 }
 0x69d   :  { %5614 = vmatprep.subr.bf16.mxu0 %v9876_v15 }
 0x6a0   :  { %5616 = vmatpush1.bf16.msra.mxu0 %v9877_v25 }
 0x6a1   :  { %5618 = vmatprep.subr.bf16.mxu0 %v9878_v7 }
 0x6a4   :  { %5620 = vmatpush1.bf16.msra.mxu0 %v9879_v16 }
 0x6a5   :  { %5622 = vmatprep.subr.bf16.mxu0 %v9880_v4 }
 0x6a8   :  { %5624 = vmatpush1.bf16.msra.mxu0 %v9881_v27 }
 0x6a9   :  { %5690 = vmatprep.subr.bf16.mxu0 %v9882_v20 }
 0x6fe   :  { %v2709_v6 = vpop.f32.mrb[86].mxu0  ;;  %v2786_v43 = vpop.f32.mrb[70].mxu1 }
 0x6ff   :  { %v2874_v62 = vadd.f32 %v2709_v6, %v9883_v22  ;;  %v2902_v37 = vadd.f32 %v2786_v43, %v9884_v46  ;;  %v2711_v13 = vpop.f32.mrb[87].mxu0  ;;  %v2788_v15 = vpop.f32.mrb[71].mxu1 }
 0x700   :  { %v2875_v25 = vadd.f32 %v2711_v13, %v9885_v51  ;;  %v2903_v7 = vadd.f32 %v2788_v15, %v9886_v21 }
 0x701   :  { %v4159_v22 = vmul.f32 -1.442695, %v2874_v62  ;;  %v4163_v21 = vmul.f32 -1.442695, %v2902_v37 }
 0x702   :  { %v2715_v54 = vpop.f32.mrb[88].mxu0  ;;  %v2792_v16 = vpop.f32.mrb[72].mxu1  ;;  %v4160_v43 = vmul.f32 -1.442695, %v2875_v25  ;;  %v4164_v13 = vmul.f32 -1.442695, %v2903_v7 }
 0x703   :  { %v2876_v4 = vadd.f32 %v2715_v54, %v9887_v59  ;;  %v2904_v27 = vadd.f32 %v2792_v16, %v9888_v35  ;;  %v2717_v36 = vpop.f32.mrb[89].mxu0  ;;  %v2794_v20 = vpop.f32.mrb[73].mxu1  ;;  %6188 = vpow2.f32 %v4159_v22 }
 0x704   :  { %v2877_v63 = vadd.f32 %v2717_v36, %v9889_v26  ;;  %v2905_v6 = vadd.f32 %v2794_v20, %v9890_v53  ;;  %6190 = vpow2.f32 %v4160_v43 }
 0x705   :  { %v4161_v46 = vmul.f32 -1.442695, %v2876_v4  ;;  %v4165_v15 = vmul.f32 -1.442695, %v2904_v27 }
 0x706   :  { %v4162_v51 = vmul.f32 -1.442695, %v2877_v63  ;;  %v4166_v54 = vmul.f32 -1.442695, %v2905_v6 }
 0x707   :  { %6192 = vpow2.f32 %v4161_v46 }
 0x708   :  { %6194 = vpow2.f32 %v4162_v51 }
 0x709   :  { %6196 = vpow2.f32 %v4163_v21 }
 0x70a   :  { %6198 = vpow2.f32 %v4164_v13 }
 0x70b   :  { %6200 = vpow2.f32 %v4165_v15 }
 0x70c   :  { %6202 = vpow2.f32 %v4166_v54 }
 0x70d   :  { %v6189_v59 = vpop.eup %6188 }
 0x70e   :  { %v6191_v35 = vpop.eup %6190  ;;  %v2890_v16 = vadd.f32 1.0, %v6189_v59 }
 0x70f   :  { %v2891_v53 = vadd.f32 1.0, %v6191_v35 }
 0x710   :  { %6204 = vrcp.f32 %v2890_v16  ;;  %v9891_v16 = vld [vmem:[#allocation128_spill] sm:$0xff] }
 0x711   :  { %v6193_v26 = vpop.eup %6192  ;;  %6206 = vrcp.f32 %v2891_v53 }
 0x712   :  { %v6195_v36 = vpop.eup %6194  ;;  %v2892_v25 = vadd.f32 1.0, %v6193_v26 }
 0x713   :  { %v2893_v63 = vadd.f32 1.0, %v6195_v36  ;;  %v6197_v4 = vpop.eup %6196 }
 0x714   :  { %6208 = vrcp.f32 %v2892_v25  ;;  %v6199_v37 = vpop.eup %6198  ;;  %v2918_v62 = vadd.f32 1.0, %v6197_v4 }
 0x715   :  { %6210 = vrcp.f32 %v2893_v63  ;;  %v6201_v27 = vpop.eup %6200  ;;  %v2919_v20 = vadd.f32 1.0, %v6199_v37  ;;  %v9892_v63 = vld [vmem:[#allocation146_spill] sm:$0xff] }
 0x716   :  { %v6203_v7 = vpop.eup %6202  ;;  %v2920_v22 = vadd.f32 1.0, %v6201_v27  ;;  %6212 = vrcp.f32 %v2918_v62 }
 0x717   :  { %v2921_v21 = vadd.f32 1.0, %v6203_v7  ;;  %6214 = vrcp.f32 %v2919_v20  ;;  %v9893_v20 = vld [vmem:[#allocation132_spill] sm:$0xff] }
 0x718   :  { %6216 = vrcp.f32 %v2920_v22 }
 0x719   :  { %6218 = vrcp.f32 %v2921_v21 }
 0x71a   :  { %v6205_v51 = vpop.eup %6204 }
 0x71b   :  { %v6207_v15 = vpop.eup %6206 }
 0x71e   :  { %v6209_v25 = vpop.eup %6208 }
 0x71f   :  { %v6211_v27 = vpop.eup %6210 }
 0x73e   :  { %v2863_v6 = vpop.f32.mrb[90].mxu0 }
 0x73f   :  { %v2930_v43 = vadd.f32 %v2863_v6, %v7886_v10  ;;  %v2865_v46 = vpop.f32.mrb[91].mxu0 }
 0x740   :  { %v2931_v13 = vadd.f32 %v2865_v46, %v7890_v5  ;;  %v6213_v46 = vpop.eup %6212 }
 0x741   :  { %v2934_v59 = vmul.f32 %v6205_v51, %v2930_v43  ;;  %v9894_v43 = vld [vmem:[#allocation149_spill] sm:$0xff]  ;;  %v6215_v51 = vpop.eup %6214  ;;  %v2946_v21 = vsub.f32 1.0, %v6213_v46 }
 0x742   :  { %v2935_v54 = vmul.f32 %v6207_v15, %v2931_v13  ;;  %v2869_v35 = vpop.f32.mrb[92].mxu0  ;;  %v6217_v13 = vpop.eup %6216 }
 0x743   :  { %v2938_v26 = vadd.f32 %v2934_v59, %v9891_v16  ;;  %v2932_v53 = vadd.f32 %v2869_v35, %v7886_v10  ;;  %v2871_v36 = vpop.f32.mrb[93].mxu0  ;;  %v6219_v15 = vpop.eup %6218  ;;  %v2954_v16 = vmul.f32 %v6213_v46, %v8446_v55 }
 0x744   :  { %v2939_v4 = vadd.f32 %v2935_v54, %v9892_v63  ;;  %v2933_v37 = vadd.f32 %v2871_v36, %v7890_v5  ;;  %v2947_v54 = vsub.f32 1.0, %v6215_v51 }
 0x745   :  { %6220 = vtanh.f32 %v2938_v26  ;;  %v2936_v7 = vmul.f32 %v6209_v25, %v2932_v53  ;;  %v2955_v53 = vmul.f32 %v6215_v51, %v8448_v14  ;;  %v2948_v25 = vsub.f32 1.0, %v6217_v13  ;;  %v9912_v51 = vld [vmem:[#allocation77_spill] sm:$0xff] }
 0x746   :  { %6222 = vtanh.f32 %v2939_v4  ;;  %v2937_v62 = vmul.f32 %v6211_v27, %v2933_v37  ;;  %v2949_v37 = vsub.f32 1.0, %v6219_v15 }
 0x747   :  { %v2940_v6 = vadd.f32 %v2936_v7, %v9893_v20 }
 0x748   :  { %v2941_v22 = vadd.f32 %v2937_v62, %v9894_v43  ;;  %v2956_v62 = vmul.f32 %v6217_v13, %v8456_v28  ;;  %v9913_v13 = vld [vmem:[#allocation78_spill] sm:$0xff] }
 0x749   :  { %6224 = vtanh.f32 %v2940_v6  ;;  %v2957_v6 = vmul.f32 %v6219_v15, %v8459_v52  ;;  %v9914_v15 = vld [vmem:[#allocation22_spill] sm:$0xff] }
 0x74a   :  { %6226 = vtanh.f32 %v2941_v22 }
 0x74f   :  { %v6221_v59 = vpop.eup %6220 }
 0x750   :  { %v6223_v35 = vpop.eup %6222  ;;  %v2950_v26 = vmul.f32 %v6221_v59, %v2946_v21  ;;  %v9915_v21 = vld [vmem:[#allocation24_spill] sm:$0xff]  ;;  %v9916_v59 = vld [vmem:[#allocation79_spill] sm:$0xff] }
 0x751   :  { %v2951_v36 = vmul.f32 %v6223_v35, %v2947_v54  ;;  %v9917_v54 = vld [vmem:[#allocation80_spill] sm:$0xff]  ;;  %v9918_v35 = vld [vmem:[#allocation26_spill] sm:$0xff] }
 0x752   :  { %v8582_v63 = vadd.f32 %v2954_v16, %v2950_v26  ;;  %v9919_v16 = vld [vmem:[#allocation28_spill] sm:$0xff]  ;;  %v9920_v26 = vld [vmem:[#allocation81_spill] sm:$0xff] }
 0x753   :  { %v6225_v4 = vpop.eup %6224  ;;  %v8584_v27 = vadd.f32 %v2955_v53, %v2951_v36  ;;  %v9921_v53 = vld [vmem:[#allocation6_spill] sm:$0xff] }
 0x754   :  { %v6227_v7 = vpop.eup %6226  ;;  %v2952_v20 = vmul.f32 %v6225_v4, %v2948_v25  ;;  %v9922_v36 = vld [vmem:[#allocation30_spill] sm:$0xff]  ;;  %v9923_v25 = vld [vmem:[#allocation32_spill] sm:$0xff]  ;;  %v9924_v4 = vld [vmem:[#allocation11_spill] sm:$0xff] }
 0x755   :  { %v2953_v43 = vmul.f32 %v6227_v7, %v2949_v37  ;;  %3048 = vmatprep.mubr.f32.mxu1 %v8584_v27  ;;  %3125 = vmatprep.mubr.f32.mxu0 %v8584_v27  ;;  %v9925_v37 = vld [vmem:[#allocation13_spill] sm:$0xff]  ;;  %v9926_v7 = vld [vmem:[#allocation15_spill] sm:$0xff] }
 0x756   :  { %3049 = vmatmul.mubr.f32.vlgmr.msra.gmra.mrb[74].mxu1 %v8582_v63  ;;  %3126 = vmatmul.mubr.f32.vlgmr.msra.gmra.mrb[94].mxu0 %v8582_v63  ;;  %v8592_v22 = vadd.f32 %v2956_v62, %v2952_v20  ;;  %v9927_v62 = vld [vmem:[#allocation17_spill] sm:$0xff]  ;;  %v9928_v20 = vld [vmem:[#allocation19_spill] sm:$0xff] }
 0x757   :  { %5628 = vmatpush1.bf16.msra.mxu1 %v9515_v2  ;;  %v8595_v46 = vadd.f32 %v2957_v6, %v2953_v43  ;;  %5692 = vmatpush1.bf16.msra.mxu0 %v6476_v33  ;;  %v9895_v33 = vld [vmem:[#allocation7_spill] sm:$0xff]  ;;  %v9929_v6 = vld [vmem:[#allocation21_spill] sm:$0xff] }
 0x758   :  { %5630 = vmatprep.subr.bf16.mxu1 %v9517_v3  ;;  %5694 = vmatprep.subr.bf16.mxu0 %v6478_v34  ;;  %v9896_v34 = vld [vmem:[#allocation68_spill] sm:$0xff]  ;;  %v9930_v43 = vld [vmem:[#allocation23_spill] sm:$0xff] }
 0x759   :  { %3054 = vmatprep.mubr.f32.mxu1 %v8595_v46  ;;  %3131 = vmatprep.mubr.f32.mxu0 %v8595_v46 }
 0x75a   :  { %3055 = vmatmul.mubr.f32.gmra.mrb[76].mxu1 %v8592_v22  ;;  %3132 = vmatmul.mubr.f32.gmra.mrb[96].mxu0 %v8592_v22 }
 0x75b   :  { %5632 = vmatpush1.bf16.msra.mxu1 %v9518_v61  ;;  %3202 = vmatprep.mubr.f32.mxu1 %v8584_v27 }
 0x75c   :  { %5634 = vmatprep.subr.bf16.mxu1 %v9519_v11  ;;  %5696 = vmatpush1.bf16.msra.mxu0 %v6503_v40  ;;  %v9897_v40 = vld [vmem:[#allocation70_spill] sm:$0xff] }
 0x75d   :  { %5698 = vmatprep.subr.bf16.mxu0 %v6507_v41  ;;  %v9898_v41 = vld [vmem:[#allocation8_spill] sm:$0xff] }
 0x75f   :  { %5636 = vmatpush1.bf16.msra.mxu1 %v9520_v23 }
 0x760   :  { %5638 = vmatprep.subr.bf16.mxu1 %v9521_v31  ;;  %5700 = vmatpush1.bf16.msra.mxu0 %v6532_v47  ;;  %v9899_v47 = vld [vmem:[#allocation9_spill] sm:$0xff] }
 0x761   :  { %5702 = vmatprep.subr.bf16.mxu0 %v6542_v50  ;;  %v9900_v50 = vld [vmem:[#allocation71_spill] sm:$0xff] }
 0x763   :  { %5640 = vmatpush1.bf16.msra.mxu1 %v9522_v19 }
 0x764   :  { %5642 = vmatprep.subr.bf16.mxu1 %v9523_v48  ;;  %5704 = vmatpush1.bf16.msra.mxu0 %v6569_v57  ;;  %v9901_v57 = vld [vmem:[#allocation72_spill] sm:$0xff] }
 0x765   :  { %5706 = vmatprep.subr.bf16.mxu0 %v6573_v58  ;;  %v9902_v58 = vld [vmem:[#allocation10_spill] sm:$0xff] }
 0x767   :  { %5644 = vmatpush1.bf16.msra.mxu1 %v9524_v32 }
 0x768   :  { %5646 = vmatprep.subr.bf16.mxu1 %v9525_v12  ;;  %5708 = vmatpush1.bf16.msra.mxu0 %v6599_v0  ;;  %v9903_v0 = vld [vmem:[#allocation12_spill] sm:$0xff] }
 0x769   :  { %5710 = vmatprep.subr.bf16.mxu0 %v6603_v1  ;;  %v9904_v1 = vld [vmem:[#allocation73_spill] sm:$0xff] }
 0x76b   :  { %5648 = vmatpush1.bf16.msra.mxu1 %v9526_v45 }
 0x76c   :  { %5650 = vmatprep.subr.bf16.mxu1 %v9527_v24  ;;  %5712 = vmatpush1.bf16.msra.mxu0 %v6628_v8  ;;  %v9905_v8 = vld [vmem:[#allocation74_spill] sm:$0xff] }
 0x76d   :  { %5714 = vmatprep.subr.bf16.mxu0 %v6632_v9  ;;  %v9906_v9 = vld [vmem:[#allocation14_spill] sm:$0xff] }
 0x76f   :  { %5652 = vmatpush1.bf16.msra.mxu1 %v9528_v60 }
 0x770   :  { %5654 = vmatprep.subr.bf16.mxu1 %v9529_v38  ;;  %5716 = vmatpush1.bf16.msra.mxu0 %v6657_v17  ;;  %v9907_v17 = vld [vmem:[#allocation16_spill] sm:$0xff] }
 0x771   :  { %5718 = vmatprep.subr.bf16.mxu0 %v6661_v18  ;;  %v9908_v18 = vld [vmem:[#allocation75_spill] sm:$0xff] }
 0x773   :  { %5656 = vmatpush1.bf16.msra.mxu1 %v9530_v44 }
 0x774   :  { %5658 = vmatprep.subr.bf16.mxu1 %v9531_v39  ;;  %5720 = vmatpush1.bf16.msra.mxu0 %v6686_v29  ;;  %v9909_v29 = vld [vmem:[#allocation76_spill] sm:$0xff] }
 0x775   :  { %5722 = vmatprep.subr.bf16.mxu0 %v6690_v30  ;;  %v9910_v30 = vld [vmem:[#allocation18_spill] sm:$0xff] }
 0x777   :  { %5660 = vmatpush1.bf16.msra.mxu1 %v7347_v56 }
 0x778   :  { %5662 = vmatprep.subr.bf16.mxu1 %v7356_v49  ;;  %5724 = vmatpush1.bf16.msra.mxu0 %v6715_v42  ;;  %v9911_v42 = vld [vmem:[#allocation20_spill] sm:$0xff] }
 0x779   :  { %5726 = vmatprep.subr.bf16.mxu0 %v9895_v33  ;;  %v9931_v33 = vld [vmem:[#allocation25_spill] sm:$0xff] }
 0x77b   :  { %5664 = vmatpush1.bf16.msra.mxu1 %v9896_v34 }
 0x77c   :  { %5666 = vmatprep.subr.bf16.mxu1 %v9897_v40  ;;  %5728 = vmatpush1.bf16.msra.mxu0 %v9898_v41  ;;  %v9932_v41 = vld [vmem:[#allocation27_spill] sm:$0xff] }
 0x77d   :  { %5730 = vmatprep.subr.bf16.mxu0 %v9899_v47  ;;  %v9933_v47 = vld [vmem:[#allocation29_spill] sm:$0xff] }
 0x77f   :  { %5668 = vmatpush1.bf16.msra.mxu1 %v9900_v50 }
 0x780   :  { %5670 = vmatprep.subr.bf16.mxu1 %v9901_v57  ;;  %5732 = vmatpush1.bf16.msra.mxu0 %v9902_v58  ;;  %v9934_v58 = vld [vmem:[#allocation31_spill] sm:$0xff] }
 0x781   :  { %5734 = vmatprep.subr.bf16.mxu0 %v9903_v0  ;;  %v9935_v0 = vld [vmem:[#allocation33_spill] sm:$0xff] }
 0x783   :  { %5672 = vmatpush1.bf16.msra.mxu1 %v9904_v1 }
 0x784   :  { %5674 = vmatprep.subr.bf16.mxu1 %v9905_v8  ;;  %5736 = vmatpush1.bf16.msra.mxu0 %v9906_v9  ;;  %v9936_v9 = vld [vmem:[#allocation35_spill] sm:$0xff] }
 0x785   :  { %5738 = vmatprep.subr.bf16.mxu0 %v9907_v17  ;;  %v9937_v17 = vld [vmem:[#allocation37_spill] sm:$0xff] }
 0x787   :  { %5676 = vmatpush1.bf16.msra.mxu1 %v9908_v18 }
 0x788   :  { %5678 = vmatprep.subr.bf16.mxu1 %v9909_v29  ;;  %5740 = vmatpush1.bf16.msra.mxu0 %v9910_v30  ;;  %v9938_v30 = vld [vmem:[#allocation39_spill] sm:$0xff] }
 0x789   :  { %5742 = vmatprep.subr.bf16.mxu0 %v9911_v42  ;;  %v9939_v42 = vld [vmem:[#allocation41_spill] sm:$0xff] }
 0x78b   :  { %5680 = vmatpush1.bf16.msra.mxu1 %v9912_v51 }
 0x78c   :  { %5682 = vmatprep.subr.bf16.mxu1 %v9913_v13  ;;  %5744 = vmatpush1.bf16.msra.mxu0 %v9914_v15  ;;  %v9940_v15 = vld [vmem:[#allocation43_spill] sm:$0xff] }
 0x78d   :  { %5746 = vmatprep.subr.bf16.mxu0 %v9915_v21  ;;  %v9941_v21 = vld [vmem:[#allocation45_spill] sm:$0xff] }
 0x78f   :  { %5684 = vmatpush1.bf16.msra.mxu1 %v9916_v59 }
 0x790   :  { %5686 = vmatprep.subr.bf16.mxu1 %v9917_v54  ;;  %5748 = vmatpush1.bf16.msra.mxu0 %v9918_v35  ;;  %v9942_v35 = vld [vmem:[#allocation47_spill] sm:$0xff] }
 0x791   :  { %5750 = vmatprep.subr.bf16.mxu0 %v9919_v16  ;;  %v9943_v16 = vld [vmem:[#allocation49_spill] sm:$0xff] }
 0x793   :  { %5688 = vmatpush1.bf16.msra.mxu1 %v9920_v26 }
 0x794   :  { %5754 = vmatprep.subr.bf16.mxu1 %v9921_v53  ;;  %5752 = vmatpush1.bf16.msra.mxu0 %v9922_v36  ;;  %v9944_v53 = vld [vmem:[#allocation51_spill] sm:$0xff]  ;;  %v9945_v36 = vld [vmem:[#allocation53_spill] sm:$0xff] }
 0x795   :  { %5818 = vmatprep.subr.bf16.mxu0 %v9923_v25  ;;  %v9946_v25 = vld [vmem:[#allocation55_spill] sm:$0xff] }
 0x796   :  { %3203 = vmatmul.mubr.f32.vlgmr.msra.gmra.mrb[78].mxu1 %v8582_v63 }
 0x797   :  { %3208 = vmatprep.mubr.f32.mxu1 %v8595_v46  ;;  %5756 = vmatpush1.bf16.msra.mxu1 %v9924_v4  ;;  %v9947_v4 = vld [vmem:[#allocation57_spill] sm:$0xff] }
 0x798   :  { %5758 = vmatprep.subr.bf16.mxu1 %v9925_v37  ;;  %v9948_v37 = vld [vmem:[#allocation59_spill] sm:$0xff] }
 0x79a   :  { %3209 = vmatmul.mubr.f32.gmra.mrb[80].mxu1 %v8592_v22 }
 0x79b   :  { %5760 = vmatpush1.bf16.msra.mxu1 %v9926_v7  ;;  %v9949_v7 = vld [vmem:[#allocation61_spill] sm:$0xff] }
 0x79c   :  { %5762 = vmatprep.subr.bf16.mxu1 %v9927_v62  ;;  %v9950_v62 = vld [vmem:[#allocation63_spill] sm:$0xff] }
 0x79f   :  { %5764 = vmatpush1.bf16.msra.mxu1 %v9928_v20  ;;  %v9951_v20 = vld [vmem:[#allocation65_spill] sm:$0xff] }
 0x7a0   :  { %5766 = vmatprep.subr.bf16.mxu1 %v9929_v6  ;;  %v9952_v6 = vld [vmem:[#allocation66_spill] sm:$0xff] }
 0x7a3   :  { %5768 = vmatpush1.bf16.msra.mxu1 %v9930_v43  ;;  %v9953_v43 = vld [vmem:[#allocation67_spill] sm:$0xff] }
 0x7a4   :  { %5770 = vmatprep.subr.bf16.mxu1 %v9931_v33  ;;  %v9954_v33 = vld [vmem:[#allocation69_spill] sm:$0xff] }
 0x7a7   :  { %5772 = vmatpush1.bf16.msra.mxu1 %v9932_v41 }
 0x7a8   :  { %5774 = vmatprep.subr.bf16.mxu1 %v9933_v47 }
 0x7ab   :  { %5776 = vmatpush1.bf16.msra.mxu1 %v9934_v58  ;;  %v9955_v58 = vld [vmem:[#allocation125_spill] sm:$0xff] }
 0x7ac   :  { %5778 = vmatprep.subr.bf16.mxu1 %v9935_v0 }
 0x7af   :  { %5780 = vmatpush1.bf16.msra.mxu1 %v9936_v9  ;;  %v9956_v9 = vld [vmem:[#allocation127_spill] sm:$0xff] }
 0x7b0   :  { %5782 = vmatprep.subr.bf16.mxu1 %v9937_v17 }
 0x7b3   :  { %5784 = vmatpush1.bf16.msra.mxu1 %v9938_v30 }
 0x7b4   :  { %5786 = vmatprep.subr.bf16.mxu1 %v9939_v42 }
 0x7b7   :  { %5788 = vmatpush1.bf16.msra.mxu1 %v9940_v15  ;;  %v9957_v15 = vld [vmem:[#allocation98_spill] sm:$0xff] }
 0x7b8   :  { %5790 = vmatprep.subr.bf16.mxu1 %v9941_v21 }
 0x7bb   :  { %5792 = vmatpush1.bf16.msra.mxu1 %v9942_v35  ;;  %v9958_v35 = vld [vmem:[#allocation137_spill] sm:$0xff] }
 0x7bc   :  { %5794 = vmatprep.subr.bf16.mxu1 %v9943_v16 }
 0x7bf   :  { %5796 = vmatpush1.bf16.msra.mxu1 %v9944_v53 }
 0x7c0   :  { %5798 = vmatprep.subr.bf16.mxu1 %v9945_v36 }
 0x7c3   :  { %5800 = vmatpush1.bf16.msra.mxu1 %v9946_v25  ;;  %v9959_v25 = vld [vmem:[#allocation82_spill] sm:$0xff] }
 0x7c4   :  { %5802 = vmatprep.subr.bf16.mxu1 %v9947_v4 }
 0x7c7   :  { %5804 = vmatpush1.bf16.msra.mxu1 %v9948_v37  ;;  %v9960_v37 = vld [vmem:[#allocation83_spill] sm:$0xff] }
 0x7c8   :  { %5806 = vmatprep.subr.bf16.mxu1 %v9949_v7 }
 0x7cb   :  { %5808 = vmatpush1.bf16.msra.mxu1 %v9950_v62 }
 0x7cc   :  { %5810 = vmatprep.subr.bf16.mxu1 %v9951_v20 }
 0x7cf   :  { %5812 = vmatpush1.bf16.msra.mxu1 %v9952_v6  ;;  %v9961_v6 = vld [vmem:[#allocation102_spill] sm:$0xff] }
 0x7d0   :  { %5814 = vmatprep.subr.bf16.mxu1 %v9953_v43 }
 0x7d3   :  { %5816 = vmatpush1.bf16.msra.mxu1 %v9954_v33  ;;  %v9962_v33 = vld [vmem:[#allocation141_spill] sm:$0xff] }
 0x829   :  { %v3050_v41 = vpop.f32.mrb[74].mxu1  ;;  %v3127_v47 = vpop.f32.mrb[94].mxu0 }
 0x82a   :  { %v3215_v0 = vadd.f32 %v3050_v41, %v9955_v58  ;;  %v3243_v17 = vadd.f32 %v3127_v47, %v9956_v9  ;;  %v3052_v30 = vpop.f32.mrb[75].mxu1  ;;  %v3129_v42 = vpop.f32.mrb[95].mxu0 }
 0x82b   :  { %v3216_v21 = vadd.f32 %v3052_v30, %v9957_v15  ;;  %v3244_v16 = vadd.f32 %v3129_v42, %v9958_v35 }
 0x82c   :  { %v4167_v58 = vmul.f32 -1.442695, %v3215_v0  ;;  %v4171_v42 = vmul.f32 -1.442695, %v3243_v17 }
 0x82d   :  { %v3056_v53 = vpop.f32.mrb[76].mxu1  ;;  %v3133_v36 = vpop.f32.mrb[96].mxu0  ;;  %v4168_v47 = vmul.f32 -1.442695, %v3216_v21  ;;  %v4172_v15 = vmul.f32 -1.442695, %v3244_v16 }
 0x82e   :  { %v3217_v4 = vadd.f32 %v3056_v53, %v9959_v25  ;;  %v3245_v7 = vadd.f32 %v3133_v36, %v9960_v37  ;;  %v3058_v62 = vpop.f32.mrb[77].mxu1  ;;  %v3135_v20 = vpop.f32.mrb[97].mxu0  ;;  %6228 = vpow2.f32 %v4167_v58 }
 0x82f   :  { %v3218_v43 = vadd.f32 %v3058_v62, %v9961_v6  ;;  %v3246_v41 = vadd.f32 %v3135_v20, %v9962_v33  ;;  %6230 = vpow2.f32 %v4168_v47 }
 0x830   :  { %v4169_v9 = vmul.f32 -1.442695, %v3217_v4  ;;  %v4173_v35 = vmul.f32 -1.442695, %v3245_v7 }
 0x831   :  { %v4170_v30 = vmul.f32 -1.442695, %v3218_v43  ;;  %v4174_v25 = vmul.f32 -1.442695, %v3246_v41 }
 0x832   :  { %6232 = vpow2.f32 %v4169_v9 }
 0x833   :  { %6234 = vpow2.f32 %v4170_v30 }
 0x834   :  { %6236 = vpow2.f32 %v4171_v42 }
 0x835   :  { %6238 = vpow2.f32 %v4172_v15 }
 0x836   :  { %6240 = vpow2.f32 %v4173_v35 }
 0x837   :  { %6242 = vpow2.f32 %v4174_v25 }
 0x838   :  { %v6229_v53 = vpop.eup %6228 }
 0x839   :  { %v6231_v36 = vpop.eup %6230  ;;  %v3231_v37 = vadd.f32 1.0, %v6229_v53 }
 0x83a   :  { %v3232_v20 = vadd.f32 1.0, %v6231_v36 }
 0x83b   :  { %6244 = vrcp.f32 %v3231_v37  ;;  %v9963_v37 = vld [vmem:[#allocation136_spill] sm:$0xff] }
 0x83c   :  { %v6233_v62 = vpop.eup %6232  ;;  %6246 = vrcp.f32 %v3232_v20 }
 0x83d   :  { %v6235_v0 = vpop.eup %6234  ;;  %v3233_v21 = vadd.f32 1.0, %v6233_v62 }
 0x83e   :  { %v3234_v4 = vadd.f32 1.0, %v6235_v0  ;;  %v6237_v6 = vpop.eup %6236 }
 0x83f   :  { %6248 = vrcp.f32 %v3233_v21  ;;  %v6239_v17 = vpop.eup %6238  ;;  %v3259_v43 = vadd.f32 1.0, %v6237_v6 }
 0x840   :  { %6250 = vrcp.f32 %v3234_v4  ;;  %v6241_v16 = vpop.eup %6240  ;;  %v3260_v33 = vadd.f32 1.0, %v6239_v17  ;;  %v9964_v4 = vld [vmem:[#allocation139_spill] sm:$0xff] }
 0x841   :  { %v6243_v7 = vpop.eup %6242  ;;  %v3261_v58 = vadd.f32 1.0, %v6241_v16  ;;  %6252 = vrcp.f32 %v3259_v43 }
 0x842   :  { %v3262_v42 = vadd.f32 1.0, %v6243_v7  ;;  %6254 = vrcp.f32 %v3260_v33  ;;  %v9965_v33 = vld [vmem:[#allocation140_spill] sm:$0xff] }
 0x843   :  { %6256 = vrcp.f32 %v3261_v58 }
 0x844   :  { %6258 = vrcp.f32 %v3262_v42 }
 0x845   :  { %v6245_v30 = vpop.eup %6244 }
 0x846   :  { %v6247_v35 = vpop.eup %6246 }
 0x849   :  { %v6249_v21 = vpop.eup %6248 }
 0x84a   :  { %v6251_v16 = vpop.eup %6250 }
 0x869   :  { %v3204_v41 = vpop.f32.mrb[78].mxu1 }
 0x86a   :  { %v3271_v47 = vadd.f32 %v3204_v41, %v7886_v10  ;;  %v3206_v9 = vpop.f32.mrb[79].mxu1 }
 0x86b   :  { %v3272_v15 = vadd.f32 %v3206_v9, %v7890_v5  ;;  %v6253_v9 = vpop.eup %6252 }
 0x86c   :  { %v3275_v53 = vmul.f32 %v6245_v30, %v3271_v47  ;;  %v9966_v47 = vld [vmem:[#allocation143_spill] sm:$0xff]  ;;  %v6255_v30 = vpop.eup %6254  ;;  %v3287_v42 = vsub.f32 1.0, %v6253_v9 }
 0x86d   :  { %v3276_v25 = vmul.f32 %v6247_v35, %v3272_v15  ;;  %v3210_v36 = vpop.f32.mrb[80].mxu1  ;;  %v6257_v15 = vpop.eup %6256 }
 0x86e   :  { %v3279_v62 = vadd.f32 %v3275_v53, %v9963_v37  ;;  %v3273_v20 = vadd.f32 %v3210_v36, %v7886_v10  ;;  %v3212_v0 = vpop.f32.mrb[81].mxu1  ;;  %v6259_v35 = vpop.eup %6258  ;;  %v3295_v37 = vmul.f32 %v6253_v9, %v8582_v63 }
 0x86f   :  { %v3280_v6 = vadd.f32 %v3276_v25, %v9964_v4  ;;  %v3274_v17 = vadd.f32 %v3212_v0, %v7890_v5  ;;  %v3288_v25 = vsub.f32 1.0, %v6255_v30 }
 0x870   :  { %6260 = vtanh.f32 %v3279_v62  ;;  %v3277_v7 = vmul.f32 %v6249_v21, %v3273_v20  ;;  %v3296_v20 = vmul.f32 %v6255_v30, %v8584_v27  ;;  %v3289_v21 = vsub.f32 1.0, %v6257_v15  ;;  %v3684_v30 = vld [vmem:[%s9133_s6 + $0xd8] sm:$0xff] }
 0x871   :  { %6262 = vtanh.f32 %v3280_v6  ;;  %v3278_v43 = vmul.f32 %v6251_v16, %v3274_v17  ;;  %v3290_v17 = vsub.f32 1.0, %v6259_v35 }
 0x872   :  { %v3281_v41 = vadd.f32 %v3277_v7, %v9965_v33 }
 0x873   :  { %v3282_v58 = vadd.f32 %v3278_v43, %v9966_v47  ;;  %v3297_v43 = vmul.f32 %v6257_v15, %v8592_v22 }
 0x874   :  { %6264 = vtanh.f32 %v3281_v41  ;;  %v3298_v41 = vmul.f32 %v6259_v35, %v8595_v46  ;;  %v3667_v35 = vld [vmem:[%s9133_s6 + $0x50] sm:$0xff] }
 0x875   :  { %6266 = vtanh.f32 %v3282_v58 }
 0x87a   :  { %v6261_v53 = vpop.eup %6260 }
 0x87b   :  { %v6263_v36 = vpop.eup %6262  ;;  %v3291_v62 = vmul.f32 %v6261_v53, %v3287_v42  ;;  %v3668_v42 = vld [vmem:[%s9133_s6 + $0x58] sm:$0xff]  ;;  %v3685_v53 = vld [vmem:[%s9133_s6 + $0xe0] sm:$0xff] }
 0x87c   :  { %v3292_v0 = vmul.f32 %v6263_v36, %v3288_v25  ;;  %v5903_v25 = vpack.c.bf16 %v3668_v42, %v3667_v35  ;;  %v3686_v36 = vld [vmem:[%s9133_s6 + $0xe8] sm:$0xff] }
 0x87d   :  { %v8717_v4 = vadd.f32 %v3295_v37, %v3291_v62  ;;  %v3669_v37 = vld [vmem:[%s9133_s6 + $0x60] sm:$0xff]  ;;  %v3670_v62 = vld [vmem:[%s9133_s6 + $0x68] sm:$0xff] }
 0x87e   :  { %v6265_v6 = vpop.eup %6264  ;;  %v8719_v16 = vadd.f32 %v3296_v20, %v3292_v0  ;;  %v5905_v20 = vpack.c.bf16 %v3686_v36, %v3685_v53  ;;  %v3687_v0 = vld [vmem:[%s9133_s6 + $0xf0] sm:$0xff]  ;;  %v9970_v36 = vld [vmem:[#allocation129_spill] sm:$0xff] }
 0x87f   :  { %v6267_v7 = vpop.eup %6266  ;;  %v3293_v33 = vmul.f32 %v6265_v6, %v3289_v21  ;;  %v3688_v21 = vld [vmem:[%s9133_s6 + $0xf8] sm:$0xff]  ;;  %v5907_v6 = vpack.c.bf16 %v3670_v62, %v3669_v37 }
 0x880   :  { %v3294_v47 = vmul.f32 %v6267_v7, %v3290_v17  ;;  %3388 = vmatprep.mubr.f32.mxu0 %v8719_v16  ;;  %3465 = vmatprep.mubr.f32.mxu1 %v8719_v16  ;;  %v5909_v17 = vpack.c.bf16 %v3688_v21, %v3687_v0  ;;  %v3671_v7 = vld [vmem:[%s9133_s6 + $0x70] sm:$0xff] }
 0x881   :  { %3389 = vmatmul.mubr.f32.vlgmr.msra.gmra.mrb[98].mxu0 %v8717_v4  ;;  %3466 = vmatmul.mubr.f32.vlgmr.msra.gmra.mrb[82].mxu1 %v8717_v4  ;;  %v8727_v58 = vadd.f32 %v3297_v43, %v3293_v33  ;;  %v3672_v43 = vld [vmem:[%s9133_s6 + $0x78] sm:$0xff]  ;;  %v9971_v0 = vld [vmem:[#allocation86_spill] sm:$0xff] }
 0x882   :  { %5820 = vmatpush1.bf16.msra.mxu0 %v9515_v2  ;;  %v8730_v9 = vadd.f32 %v3298_v41, %v3294_v47  ;;  %v3657_v2 = vld [vmem:[%s9133_s6] sm:$0xff]  ;;  %v5911_v33 = vpack.c.bf16 %v3672_v43, %v3671_v7  ;;  %v3706_v47 = vld [vmem:[%s9133_s6 + $0x188] sm:$0xff]  ;;  %v9969_v53 = vld [vmem:[#allocation91_spill] sm:$0xff] }
 0x883   :  { %5822 = vmatprep.subr.bf16.mxu0 %v9517_v3  ;;  %v3705_v41 = vld [vmem:[%s9133_s6 + $0x180] sm:$0xff] }
 0x884   :  { %3394 = vmatprep.mubr.f32.mxu0 %v8730_v9  ;;  %3471 = vmatprep.mubr.f32.mxu1 %v8730_v9 }
 0x885   :  { %3395 = vmatmul.mubr.f32.gmra.mrb[100].mxu0 %v8727_v58  ;;  %3472 = vmatmul.mubr.f32.gmra.mrb[84].mxu1 %v8727_v58 }
 0x886   :  { %5824 = vmatpush1.bf16.msra.mxu0 %v9518_v61  ;;  %3542 = vmatprep.mubr.f32.mxu0 %v8719_v16  ;;  %v3658_v61 = vld [vmem:[%s9133_s6 + $0x8] sm:$0xff] }
 0x887   :  { %5826 = vmatprep.subr.bf16.mxu0 %v9519_v11  ;;  %v3675_v11 = vld [vmem:[%s9133_s6 + $0x90] sm:$0xff] }
 0x88a   :  { %5828 = vmatpush1.bf16.msra.mxu0 %v9520_v23  ;;  %v3676_v23 = vld [vmem:[%s9133_s6 + $0x98] sm:$0xff] }
 0x88b   :  { %5830 = vmatprep.subr.bf16.mxu0 %v9521_v31  ;;  %v5883_v31 = vpack.c.bf16 %v3658_v61, %v3657_v2  ;;  %v3722_v2 = vld [vmem:[%s9133_s6 + $0x208] sm:$0xff]  ;;  %v3723_v61 = vld [vmem:[%s9133_s6 + $0x210] sm:$0xff] }
 0x88e   :  { %5832 = vmatpush1.bf16.msra.mxu0 %v9522_v19  ;;  %v5885_v19 = vpack.c.bf16 %v3676_v23, %v3675_v11  ;;  %v3724_v11 = vld [vmem:[%s9133_s6 + $0x218] sm:$0xff] }
 0x88f   :  { %5834 = vmatprep.subr.bf16.mxu0 %v9523_v48  ;;  %v3659_v48 = vld [vmem:[%s9133_s6 + $0x10] sm:$0xff]  ;;  %v5949_v23 = vpack.c.bf16 %v3724_v11, %v3723_v61 }
 0x892   :  { %5836 = vmatpush1.bf16.msra.mxu0 %v9524_v32  ;;  %v3660_v32 = vld [vmem:[%s9133_s6 + $0x18] sm:$0xff] }
 0x893   :  { %5838 = vmatprep.subr.bf16.mxu0 %v9525_v12  ;;  %v5887_v12 = vpack.c.bf16 %v3660_v32, %v3659_v48  ;;  %v3727_v32 = vld [vmem:[%s9133_s6 + $0x230] sm:$0xff] }
 0x896   :  { %5840 = vmatpush1.bf16.msra.mxu0 %v9526_v45  ;;  %v3677_v45 = vld [vmem:[%s9133_s6 + $0xa0] sm:$0xff] }
 0x897   :  { %5842 = vmatprep.subr.bf16.mxu0 %v9527_v24  ;;  %v3678_v24 = vld [vmem:[%s9133_s6 + $0xa8] sm:$0xff] }
 0x89a   :  { %5844 = vmatpush1.bf16.msra.mxu0 %v9528_v60  ;;  %v5889_v60 = vpack.c.bf16 %v3678_v24, %v3677_v45  ;;  %v3729_v24 = vld [vmem:[%s9133_s6 + $0x240] sm:$0xff] }
 0x89b   :  { %5846 = vmatprep.subr.bf16.mxu0 %v9529_v38  ;;  %v3661_v38 = vld [vmem:[%s9133_s6 + $0x20] sm:$0xff] }
 0x89e   :  { %5848 = vmatpush1.bf16.msra.mxu0 %v9530_v44  ;;  %v3662_v44 = vld [vmem:[%s9133_s6 + $0x28] sm:$0xff] }
 0x89f   :  { %5850 = vmatprep.subr.bf16.mxu0 %v9531_v39  ;;  %v5891_v39 = vpack.c.bf16 %v3662_v44, %v3661_v38  ;;  %v3731_v44 = vld [vmem:[%s9133_s6 + $0x250] sm:$0xff] }
 0x8a2   :  { %5852 = vmatpush1.bf16.msra.mxu0 %v7347_v56  ;;  %v3674_v56 = vld [vmem:[%s9133_s6 + $0x88] sm:$0xff] }
 0x8a3   :  { %5854 = vmatprep.subr.bf16.mxu0 %v7356_v49  ;;  %v3673_v49 = vld [vmem:[%s9133_s6 + $0x80] sm:$0xff] }
 0x8a4   :  { %v5881_v3 = vpack.c.bf16 %v3674_v56, %v3673_v49  ;;  %v5913_v49 = vpack.c.bf16 %v3706_v47, %v3705_v41  ;;  %v3721_v56 = vld [vmem:[%s9133_s6 + $0x200] sm:$0xff] }
 0x8a5   :  { %v9974_v47 = vld [vmem:[#allocation133_spill] sm:$0xff] }
 0x8a6   :  { %5856 = vmatpush1.bf16.msra.mxu0 %v9896_v34  ;;  %5882 = vmatprep.subr.bf16.mxu1 %v5881_v3  ;;  %v3679_v34 = vld [vmem:[%s9133_s6 + $0xb0] sm:$0xff]  ;;  %v5945_v3 = vpack.c.bf16 %v3722_v2, %v3721_v56 }
 0x8a7   :  { %5858 = vmatprep.subr.bf16.mxu0 %v9897_v40  ;;  %5884 = vmatpush3.bf16.msra.mxu1 %v5883_v31  ;;  %v3680_v40 = vld [vmem:[%s9133_s6 + $0xb8] sm:$0xff]  ;;  %v3725_v31 = vld [vmem:[%s9133_s6 + $0x220] sm:$0xff] }
 0x8a8   :  { %5886 = vmatprep.subr.bf16.mxu1 %v5885_v19  ;;  %v3726_v19 = vld [vmem:[%s9133_s6 + $0x228] sm:$0xff] }
 0x8a9   :  { %v5953_v48 = vpack.c.bf16 %v3726_v19, %v3725_v31 }
 0x8aa   :  { %5860 = vmatpush1.bf16.msra.mxu0 %v9900_v50  ;;  %v5893_v50 = vpack.c.bf16 %v3680_v40, %v3679_v34  ;;  %v3733_v40 = vld [vmem:[%s9133_s6 + $0x260] sm:$0xff] }
 0x8ab   :  { %5862 = vmatprep.subr.bf16.mxu0 %v9901_v57  ;;  %5888 = vmatpush3.bf16.msra.mxu1 %v5887_v12  ;;  %v3663_v57 = vld [vmem:[%s9133_s6 + $0x30] sm:$0xff]  ;;  %v3728_v12 = vld [vmem:[%s9133_s6 + $0x238] sm:$0xff] }
 0x8ac   :  { %5890 = vmatprep.subr.bf16.mxu1 %v5889_v60  ;;  %v5957_v45 = vpack.c.bf16 %v3728_v12, %v3727_v32  ;;  %v3730_v60 = vld [vmem:[%s9133_s6 + $0x248] sm:$0xff] }
 0x8ad   :  { %v5961_v38 = vpack.c.bf16 %v3730_v60, %v3729_v24 }
 0x8ae   :  { %5864 = vmatpush1.bf16.msra.mxu0 %v9904_v1  ;;  %v3664_v1 = vld [vmem:[%s9133_s6 + $0x38] sm:$0xff] }
 0x8af   :  { %5866 = vmatprep.subr.bf16.mxu0 %v9905_v8  ;;  %5892 = vmatpush3.bf16.msra.mxu1 %v5891_v39  ;;  %v5895_v8 = vpack.c.bf16 %v3664_v1, %v3663_v57  ;;  %v3732_v39 = vld [vmem:[%s9133_s6 + $0x258] sm:$0xff]  ;;  %v3735_v1 = vld [vmem:[%s9133_s6 + $0x270] sm:$0xff] }
 0x8b0   :  { %5894 = vmatprep.subr.bf16.mxu1 %v5893_v50  ;;  %v5965_v34 = vpack.c.bf16 %v3732_v39, %v3731_v44  ;;  %v3734_v50 = vld [vmem:[%s9133_s6 + $0x268] sm:$0xff] }
 0x8b1   :  { %v5969_v57 = vpack.c.bf16 %v3734_v50, %v3733_v40 }
 0x8b2   :  { %5868 = vmatpush1.bf16.msra.mxu0 %v9908_v18  ;;  %v3681_v18 = vld [vmem:[%s9133_s6 + $0xc0] sm:$0xff] }
 0x8b3   :  { %5870 = vmatprep.subr.bf16.mxu0 %v9909_v29  ;;  %5896 = vmatpush3.bf16.msra.mxu1 %v5895_v8  ;;  %v3682_v29 = vld [vmem:[%s9133_s6 + $0xc8] sm:$0xff]  ;;  %v3736_v8 = vld [vmem:[%s9133_s6 + $0x278] sm:$0xff] }
 0x8b6   :  { %5872 = vmatpush1.bf16.msra.mxu0 %v9912_v51  ;;  %v5897_v51 = vpack.c.bf16 %v3682_v29, %v3681_v18  ;;  %v5973_v18 = vpack.c.bf16 %v3736_v8, %v3735_v1  ;;  %v3655_v29 = vld [vmem:[%s9134_s1] sm:$0xff] }
 0x8b7   :  { %5874 = vmatprep.subr.bf16.mxu0 %v9913_v13  ;;  %v3665_v13 = vld [vmem:[%s9133_s6 + $0x40] sm:$0xff] }
 0x8b8   :  { %5898 = vmatprep.subr.bf16.mxu1 %v5897_v51  ;;  %v3656_v51 = vld [vmem:[%s9134_s1 + $0x8] sm:$0xff] }
 0x8ba   :  { %5876 = vmatpush1.bf16.msra.mxu0 %v9916_v59  ;;  %v3666_v59 = vld [vmem:[%s9133_s6 + $0x48] sm:$0xff] }
 0x8bb   :  { %5878 = vmatprep.subr.bf16.mxu0 %v9917_v54  ;;  %v5899_v54 = vpack.c.bf16 %v3666_v59, %v3665_v13 }
 0x8bd   :  { %5900 = vmatpush3.bf16.msra.mxu1 %v5899_v54  ;;  %v9967_v54 = vld [vmem:[#allocation84_spill] sm:$0xff] }
 0x8be   :  { %5880 = vmatpush1.bf16.msra.mxu0 %v9920_v26  ;;  %v3683_v26 = vld [vmem:[%s9133_s6 + $0xd0] sm:$0xff] }
 0x8bf   :  { %v5901_v15 = vpack.c.bf16 %v3684_v30, %v3683_v26  ;;  %5946 = vmatprep.subr.bf16.mxu0 %v5945_v3  ;;  %v9968_v30 = vld [vmem:[#allocation85_spill] sm:$0xff] }
 0x8c1   :  { %3543 = vmatmul.mubr.f32.vlgmr.msra.gmra.mrb[102].mxu0 %v8717_v4  ;;  %5902 = vmatprep.subr.bf16.mxu1 %v5901_v15 }
 0x8c2   :  { %3548 = vmatprep.mubr.f32.mxu0 %v8730_v9  ;;  %5904 = vmatpush3.bf16.msra.mxu1 %v5903_v25 }
 0x8c3   :  { %5906 = vmatprep.subr.bf16.mxu1 %v5905_v20  ;;  %5948 = vmatpush3.bf16.msra.mxu0 %v5945_v3 }
 0x8c4   :  { %5950 = vmatprep.subr.bf16.mxu0 %v5949_v23 }
 0x8c5   :  { %3549 = vmatmul.mubr.f32.gmra.mrb[104].mxu0 %v8727_v58 }
 0x8c6   :  { %5908 = vmatpush3.bf16.msra.mxu1 %v5907_v6  ;;  %4319 = vmatprep.mubr.f32.mxu0 %v3655_v29  ;;  %v9972_v6 = vld [vmem:[#allocation88_spill] sm:$0xff] }
 0x8c7   :  { %5910 = vmatprep.subr.bf16.mxu1 %v5909_v17  ;;  %5952 = vmatpush3.bf16.msra.mxu0 %v5949_v23 }
 0x8c8   :  { %5954 = vmatprep.subr.bf16.mxu0 %v5953_v48 }
 0x8ca   :  { %5912 = vmatpush3.bf16.msra.mxu1 %v5911_v33  ;;  %v9973_v33 = vld [vmem:[#allocation94_spill] sm:$0xff] }
 0x8cb   :  { %5914 = vmatprep.subr.bf16.mxu1 %v5913_v49  ;;  %5956 = vmatpush3.bf16.msra.mxu0 %v5953_v48 }
 0x8cc   :  { %5958 = vmatprep.subr.bf16.mxu0 %v5957_v45 }
 0x8cf   :  { %5960 = vmatpush3.bf16.msra.mxu0 %v5957_v45 }
 0x8d0   :  { %5962 = vmatprep.subr.bf16.mxu0 %v5961_v38 }
 0x8d3   :  { %5964 = vmatpush3.bf16.msra.mxu0 %v5961_v38 }
 0x8d4   :  { %5966 = vmatprep.subr.bf16.mxu0 %v5965_v34 }
 0x8d7   :  { %5968 = vmatpush3.bf16.msra.mxu0 %v5965_v34 }
 0x8d8   :  { %5970 = vmatprep.subr.bf16.mxu0 %v5969_v57 }
 0x8db   :  { %5972 = vmatpush3.bf16.msra.mxu0 %v5969_v57 }
 0x8dc   :  { %5974 = vmatprep.subr.bf16.mxu0 %v5973_v18 }
 0x8df   :  { %5976 = vmatpush3.bf16.msra.mxu0 %v5973_v18 }
 0x8e2   :  { %4320 = vmatmul.mubr.f32.vlgmr.msra.gmra.mrb[106].mxu0 %v3656_v51 }
 0x954   :  { %v3390_v13 = vpop.f32.mrb[98].mxu0  ;;  %v3467_v59 = vpop.f32.mrb[82].mxu1 }
 0x955   :  { %v3555_v26 = vadd.f32 %v3390_v13, %v9967_v54  ;;  %v3583_v15 = vadd.f32 %v3467_v59, %v9968_v30  ;;  %v3392_v35 = vpop.f32.mrb[99].mxu0  ;;  %v3469_v42 = vpop.f32.mrb[83].mxu1 }
 0x956   :  { %v3556_v25 = vadd.f32 %v3392_v35, %v9969_v53  ;;  %v3584_v37 = vadd.f32 %v3469_v42, %v9970_v36  ;;  %v9975_v42 = vld [vmem:[#allocation144_spill] sm:$0xff] }
 0x957   :  { %v4175_v56 = vmul.f32 -1.442695, %v3555_v26  ;;  %v4179_v11 = vmul.f32 -1.442695, %v3583_v15 }
 0x958   :  { %v3396_v62 = vpop.f32.mrb[100].mxu0  ;;  %v3473_v20 = vpop.f32.mrb[84].mxu1  ;;  %v4176_v2 = vmul.f32 -1.442695, %v3556_v25  ;;  %v4180_v23 = vmul.f32 -1.442695, %v3584_v37 }
 0x959   :  { %v3557_v21 = vadd.f32 %v3396_v62, %v9971_v0  ;;  %v3585_v17 = vadd.f32 %v3473_v20, %v9972_v6  ;;  %v3398_v7 = vpop.f32.mrb[101].mxu0  ;;  %v3475_v43 = vpop.f32.mrb[85].mxu1  ;;  %6268 = vpow2.f32 %v4175_v56  ;;  %v9976_v62 = vld [vmem:[#allocation131_spill] sm:$0xff]  ;;  %v9981_v56 = vld [vmem:[#allocation36_spill] sm:$0xff] }
 0x95a   :  { %v3558_v41 = vadd.f32 %v3398_v7, %v9973_v33  ;;  %v3586_v49 = vadd.f32 %v3475_v43, %v9974_v47  ;;  %6270 = vpow2.f32 %v4176_v2  ;;  %v9977_v7 = vld [vmem:[#allocation147_spill] sm:$0xff]  ;;  %v9979_v47 = vld [vmem:[#allocation38_spill] sm:$0xff] }
 0x95b   :  { %v4177_v3 = vmul.f32 -1.442695, %v3557_v21  ;;  %v4181_v31 = vmul.f32 -1.442695, %v3585_v17  ;;  %v9978_v33 = vld [vmem:[#allocation135_spill] sm:$0xff]  ;;  %v9982_v2 = vld [vmem:[#allocation166_spill] sm:$0xff] }
 0x95c   :  { %v4178_v61 = vmul.f32 -1.442695, %v3558_v41  ;;  %v4182_v48 = vmul.f32 -1.442695, %v3586_v49  ;;  %v9980_v49 = vld [vmem:[#allocation167_spill] sm:$0xff] }
 0x95d   :  { %6272 = vpow2.f32 %v4177_v3  ;;  %v1598_v3 = vmax.f32 %v9982_v2, %v9981_v56 }
 0x95e   :  { %6274 = vpow2.f32 %v4178_v61  ;;  %v9983_v61 = vld [vmem:[#allocation40_spill] sm:$0xff] }
 0x95f   :  { %6276 = vpow2.f32 %v4179_v11  ;;  %v9984_v11 = vld [vmem:[#allocation168_spill] sm:$0xff] }
 0x960   :  { %6278 = vpow2.f32 %v4180_v23  ;;  %v1603_v23 = vadd.f32 %v9979_v47, %v9980_v49 }
 0x961   :  { %6280 = vpow2.f32 %v4181_v31 }
 0x962   :  { %6282 = vpow2.f32 %v4182_v48 }
 0x963   :  { %v6269_v19 = vpop.eup %6268 }
 0x964   :  { %v6271_v32 = vpop.eup %6270  ;;  %v3571_v12 = vadd.f32 1.0, %v6269_v19  ;;  %v9985_v19 = vld [vmem:[#allocation46_spill] sm:$0xff] }
 0x965   :  { %v3572_v24 = vadd.f32 1.0, %v6271_v32  ;;  %v9986_v32 = vld [vmem:[#allocation44_spill] sm:$0xff] }
 0x966   :  { %6284 = vrcp.f32 %v3571_v12  ;;  %v1939_v12 = vmax.f32 %v1598_v3, %v9986_v32 }
 0x967   :  { %v6273_v45 = vpop.eup %6272  ;;  %6286 = vrcp.f32 %v3572_v24  ;;  %v9988_v24 = vld [vmem:[#allocation34_spill] sm:$0xff] }
 0x968   :  { %v6275_v60 = vpop.eup %6274  ;;  %v3573_v38 = vadd.f32 1.0, %v6273_v45  ;;  %v9987_v45 = vld [vmem:[#allocation42_spill] sm:$0xff] }
 0x969   :  { %v3574_v44 = vadd.f32 1.0, %v6275_v60  ;;  %v6277_v39 = vpop.eup %6276  ;;  %v1601_v60 = vmax.f32 %v9988_v24, %v9987_v45 }
 0x96a   :  { %6288 = vrcp.f32 %v3573_v38  ;;  %v6279_v34 = vpop.eup %6278  ;;  %v3599_v57 = vadd.f32 1.0, %v6277_v39 }
 0x96b   :  { %6290 = vrcp.f32 %v3574_v44  ;;  %v6281_v40 = vpop.eup %6280  ;;  %v3600_v1 = vadd.f32 1.0, %v6279_v34  ;;  %v9989_v44 = vld [vmem:[#allocation48_spill] sm:$0xff]  ;;  %v1944_v34 = vadd.f32 %v9985_v19, %v1603_v23 }
 0x96c   :  { %v6283_v50 = vpop.eup %6282  ;;  %v3601_v18 = vadd.f32 1.0, %v6281_v40  ;;  %6292 = vrcp.f32 %v3599_v57 }
 0x96d   :  { %v3602_v59 = vadd.f32 1.0, %v6283_v50  ;;  %6294 = vrcp.f32 %v3600_v1  ;;  %v9990_v50 = vld [vmem:[#allocation54_spill] sm:$0xff]  ;;  %v9991_v1 = vld [vmem:[#allocation52_spill] sm:$0xff] }
 0x96e   :  { %6296 = vrcp.f32 %v3601_v18  ;;  %v9992_v18 = vld [vmem:[#allocation50_spill] sm:$0xff] }
 0x96f   :  { %6298 = vrcp.f32 %v3602_v59  ;;  %v9993_v59 = vld [vmem:[#allocation56_spill] sm:$0xff] }
 0x970   :  { %v6285_v13 = vpop.eup %6284 }
 0x971   :  { %v6287_v26 = vpop.eup %6286 }
 0x974   :  { %v6289_v37 = vpop.eup %6288 }
 0x975   :  { %v6291_v21 = vpop.eup %6290 }
 0x976   :  { %v6293_v31 = vpop.eup %6292 }
 0x977   :  { %v6295_v38 = vpop.eup %6294 }
 0x978   :  { %v6297_v40 = vpop.eup %6296 }
 0x994   :  { %v3544_v8 = vpop.f32.mrb[102].mxu0 }
 0x995   :  { %v3611_v29 = vadd.f32 %v3544_v8, %v7886_v10  ;;  %v3546_v51 = vpop.f32.mrb[103].mxu0  ;;  %v2280_v8 = vmax.f32 %v1939_v12, %v9991_v1 }
 0x996   :  { %v3612_v54 = vadd.f32 %v3546_v51, %v7890_v5  ;;  %v6299_v51 = vpop.eup %6298 }
 0x997   :  { %v3615_v30 = vmul.f32 %v6285_v13, %v3611_v29  ;;  %v1942_v29 = vmax.f32 %v1601_v60, %v9992_v18  ;;  %v3627_v13 = vsub.f32 1.0, %v6293_v31 }
 0x998   :  { %v3616_v15 = vmul.f32 %v6287_v26, %v3612_v54  ;;  %v3550_v35 = vpop.f32.mrb[104].mxu0  ;;  %v2285_v26 = vadd.f32 %v9990_v50, %v1944_v34 }
 0x999   :  { %v3619_v53 = vadd.f32 %v3615_v30, %v9975_v42  ;;  %v3613_v25 = vadd.f32 %v3550_v35, %v7886_v10  ;;  %v3552_v36 = vpop.f32.mrb[105].mxu0  ;;  %v1599_v10 = vmax.f32 %v9980_v49, %v9979_v47  ;;  %v3628_v35 = vsub.f32 1.0, %v6295_v38  ;;  %v3690_v47 = vld [vmem:[%s9133_s6 + $0x108] sm:$0xff] }
 0x99a   :  { %v3620_v20 = vadd.f32 %v3616_v15, %v9976_v62  ;;  %v3614_v0 = vadd.f32 %v3552_v36, %v7890_v5  ;;  %v1600_v5 = vmax.f32 %v9984_v11, %v9983_v61  ;;  %v2621_v42 = vmax.f32 %v2280_v8, %v8446_v55 }
 0x99b   :  { %6300 = vtanh.f32 %v3619_v53  ;;  %v3617_v6 = vmul.f32 %v6289_v37, %v3613_v25  ;;  %v1940_v48 = vmax.f32 %v1599_v10, %v9985_v19  ;;  %v9994_v53 = vld [vmem:[#allocation58_spill] sm:$0xff]  ;;  %v3635_v37 = vmul.f32 %v6293_v31, %v8717_v4 }
 0x99c   :  { %6302 = vtanh.f32 %v3620_v20  ;;  %v3618_v17 = vmul.f32 %v6291_v21, %v3614_v0  ;;  %v1941_v39 = vmax.f32 %v1600_v5, %v9989_v44  ;;  %v2283_v25 = vmax.f32 %v1942_v29, %v9994_v53  ;;  %v3707_v19 = vld [vmem:[%s9133_s6 + $0x190] sm:$0xff] }
 0x99d   :  { %v3621_v43 = vadd.f32 %v3617_v6, %v9977_v7  ;;  %v2281_v57 = vmax.f32 %v1940_v48, %v9990_v50  ;;  %v2626_v0 = vadd.f32 %v8448_v14, %v2285_v26  ;;  %v3630_v31 = vsub.f32 1.0, %v6299_v51  ;;  %v3708_v48 = vld [vmem:[%s9133_s6 + $0x198] sm:$0xff] }
 0x99e   :  { %v3622_v41 = vadd.f32 %v3618_v17, %v9978_v33  ;;  %v2282_v54 = vmax.f32 %v1941_v39, %v9993_v59  ;;  %v3636_v17 = vmul.f32 %v6295_v38, %v8719_v16  ;;  %v2624_v7 = vmax.f32 %v2283_v25, %v8459_v52 }
 0x99f   :  { %6304 = vtanh.f32 %v3621_v43  ;;  %v2622_v15 = vmax.f32 %v2281_v57, %v8448_v14  ;;  %v2962_v43 = vmax.f32 %v2621_v42, %v8582_v63  ;;  %v3629_v14 = vsub.f32 1.0, %v6297_v40  ;;  %v3710_v42 = vld [vmem:[%s9133_s6 + $0x1a8] sm:$0xff] }
 0x9a0   :  { %6306 = vtanh.f32 %v3622_v41  ;;  %v2623_v20 = vmax.f32 %v2282_v54, %v8456_v28  ;;  %v3689_v41 = vld [vmem:[%s9133_s6 + $0x100] sm:$0xff]  ;;  %v2967_v49 = vadd.f32 %v8584_v27, %v2626_v0  ;;  %v2965_v23 = vmax.f32 %v2624_v7, %v8595_v46  ;;  %v3712_v7 = vld [vmem:[%s9133_s6 + $0x1b8] sm:$0xff] }
 0x9a1   :  { %v2963_v21 = vmax.f32 %v2622_v15, %v8584_v27  ;;  %v3303_v60 = vmax.f32 %v2962_v43, %v8717_v4  ;;  %v3637_v27 = vmul.f32 %v6297_v40, %v8727_v58  ;;  %v5915_v50 = vpack.c.bf16 %v3690_v47, %v3689_v41  ;;  %v3693_v0 = vld [vmem:[%s9133_s6 + $0x120] sm:$0xff]  ;;  %v3695_v47 = vld [vmem:[%s9133_s6 + $0x130] sm:$0xff] }
 0x9a2   :  { %v3308_v39 = vadd.f32 %v8719_v16, %v2967_v49  ;;  %v3638_v8 = vmul.f32 %v6299_v51, %v8730_v9  ;;  %v2964_v54 = vmax.f32 %v2623_v20, %v8592_v22  ;;  %v3306_v40 = vmax.f32 %v2965_v23, %v8730_v9  ;;  %v3713_v49 = vld [vmem:[%s9133_s6 + $0x1c0] sm:$0xff] }
 0x9a3   :  { %v3304_v3 = vmax.f32 %v2963_v21, %v8719_v16  ;;  %v3692_v16 = vld [vmem:[%s9133_s6 + $0x118] sm:$0xff]  ;;  %v3694_v21 = vld [vmem:[%s9133_s6 + $0x128] sm:$0xff]  ;;  %v3697_v23 = vld [vmem:[%s9133_s6 + $0x140] sm:$0xff] }
 0x9a4   :  { %v3305_v25 = vmax.f32 %v2964_v54, %v8727_v58  ;;  %v5923_v43 = vpack.c.bf16 %v3694_v21, %v3693_v0  ;;  %v3974_v0 = vld [vmem:[%s9135_s8 + $0x18] sm:$0xff] }
 0x9a5   :  { %v6301_v30 = vpop.eup %6300 }
 0x9a6   :  { %v6303_v36 = vpop.eup %6302  ;;  %v3631_v62 = vmul.f32 %v6301_v30, %v3627_v13  ;;  %v5917_v13 = vpack.c.bf16 %v3708_v48, %v3707_v19  ;;  %v3691_v30 = vld [vmem:[%s9133_s6 + $0x110] sm:$0xff]  ;;  %v3716_v48 = vld [vmem:[%s9133_s6 + $0x1d8] sm:$0xff] }
 0x9a7   :  { %v3632_v6 = vmul.f32 %v6303_v36, %v3628_v35  ;;  %v3709_v35 = vld [vmem:[%s9133_s6 + $0x1a0] sm:$0xff]  ;;  %v3715_v19 = vld [vmem:[%s9133_s6 + $0x1d0] sm:$0xff] }
 0x9a8   :  { %v8971_v33 = vadd.f32 %v3635_v37, %v3631_v62  ;;  %v5919_v37 = vpack.c.bf16 %v3692_v16, %v3691_v30  ;;  %v5921_v20 = vpack.c.bf16 %v3710_v42, %v3709_v35  ;;  %v3704_v35 = vld [vmem:[%s9133_s6 + $0x178] sm:$0xff] }
 0x9a9   :  { %v6305_v10 = vpop.eup %6304  ;;  %v3640_v5 = vadd.f32 %v3636_v17, %v3632_v6  ;;  %v3711_v17 = vld [vmem:[%s9133_s6 + $0x1b0] sm:$0xff] }
 0x9aa   :  { %v6307_v12 = vpop.eup %6306  ;;  %v3633_v38 = vmul.f32 %v6305_v10, %v3629_v14  ;;  %v3643_v29 = vmax.f32 %v3303_v60, %v8971_v33  ;;  %v5925_v41 = vpack.c.bf16 %v3712_v7, %v3711_v17  ;;  %v3696_v14 = vld [vmem:[%s9133_s6 + $0x138] sm:$0xff]  ;;  %v3714_v10 = vld [vmem:[%s9133_s6 + $0x1c8] sm:$0xff]  ;;  %v5933_v60 = vpack.c.bf16 %v3716_v48, %v3715_v19 }
 0x9ab   :  { %v3644_v34 = vmax.f32 %v3304_v3, %v3640_v5  ;;  %v3634_v57 = vmul.f32 %v6307_v12, %v3630_v31  ;;  %v3648_v51 = vadd.f32 %v3640_v5, %v3308_v39  ;;  %v5927_v3 = vpack.c.bf16 %v3696_v14, %v3695_v47  ;;  %v3698_v31 = vld [vmem:[%s9133_s6 + $0x148] sm:$0xff] }
 0x9ac   :  { %v8994_v26 = vadd.f32 %v3637_v27, %v3633_v38  ;;  %v5929_v5 = vpack.c.bf16 %v3714_v10, %v3713_v49  ;;  %v5931_v12 = vpack.c.bf16 %v3698_v31, %v3697_v23  ;;  %v3699_v38 = vld [vmem:[%s9133_s6 + $0x150] sm:$0xff]  ;;  %v3700_v27 = vld [vmem:[%s9133_s6 + $0x158] sm:$0xff]  ;;  %v1602_v39 = vadd.f32 %v9981_v56, %v9982_v2  ;;  %v3701_v56 = vld [vmem:[%s9133_s6 + $0x160] sm:$0xff] }
 0x9ad   :  { %3808 = vmatprep.mubr.f32.mxu1 %v3644_v34  ;;  %v9003_v15 = vadd.f32 %v3638_v8, %v3634_v57  ;;  %v3652_v6 = vmul.f32 0.125, %v3648_v51  ;;  %v3717_v34 = vld [vmem:[%s9133_s6 + $0x1e0] sm:$0xff]  ;;  %v1605_v57 = vadd.f32 %v9987_v45, %v9988_v24  ;;  %v3702_v2 = vld [vmem:[%s9133_s6 + $0x168] sm:$0xff]  ;;  %v1604_v45 = vadd.f32 %v9983_v61, %v9984_v11  ;;  %v3720_v24 = vld [vmem:[%s9133_s6 + $0x1f8] sm:$0xff] }
 0x9ae   :  { %3809 = vmatmul.mubr.f32.vlgmr.msra.gmra.mrb[86].mxu1 %v3643_v29  ;;  %v3645_v62 = vmax.f32 %v3305_v25, %v8994_v26  ;;  %v1943_v8 = vadd.f32 %v9986_v32, %v1602_v39  ;;  %v5935_v29 = vpack.c.bf16 %v3700_v27, %v3699_v38  ;;  %v3719_v32 = vld [vmem:[%s9133_s6 + $0x1f0] sm:$0xff]  ;;  %v5939_v51 = vpack.c.bf16 %v3702_v2, %v3701_v56  ;;  %v4183_v49 = vld [vmem:[%s9137_s7] ss:$0 sm:$0xff] }
 0x9af   :  { %5916 = vmatpush3.bf16.msra.mxu1 %v5915_v50  ;;  %v3646_v36 = vmax.f32 %v3306_v40, %v9003_v15  ;;  %v3718_v50 = vld [vmem:[%s9133_s6 + $0x1e8] sm:$0xff]  ;;  %v1945_v40 = vadd.f32 %v9989_v44, %v1604_v45  ;;  %v5941_v61 = vpack.c.bf16 %v3720_v24, %v3719_v32  ;;  %v3703_v11 = vld [vmem:[%s9133_s6 + $0x170] sm:$0xff] }
 0x9b0   :  { %5918 = vmatprep.subr.bf16.mxu1 %v5917_v13  ;;  %v1946_v13 = vadd.f32 %v9992_v18, %v1605_v57  ;;  %v5937_v54 = vpack.c.bf16 %v3718_v50, %v3717_v34  ;;  %v2284_v30 = vadd.f32 %v9991_v1, %v1943_v8  ;;  %v5943_v25 = vpack.c.bf16 %v3704_v35, %v3703_v11 }
 0x9b1   :  { %3813 = vmatprep.mubr.f32.mxu1 %v3646_v36 }
 0x9b2   :  { %3814 = vmatmul.mubr.f32.gmra.mrb[88].mxu1 %v3645_v62  ;;  %v2287_v18 = vadd.f32 %v9994_v53, %v1946_v13  ;;  %v2625_v16 = vadd.f32 %v8446_v55, %v2284_v30  ;;  %v2286_v55 = vadd.f32 %v9993_v59, %v1945_v40 }
 0x9b3   :  { %5920 = vmatpush3.bf16.msra.mxu1 %v5919_v37  ;;  %3883 = vmatprep.mubr.f32.mxu1 %v3652_v6  ;;  %v15_v6 = vstv %s9136_s9 }
 0x9b4   :  { %5922 = vmatprep.subr.bf16.mxu1 %v5921_v20  ;;  %v2628_v1 = vadd.f32 %v8459_v52, %v2287_v18  ;;  %v2966_v53 = vadd.f32 %v8582_v63, %v2625_v16  ;;  %v2627_v52 = vadd.f32 %v8456_v28, %v2286_v55  ;;  %16 = vst [vmem:[#allocation4] sm:$0x1] %v15_v6 }
 0x9b6   :  { %v2969_v44 = vadd.f32 %v8595_v46, %v2628_v1  ;;  %v3307_v42 = vadd.f32 %v8717_v4, %v2966_v53  ;;  %v2968_v62 = vadd.f32 %v8592_v22, %v2627_v52  ;;  %v3972_v22 = vld [vmem:[%s9135_s8 + $0x8] sm:$0xff] }
 0x9b7   :  { %5924 = vmatpush3.bf16.msra.mxu1 %v5923_v43 }
 0x9b8   :  { %5926 = vmatprep.subr.bf16.mxu1 %v5925_v41  ;;  %v3310_v36 = vadd.f32 %v8730_v9, %v2969_v44  ;;  %v3647_v37 = vadd.f32 %v8971_v33, %v3307_v42  ;;  %v3309_v63 = vadd.f32 %v8727_v58, %v2968_v62  ;;  %v3971_v9 = vld [vmem:[%s9135_s8] sm:$0xff] }
 0x9b9   :  { %v5977_v33 = vpack.c.bf16 %v3972_v22, %v3971_v9 }
 0x9ba   :  { %v3650_v20 = vadd.f32 %v9003_v15, %v3310_v36  ;;  %v3651_v59 = vmul.f32 0.125, %v3647_v37  ;;  %v3649_v46 = vadd.f32 %v8994_v26, %v3309_v63  ;;  %v4321_v15 = vpop.f32.mrb[106].mxu0  ;;  %v3973_v26 = vld [vmem:[%s9135_s8 + $0x10] sm:$0xff] }
 0x9bb   :  { %5928 = vmatpush3.bf16.msra.mxu1 %v5927_v3  ;;  %v3960_v58 = vpop.f32.mrb[107].mxu0  ;;  %v5981_v21 = vpack.c.bf16 %v3974_v0, %v3973_v26  ;;  %v4184_v57 = vld [vmem:[#allocation4] ss:$0 sm:$0xff] }
 0x9bc   :  { %5930 = vmatprep.subr.bf16.mxu1 %v5929_v5  ;;  %v3654_v4 = vmul.f32 0.125, %v3650_v20  ;;  %v3653_v28 = vmul.f32 0.125, %v3649_v46 }
 0x9bf   :  { %5932 = vmatpush3.bf16.msra.mxu1 %v5931_v12 }
 0x9c0   :  { %5934 = vmatprep.subr.bf16.mxu1 %v5933_v60 }
 0x9c3   :  { %5936 = vmatpush3.bf16.msra.mxu1 %v5935_v29 }
 0x9c4   :  { %5938 = vmatprep.subr.bf16.mxu1 %v5937_v54 }
 0x9c7   :  { %5940 = vmatpush3.bf16.msra.mxu1 %v5939_v51 }
 0x9c8   :  { %5942 = vmatprep.subr.bf16.mxu1 %v5941_v61 }
 0x9cb   :  { %5944 = vmatpush3.bf16.msra.mxu1 %v5943_v25 }
 0x9cc   :  { %5978 = vmatprep.subr.bf16.mxu1 %v5977_v33 }
 0x9ce   :  { %3884 = vmatmul.mubr.f32.vlgmr.msra.gmra.mrb[90].mxu1 %v3651_v59 }
 0x9cf   :  { %3888 = vmatprep.mubr.f32.mxu1 %v3654_v4  ;;  %5980 = vmatpush3.bf16.msra.mxu1 %v5977_v33 }
 0x9d0   :  { %5982 = vmatprep.subr.bf16.mxu1 %v5981_v21 }
 0x9d2   :  { %3889 = vmatmul.mubr.f32.gmra.mrb[92].mxu1 %v3653_v28 }
 0x9d3   :  { %5984 = vmatpush3.bf16.msra.mxu1 %v5981_v21 }
 0xa81   :  { %v4219_v17 = vpop.f32.mrb[86].mxu1 }
 0xa82   :  { %v4220_v7 = vpop.f32.mrb[87].mxu1 }
 0xa83   :  { %v4221_v43 = vadd.f32 %v4220_v7, %v4219_v17 }
 0xa85   :  { %v4222_v41 = vpop.f32.mrb[88].mxu1  ;;  %v3811_v5 = vadd.f32 %v4221_v43, %v4183_v49 }
 0xa86   :  { %v4223_v47 = vpop.f32.mrb[89].mxu1 }
 0xa87   :  { %v4224_v14 = vadd.f32 %v4223_v47, %v4222_v41 }
 0xa89   :  { %v3816_v12 = vadd.f32 %v4224_v14, %v4183_v49 }
 0xaa1   :  { %v4257_v10 = vpop.f32.mrb[90].mxu1 }
 0xaa2   :  { %v4258_v3 = vpop.f32.mrb[91].mxu1 }
 0xaa3   :  { %v4259_v23 = vadd.f32 %v4258_v3, %v4257_v10 }
 0xaa5   :  { %v4260_v31 = vpop.f32.mrb[92].mxu1  ;;  %v3886_v19 = vadd.f32 %v4259_v23, %v3811_v5 }
 0xaa6   :  { %v4261_v48 = vpop.f32.mrb[93].mxu1 }
 0xaa7   :  { %v4262_v60 = vadd.f32 %v4261_v48, %v4260_v31  ;;  %v3961_v38 = vadd.f32 %v3960_v58, %v3886_v19 }
 0xaa9   :  { %v3891_v27 = vadd.f32 %v4262_v60, %v3816_v12  ;;  %v3969_v39 = vmax.f32 %v3961_v38, 0.0 }
 0xaab   :  { %v3966_v34 = vadd.f32 %v4321_v15, %v3891_v27  ;;  %4330 = vmatprep.mubr.msk.f32.mxu1 %vm3982_vm1, %v3969_v39 }
 0xaad   :  { %v3970_v50 = vmax.f32 %v3966_v34, 0.0 }
 0xaaf   :  { %4331 = vmatmul.mubr.msk.f32.vlgmr.msra.gmra.mrb[94].mxu1 %vm3982_vm1, %v3970_v50 }
 0xb82   :  { %v4332_v8 = vpop.f32.mrb[94].mxu1 }
 0xb83   :  { %v4061_v29 = vadd.f32 %v4332_v8, %v4184_v57  ;;  %v4055_v13 = vpop.f32.mrb[95].mxu1 }
 0xb84   :  { %v4056_v54 = vadd.f32 %v4184_v57, %v4055_v13 }
 0xb85   :  { %4066 = vst.msk [vmem:[%s9138_s10 + $0x8] sm:$0xff] %vm4064_vm2, %v4061_v29 }
 0xb86   :  { %4065 = vst.msk [vmem:[%s9138_s10] sm:$0xff] %vm4064_vm2, %v4056_v54 }

</bundles_post_ra>
